<compile_context>
chip_gen: v7x
topology: tpu7x:2x2x1
jax: 0.10.0
libtpu: 0.0.40
codegen_flags: <defaults>
</compile_context>

<pallas_src>
import functools
import math

import numpy as np
import jax
import jax.numpy as jnp
from jax import lax
from jax.experimental import pallas as pl
from jax.experimental.pallas import tpu as pltpu


# -----------------------------------------------------------------------------
# Small helpers
# -----------------------------------------------------------------------------
_TM, _TN, _TK = 256, 256, 512          # tile targets


def _vmem_cap_bytes():
    """Generation-aware VMEM cap: 0.75 * physical capacity, conservative fallback."""
    try:
        return int(0.75 * pltpu.get_tpu_info().vmem_capacity_bytes)
    except Exception:
        return 48 << 20                # safe for v7x (64 MiB physical)


_VMEM_CAP = _vmem_cap_bytes()


def _pick_block(dim, target, multiple):
    """Largest block <= target that divides dim and is a multiple of `multiple`,
    falling back to the full dim (which always satisfies the (8,128) rule)."""
    if dim <= target:
        return dim
    t = (target // multiple) * multiple
    while t >= multiple:
        if dim % t == 0:
            return t
        t -= multiple
    return dim


def _cparams(sems, block_bytes):
    """CompilerParams with vmem_limit sized from the chosen tiles (double-buffer + slack)."""
    vmem = int(3 * block_bytes) + (4 << 20)
    vmem = max(16 << 20, min(vmem, _VMEM_CAP))
    return pltpu.CompilerParams(dimension_semantics=sems, vmem_limit_bytes=vmem)


# -----------------------------------------------------------------------------
# Pallas kernels
# -----------------------------------------------------------------------------
def _linear_kernel(*args, act, nk, has_bias, has_res):
    """Tiled matmul accumulating directly into the resident fp32 output block;
    optional bias, activation and fused residual applied at the last K step."""
    x_ref, w_ref = args[0], args[1]
    idx = 2
    b_ref = r_ref = None
    if has_bias:
        b_ref = args[idx]; idx += 1
    if has_res:
        r_ref = args[idx]; idx += 1
    o_ref = args[idx]

    k = pl.program_id(2)

    @pl.when(k == 0)
    def _init():
        o_ref[...] = jnp.zeros_like(o_ref)

    o_ref[...] += jnp.dot(x_ref[...].astype(jnp.bfloat16), w_ref[...],
                          preferred_element_type=jnp.float32)

    @pl.when(k == nk - 1)
    def _finish():
        y = o_ref[...]
        if has_bias:
            y = y + b_ref[...]
        if act == "gelu":
            y = jax.nn.gelu(y)
        if has_res:
            y = y + r_ref[...]
        o_ref[...] = y


def pallas_linear(x, w, b=None, act="none", residual=None):
    """x: (M, K) @ w: (K, N) [+ b] [act] [+ residual], tiled over (M, N, K).
    x may be bf16 (preferred) or fp32 (cast in-kernel); w is bf16; output fp32."""
    M, K = x.shape
    _, N = w.shape
    tm = _pick_block(M, _TM, 16)
    tn = _pick_block(N, _TN, 128)
    tk = _pick_block(K, _TK, 128)
    nk = K // tk
    grid = (M // tm, N // tn, nk)

    w = w.astype(jnp.bfloat16)         # no-op when already stored bf16
    in_specs = [pl.BlockSpec((tm, tk), lambda i, j, k: (i, k)),
                pl.BlockSpec((tk, tn), lambda i, j, k: (k, j))]
    args = [x, w]
    nbytes = tm * tk * x.dtype.itemsize + tk * tn * 2
    if b is not None:
        in_specs.append(pl.BlockSpec((1, tn), lambda i, j, k: (0, j)))
        args.append(b.reshape(1, N).astype(jnp.float32))
        nbytes += tn * 4
    if residual is not None:
        in_specs.append(pl.BlockSpec((tm, tn), lambda i, j, k: (i, j)))
        args.append(residual.astype(jnp.float32))
        nbytes += tm * tn * 4
    nbytes += tm * tn * 4   # output block

    kernel = functools.partial(_linear_kernel, act=act, nk=nk,
                               has_bias=b is not None, has_res=residual is not None)
    return pl.pallas_call(
        kernel,
        grid=grid,
        in_specs=in_specs,
        out_specs=pl.BlockSpec((tm, tn), lambda i, j, k: (i, j)),
        out_shape=jax.ShapeDtypeStruct((M, N), jnp.float32),
        compiler_params=_cparams(("parallel", "parallel", "arbitrary"), nbytes),
    )(*args)


def _ln_linear_kernel(*args, act, has_bias):
    """LayerNorm (fp32, over full K) fused with matmul.  The normalized bf16
    row tile is computed once per row block (j==0) into VMEM scratch and reused
    for every output-column tile j>0."""
    x_ref, g_ref, bln_ref, w_ref = args[:4]
    if has_bias:
        b_ref, o_ref, xn_ref = args[4], args[5], args[6]
    else:
        b_ref, o_ref, xn_ref = None, args[4], args[5]

    j = pl.program_id(1)

    @pl.when(j == 0)
    def _ln():
        x = x_ref[...]
        mean = jnp.mean(x, axis=-1, keepdims=True)
        var = jnp.mean(jnp.square(x - mean), axis=-1, keepdims=True)
        xn = (x - mean) * lax.rsqrt(var + 1e-5) * g_ref[...] + bln_ref[...]
        xn_ref[...] = xn.astype(xn_ref.dtype)

    y = jnp.dot(xn_ref[...], w_ref[...], preferred_element_type=jnp.float32)
    if has_bias:
        y = y + b_ref[...]
    if act == "gelu":
        y = jax.nn.gelu(y)
    o_ref[...] = y.astype(o_ref.dtype)


def pallas_ln_linear(x, g, beta, w, b=None, act="none", out_dtype=jnp.float32):
    """LayerNorm(x) @ w (+ b) with the LN fused into the matmul; tiled over (M, N)."""
    M, K = x.shape
    _, N = w.shape
    tm = _pick_block(M, _TM, 16)
    tn = _pick_block(N, _TN, 128)
    grid = (M // tm, N // tn)

    w = w.astype(jnp.bfloat16)
    in_specs = [pl.BlockSpec((tm, K), lambda i, j: (i, 0)),
                pl.BlockSpec((1, K), lambda i, j: (0, 0)),
                pl.BlockSpec((1, K), lambda i, j: (0, 0)),
                pl.BlockSpec((K, tn), lambda i, j: (0, j))]
    args = [x.astype(jnp.float32),
            g.reshape(1, K).astype(jnp.float32),
            beta.reshape(1, K).astype(jnp.float32),
            w]
    nbytes = tm * K * 4 + 2 * K * 4 + K * tn * 2 + tm * tn * 4 + tm * K * 2
    if b is not None:
        in_specs.append(pl.BlockSpec((1, tn), lambda i, j: (0, j)))
        args.append(b.reshape(1, N).astype(jnp.float32))
        nbytes += tn * 4

    kernel = functools.partial(_ln_linear_kernel, act=act, has_bias=b is not None)
    return pl.pallas_call(
        kernel,
        grid=grid,
        in_specs=in_specs,
        out_specs=pl.BlockSpec((tm, tn), lambda i, j: (i, j)),
        out_shape=jax.ShapeDtypeStruct((M, N), out_dtype),
        scratch_shapes=[pltpu.VMEM((tm, K), jnp.bfloat16)],
        # j is "arbitrary": the cached xn scratch requires each row block to start at j==0.
        compiler_params=_cparams(("parallel", "arbitrary"), nbytes),
    )(*args)


def _attn_kernel(q_ref, k_ref, v_ref, o_ref, *, scale):
    """Batched multi-group softmax attention (no bias). fp32 softmax, bf16 MXU operands."""
    q = q_ref[...].astype(jnp.bfloat16)
    k = k_ref[...].astype(jnp.bfloat16)
    s = jnp.einsum("bqd,bkd->bqk", q, k,
                   preferred_element_type=jnp.float32) * scale
    m = jnp.max(s, axis=-1, keepdims=True)
    p = jnp.exp(s - m)
    p = p * pl.reciprocal(jnp.sum(p, axis=-1, keepdims=True), approx=True)
    o = jnp.einsum("bqk,bkd->bqd", p.astype(jnp.bfloat16),
                   v_ref[...].astype(jnp.bfloat16),
                   preferred_element_type=jnp.float32)
    o_ref[...] = o.astype(o_ref.dtype)


def pallas_attention(q, k, v, scale):
    """q,k,v: (G, N, d) bf16.  Many groups per grid step; bf16 output."""
    # TODO(synk): lane-dense (N, heads*dh) output + in-kernel head split would remove
    # the XLA transpose glue, but dh < 128 blocks violate the (8,128) BlockSpec rule here.
    G, N, d = q.shape
    isz = q.dtype.itemsize
    per_group = 3 * N * d * isz + N * d * 2 + 2 * N * N * 4
    budget = max(2 << 20, min(8 << 20, _VMEM_CAP // 8))
    gt = _pick_block(G, max(1, budget // per_group), 1)
    grid = (G // gt,)
    spec = pl.BlockSpec((gt, N, d), lambda g: (g, 0, 0))
    nbytes = 3 * gt * N * d * isz + gt * N * d * 2 + gt * N * N * 4
    return pl.pallas_call(
        functools.partial(_attn_kernel, scale=scale),
        grid=grid,
        in_specs=[spec, spec, spec],
        out_specs=spec,
        out_shape=jax.ShapeDtypeStruct((G, N, d), jnp.bfloat16),
        compiler_params=_cparams(("parallel",), nbytes),
    )(q, k, v)


def _win_attn_kernel(q_ref, k_ref, v_ref, b_ref, o_ref, *, scale):
    """Shifted-window attention: per-window bias (rel-pos + shift mask) shared over groups
    via implicit broadcasting (no materialized copies)."""
    gt, nw, lw, dh = q_ref.shape
    q = q_ref[...].astype(jnp.bfloat16).reshape(gt * nw, lw, dh)
    k = k_ref[...].astype(jnp.bfloat16).reshape(gt * nw, lw, dh)
    v = v_ref[...].astype(jnp.bfloat16).reshape(gt * nw, lw, dh)
    s = jnp.einsum("bqd,bkd->bqk", q, k,
                   preferred_element_type=jnp.float32) * scale
    s = s.reshape(gt, nw, lw, lw) + b_ref[...]          # implicit broadcast over gt
    m = jnp.max(s, axis=-1, keepdims=True)
    p = jnp.exp(s - m)
    p = p * pl.reciprocal(jnp.sum(p, axis=-1, keepdims=True), approx=True)
    p = p.reshape(gt * nw, lw, lw).astype(jnp.bfloat16)
    o = jnp.einsum("bqk,bkd->bqd", p, v, preferred_element_type=jnp.float32)
    o_ref[...] = o.reshape(gt, nw, lw, dh).astype(o_ref.dtype)


def pallas_window_attention(q, k, v, bias, scale):
    """q,k,v: (B*heads, nW, Lw, d) bf16;  bias: (nW, Lw, Lw) fp32; bf16 output."""
    BH, nW, Lw, d = q.shape
    isz = q.dtype.itemsize
    per_group = 3 * nW * Lw * d * isz + nW * Lw * d * 2 + 2 * nW * Lw * Lw * 4
    budget = max(2 << 20, min(8 << 20, _VMEM_CAP // 8))
    gt = _pick_block(BH, max(1, budget // per_group), 1)
    grid = (BH // gt,)
    qspec = pl.BlockSpec((gt, nW, Lw, d), lambda g: (g, 0, 0, 0))
    bspec = pl.BlockSpec((nW, Lw, Lw), lambda g: (0, 0, 0))
    nbytes = (3 * gt * nW * Lw * d * isz + gt * nW * Lw * d * 2
              + nW * Lw * Lw * 4 + gt * nW * Lw * Lw * 4)
    return pl.pallas_call(
        functools.partial(_win_attn_kernel, scale=scale),
        grid=grid,
        in_specs=[qspec, qspec, qspec, bspec],
        out_specs=qspec,
        out_shape=jax.ShapeDtypeStruct((BH, nW, Lw, d), jnp.bfloat16),
        compiler_params=_cparams(("parallel",), nbytes),
    )(q, k, v, bias.astype(jnp.float32))


_LOG2 = float(np.log(2.0))


def _loss_kernel(p_ref, t_ref, m_ref, o_ref):
    i = pl.program_id(0)

    @pl.when(i == 0)
    def _init():
        o_ref[...] = jnp.zeros_like(o_ref)

    d = p_ref[...] - t_ref[...]
    x = -2.0 * d
    sp = jnp.maximum(x, 0.0) + jnp.log(1.0 + jnp.exp(-jnp.abs(x)))   # stable softplus
    loss = d + sp - _LOG2
    loss_tok = jnp.mean(loss, axis=-1, keepdims=True)                # (tm, 1)
    m = m_ref[...]                                                   # (tm, 1)
    num = jnp.sum(loss_tok * m, keepdims=True)                       # (1, 1)
    den = jnp.sum(m, keepdims=True)                                  # (1, 1)
    lane = lax.broadcasted_iota(jnp.int32, (1, 128), 1)
    o_ref[...] += (jnp.where(lane == 0, num, 0.0) +
                   jnp.where(lane == 1, den, 0.0))


def pallas_loss(pred, target, mask):
    """Tiled masked log-cosh loss; accumulates (num, den) in a resident output block."""
    B, L, P = pred.shape
    M = B * L
    tm = _pick_block(M, 1024, 8)
    grid = (M // tm,)
    nbytes = 2 * tm * P * 4 + tm * 4 + 128 * 4
    out = pl.pallas_call(
        _loss_kernel,
        grid=grid,
        in_specs=[pl.BlockSpec((tm, P), lambda i: (i, 0)),
                  pl.BlockSpec((tm, P), lambda i: (i, 0)),
                  pl.BlockSpec((tm, 1), lambda i: (i, 0))],
        out_specs=pl.BlockSpec((1, 128), lambda i: (0, 0)),
        out_shape=jax.ShapeDtypeStruct((1, 128), jnp.float32),
        compiler_params=_cparams(("arbitrary",), nbytes),
    )(pred.reshape(M, P).astype(jnp.float32),
      target.reshape(M, P).astype(jnp.float32),
      mask.reshape(M, 1).astype(jnp.float32))
    return out[0, 0] / jnp.maximum(out[0, 1], 1e-12)   # guard against all-zero mask


# -----------------------------------------------------------------------------
# Sin-cos positional embeddings (numpy, same as MAE reference)
# -----------------------------------------------------------------------------
def _get_1d_sincos(embed_dim, pos):
    omega = np.arange(embed_dim // 2, dtype=np.float64) / (embed_dim / 2.0)
    omega = 1.0 / 10000 ** omega
    pos = pos.reshape(-1)
    out = np.einsum("m,d->md", pos, omega)
    return np.concatenate([np.sin(out), np.cos(out)], axis=1)


def get_2d_sincos_pos_embed(embed_dim, grid_size, cls_token=False):
    gh, gw = grid_size
    grid_h = np.arange(gh, dtype=np.float32)
    grid_w = np.arange(gw, dtype=np.float32)
    grid = np.meshgrid(grid_w, grid_h)
    grid = np.stack(grid, axis=0).reshape([2, 1, gh, gw])
    emb_h = _get_1d_sincos(embed_dim // 2, grid[0])
    emb_w = _get_1d_sincos(embed_dim // 2, grid[1])
    emb = np.concatenate([emb_h, emb_w], axis=1)
    if cls_token:
        emb = np.concatenate([np.zeros([1, embed_dim]), emb], axis=0)
    return emb.astype(np.float32)


# -----------------------------------------------------------------------------
# Swin helpers (relative indices and shifted-window masks), numpy, static
# -----------------------------------------------------------------------------
_NEG = -1e9


def get_relative_indices(ws):
    coords = np.array([[i, j] for i in range(ws) for j in range(ws)])
    rel = coords[None, :, :] - coords[:, None, :]
    return rel + ws - 1  # (ws^2, ws^2, 2)


def create_mask(ws, disp, upper_lower, left_right):
    mask = np.zeros((ws * ws, ws * ws), dtype=np.float32)
    if upper_lower:
        mask[-disp * ws:, : -disp * ws] = _NEG
        mask[: -disp * ws, -disp * ws:] = _NEG
    if left_right:
        m = mask.reshape(ws, ws, ws, ws)
        m[:, -disp:, :, : -disp] = _NEG
        m[:, : -disp, :, -disp:] = _NEG
        mask = m.reshape(ws * ws, ws * ws)
    return mask


# -----------------------------------------------------------------------------
# Parameters (matmul weights stored in bf16 ONCE; LN/bias/pos-embed fp32)
# -----------------------------------------------------------------------------
def init_params(key, cfg):
    keys = iter(jax.random.split(key, 512))

    def xavier(shape):
        fan_in, fan_out = shape[0], shape[1]
        bound = math.sqrt(6.0 / (fan_in + fan_out))
        w = jax.random.uniform(next(keys), shape, jnp.float32, -bound, bound)
        return w.astype(jnp.bfloat16)

    E = cfg["embed_dim"]
    D = cfg["decoder_embed_dim"]
    C, p = cfg["in_chans"], cfg["patch_size"]
    gh, gw = cfg["grid_h"], cfg["grid_w"]
    heads = cfg["num_heads"]
    dheads = cfg["decoder_num_heads"]
    inner_e = heads * (E // heads)
    inner_d = dheads * (D // dheads)
    mlp_e = int(cfg["mlp_ratio"] * E)
    mlp_d = int(cfg["mlp_ratio"] * D)
    ws = cfg["window_size"]

    params = {
        "patch_w": xavier((C * p * p, E)),
        "patch_b": jnp.zeros((E,), jnp.float32),
        "cls_token": 0.02 * jax.random.normal(next(keys), (1, 1, E), jnp.float32),
        "pos_embed": jnp.asarray(
            get_2d_sincos_pos_embed(E, (gh, gw), cls_token=True))[None],
        "norm_g": jnp.ones((E,), jnp.float32),
        "norm_b": jnp.zeros((E,), jnp.float32),
        "dec_embed_w": xavier((E, D)),
        "dec_embed_b": jnp.zeros((D,), jnp.float32),
        "mask_token": 0.02 * jax.random.normal(next(keys), (1, 1, D), jnp.float32),
        "decoder_pos_embed": jnp.asarray(
            get_2d_sincos_pos_embed(D, (gh, gw), cls_token=False))[None],
        "dec_norm_g": jnp.ones((D,), jnp.float32),
        "dec_norm_b": jnp.zeros((D,), jnp.float32),
        "dec_pred_w": xavier((D, p * p * C)),
        "dec_pred_b": jnp.zeros((p * p * C,), jnp.float32),
    }
    # TODO(synk): linear1/linear2/sigmoid classification head exists in __init__
    # but is unused by forward(); omitted here.

    enc_layers = []
    for _ in range(cfg["encoder_depth"]):
        enc_layers.append({
            "ln1_g": jnp.ones((E,)), "ln1_b": jnp.zeros((E,)),
            "qkv_w": xavier((E, 3 * inner_e)),
            "out_w": xavier((inner_e, E)), "out_b": jnp.zeros((E,)),
            "ln2_g": jnp.ones((E,)), "ln2_b": jnp.zeros((E,)),
            "ff1_w": xavier((E, mlp_e)), "ff1_b": jnp.zeros((mlp_e,)),
            "ff2_w": xavier((mlp_e, E)), "ff2_b": jnp.zeros((E,)),
        })
    params["enc_layers"] = enc_layers

    dec_blocks = []
    for _ in range(cfg["decoder_depth"]):
        dec_blocks.append({
            "ln1_g": jnp.ones((D,)), "ln1_b": jnp.zeros((D,)),
            "qkv_w": xavier((D, 3 * inner_d)),
            "pos_emb": jax.random.normal(next(keys), (2 * ws - 1, 2 * ws - 1), jnp.float32),
            "out_w": xavier((inner_d, D)), "out_b": jnp.zeros((D,)),
            "ln2_g": jnp.ones((D,)), "ln2_b": jnp.zeros((D,)),
            "ff1_w": xavier((D, mlp_d)), "ff1_b": jnp.zeros((mlp_d,)),
            "ff2_w": xavier((mlp_d, D)), "ff2_b": jnp.zeros((D,)),
        })
    params["dec_blocks"] = dec_blocks
    return params


# -----------------------------------------------------------------------------
# Model pieces (glue + Pallas kernels)
# -----------------------------------------------------------------------------
def patchify_for_embed(imgs, p):
    # imgs: (B, C, H, W) -> (B, gh*gw, C*p*p)   (matches strided Conv2d patch embed)
    B, C, H, W = imgs.shape
    gh, gw = H // p, W // p
    x = imgs.reshape(B, C, gh, p, gw, p)
    x = x.transpose(0, 2, 4, 1, 3, 5)
    return x.reshape(B, gh * gw, C * p * p)


def patchify_loss_target(imgs, p, gh, gw):
    # imgs: (B, 1, H, W) -> (B, gh*gw, p*p)   (nchpwq -> nhwpqc)
    B = imgs.shape[0]
    x = imgs.reshape(B, 1, gh, p, gw, p)
    x = jnp.einsum("nchpwq->nhwpqc", x)
    return x.reshape(B, gh * gw, p * p)


def encoder_block(x, lyr, heads, dim_head):
    B, N, E = x.shape
    inner = heads * dim_head
    x2d = x.reshape(-1, E)

    # PreNorm attention: LN fused into the qkv projection (no qkv bias in reference);
    # qkv is produced directly in bf16 for the attention MXU / glue transposes.
    qkv = pallas_ln_linear(x2d, lyr["ln1_g"], lyr["ln1_b"], lyr["qkv_w"],
                           out_dtype=jnp.bfloat16)
    qkv = qkv.reshape(B, N, 3, heads, dim_head)
    q = qkv[:, :, 0].transpose(0, 2, 1, 3).reshape(B * heads, N, dim_head)
    k = qkv[:, :, 1].transpose(0, 2, 1, 3).reshape(B * heads, N, dim_head)
    v = qkv[:, :, 2].transpose(0, 2, 1, 3).reshape(B * heads, N, dim_head)
    attn = pallas_attention(q, k, v, dim_head ** -0.5)                 # bf16
    attn = attn.reshape(B, heads, N, dim_head).transpose(0, 2, 1, 3).reshape(B * N, inner)
    x2d = pallas_linear(attn, lyr["out_w"], lyr["out_b"], residual=x2d)

    # PreNorm MLP: LN fused into FF1 (+gelu, bf16 out); residual fused into FF2.
    h = pallas_ln_linear(x2d, lyr["ln2_g"], lyr["ln2_b"],
                         lyr["ff1_w"], lyr["ff1_b"], act="gelu",
                         out_dtype=jnp.bfloat16)
    x2d = pallas_linear(h, lyr["ff2_w"], lyr["ff2_b"], residual=x2d)
    return x2d.reshape(B, N, E)


def swin_block(x, p, cfg):
    # x: (B, H, W, D); shifted-window attention + MLP, both pre-norm residual.
    B, H, W, D = x.shape
    ws = cfg["window_size"]
    heads = cfg["decoder_num_heads"]
    hd = D // heads
    inner = heads * hd
    disp = ws // 2
    nwh, nww = H // ws, W // ws
    nW = nwh * nww
    Lw = ws * ws

    x2d = x.reshape(-1, D)

    # Cyclic shift first (roll commutes with per-token LayerNorm), then LN+qkv fused (bf16 out).
    xs = jnp.roll(x, (-disp, -disp), axis=(1, 2))
    qkv = pallas_ln_linear(xs.reshape(-1, D), p["ln1_g"], p["ln1_b"], p["qkv_w"],
                           out_dtype=jnp.bfloat16)
    qkv = qkv.reshape(B, H, W, 3, heads, hd)

    def to_windows(t):  # (B,H,W,heads,hd) -> (B*heads, nW, Lw, hd)
        t = t.reshape(B, nwh, ws, nww, ws, heads, hd)
        t = t.transpose(0, 5, 1, 3, 2, 4, 6)
        return t.reshape(B * heads, nW, Lw, hd)

    q = to_windows(qkv[:, :, :, 0])
    k = to_windows(qkv[:, :, :, 1])
    v = to_windows(qkv[:, :, :, 2])

    rel_idx = cfg["rel_idx"]
    rel_bias = p["pos_emb"][rel_idx[..., 0], rel_idx[..., 1]]           # (Lw, Lw)
    bias = jnp.broadcast_to(rel_bias[None], (nW, Lw, Lw))
    bias = bias.at[-nww:].add(jnp.asarray(cfg["ul_mask"]))              # last window row
    bias = bias.at[nww - 1::nww].add(jnp.asarray(cfg["lr_mask"]))       # last window col

    out = pallas_window_attention(q, k, v, bias, hd ** -0.5)            # bf16
    out = out.reshape(B, heads, nwh, nww, ws, ws, hd)
    out = out.transpose(0, 2, 4, 3, 5, 1, 6).reshape(B, H, W, inner)
    # back-shift commutes with the per-token out projection -> roll before the linear,
    # then fuse the residual into the projection.
    out = jnp.roll(out, (disp, disp), axis=(1, 2))
    x2d = pallas_linear(out.reshape(-1, inner), p["out_w"], p["out_b"], residual=x2d)

    h = pallas_ln_linear(x2d, p["ln2_g"], p["ln2_b"],
                         p["ff1_w"], p["ff1_b"], act="gelu",
                         out_dtype=jnp.bfloat16)
    x2d = pallas_linear(h, p["ff2_w"], p["ff2_b"], residual=x2d)
    return x2d.reshape(B, H, W, D)


# -----------------------------------------------------------------------------
# Full forward (encoder -> decoder -> loss)
# -----------------------------------------------------------------------------
def forward(params, cfg, imgs, mask_ratio, mask_key):
    B = imgs.shape[0]
    p = cfg["patch_size"]
    gh, gw = cfg["grid_h"], cfg["grid_w"]
    E = cfg["embed_dim"]
    D = cfg["decoder_embed_dim"]
    heads = cfg["num_heads"]
    dim_head = E // heads
    L = gh * gw

    # ---------------- encoder ----------------
    patches = patchify_for_embed(imgs, p)                       # (B, L, C*p*p)
    # bf16 cast fuses into the patchify transpose (halves DMA into the patch-embed matmul).
    x = pallas_linear(patches.reshape(-1, patches.shape[-1]).astype(jnp.bfloat16),
                      params["patch_w"], params["patch_b"]).reshape(B, L, E)
    x = x + params["pos_embed"][:, 1:, :]

    # random masking (argsort of uniform noise) -- plain JAX glue
    len_keep = int(L * (1 - mask_ratio))
    noise = jax.random.uniform(mask_key, (B, L))
    ids_shuffle = jnp.argsort(noise, axis=1)
    ids_restore = jnp.argsort(ids_shuffle, axis=1)
    ids_keep = ids_shuffle[:, :len_keep]
    x_masked = jnp.take_along_axis(x, ids_keep[:, :, None], axis=1)
    mask = jnp.where(jnp.arange(L)[None, :] < len_keep, 0.0, 1.0)
    mask = jnp.broadcast_to(mask, (B, L))
    mask = jnp.take_along_axis(mask, ids_restore, axis=1)

    cls_tok = params["cls_token"] + params["pos_embed"][:, :1, :]
    x = jnp.concatenate([jnp.broadcast_to(cls_tok, (B, 1, E)), x_masked], axis=1)

    for lyr in params["enc_layers"]:
        x = encoder_block(x, lyr, heads, dim_head)

    # ---------------- decoder ----------------
    # final encoder LayerNorm is per-token, so slicing off cls first and fusing the
    # LN into decoder_embed is numerically identical to norm-then-slice.
    xd = pallas_ln_linear(x[:, 1:, :].reshape(-1, E),
                          params["norm_g"], params["norm_b"],
                          params["dec_embed_w"], params["dec_embed_b"]
                          ).reshape(B, len_keep, D)
    mask_tokens = jnp.broadcast_to(params["mask_token"], (B, L - len_keep, D))
    x_ = jnp.concatenate([xd, mask_tokens], axis=1)
    xd = jnp.take_along_axis(x_, ids_restore[:, :, None], axis=1)
    xd = xd + params["decoder_pos_embed"]
    xd = xd.reshape(B, gh, gw, D)
    for blk in params["dec_blocks"]:
        xd = swin_block(xd, blk, cfg)
    xd2d = xd.reshape(B * gh * gw, D)
    # decoder_norm fused into decoder_pred
    pred = pallas_ln_linear(xd2d, params["dec_norm_g"], params["dec_norm_b"],
                            params["dec_pred_w"], params["dec_pred_b"]).reshape(B, L, -1)

    # ---------------- loss ----------------
    target = patchify_loss_target(imgs, p, gh, gw)
    loss = pallas_loss(pred, target, mask)
    return loss, pred, mask


# -----------------------------------------------------------------------------
# Main
# -----------------------------------------------------------------------------
if __name__ == "__main__":
    # Small, shape-consistent configuration
    cfg = dict(
        num_mels=32, mel_len=32, patch_size=8, in_chans=1,
        embed_dim=32, encoder_depth=2, num_heads=4,
        decoder_embed_dim=32, decoder_depth=2, decoder_num_heads=4,
        mlp_ratio=4.0, window_size=2,
    )
    cfg["grid_h"] = cfg["mel_len"] // cfg["patch_size"]    # 4
    cfg["grid_w"] = cfg["num_mels"] // cfg["patch_size"]   # 4
    ws = cfg["window_size"]
    disp = ws // 2
    cfg["rel_idx"] = get_relative_indices(ws)
    cfg["ul_mask"] = create_mask(ws, disp, upper_lower=True, left_right=False)
    cfg["lr_mask"] = create_mask(ws, disp, upper_lower=False, left_right=True)

    key = jax.random.PRNGKey(0)
    pkey, dkey, mkey = jax.random.split(key, 3)
    params = init_params(pkey, cfg)

    B = 2
    imgs = jax.random.normal(dkey, (B, cfg["in_chans"], cfg["mel_len"], cfg["num_mels"]),
                             jnp.float32)  # NCHW, like PyTorch

    fwd = jax.jit(lambda prm, im, k: forward(prm, cfg, im, 0.8, k))
    loss, pred, mask = fwd(params, imgs, mkey)
    jax.block_until_ready((loss, pred, mask))

    L = cfg["grid_h"] * cfg["grid_w"]
    P = cfg["patch_size"] ** 2 * cfg["in_chans"]
    assert pred.shape == (B, L, P), pred.shape
    assert mask.shape == (B, L), mask.shape
    assert loss.shape == (), loss.shape
    assert bool(jnp.isfinite(loss)), "loss is not finite"
    print("KERNEL_OK")
</pallas_src>

<mosaic_0001>
module attributes {stable_mosaic.version = 11 : i64} {
  func.func @_linear_kernel(%arg0: i32, %arg1: i32, %arg2: i32, %arg3: memref<32x64xbf16, #tpu.memory_space<vmem>>, %arg4: memref<64x32xbf16, #tpu.memory_space<vmem>>, %arg5: memref<1x32xf32, #tpu.memory_space<vmem>>, %arg6: memref<32x32xf32, #tpu.memory_space<vmem>>) attributes {dimension_semantics = [#tpu.dimension_semantics<parallel>, #tpu.dimension_semantics<parallel>, #tpu.dimension_semantics<arbitrary>], iteration_bounds = array<i64: 1, 1, 1>, scalar_prefetch = 0 : i64, scratch_operands = 0 : i64, tpu.core_type = #tpu.core_type<tc>, window_params = [{transform_indices = @transform_0, window_bounds = array<i64: 32, 64>}, {transform_indices = @transform_1, window_bounds = array<i64: 64, 32>}, {transform_indices = @transform_2, window_bounds = array<i64: 1, 32>}, {transform_indices = @transform_3, window_bounds = array<i64: 32, 32>}]} {
    %c0_i32 = arith.constant 0 : i32
    %0 = arith.cmpi eq, %arg2, %c0_i32 : i32
    %1 = arith.extui %0 : i1 to i32
    %c0_i32_0 = arith.constant 0 : i32
    %2 = arith.cmpi ne, %1, %c0_i32_0 : i32
    scf.if %2 {
      %cst_10 = arith.constant 0.000000e+00 : f32
      %12 = vector.broadcast %cst_10 : f32 to vector<32x32xf32>
      %c0_11 = arith.constant 0 : index
      %c0_12 = arith.constant 0 : index
      %13 = vector.load %arg6[%c0_11, %c0_12] : memref<32x32xf32, #tpu.memory_space<vmem>>, vector<32x32xf32>
      tpu.vector_store %arg6[%c0_11, %c0_12], %12 {strides = array<i32>} : memref<32x32xf32, #tpu.memory_space<vmem>>, vector<32x32xf32>,
    } else {
    }
    %c0 = arith.constant 0 : index
    %c0_1 = arith.constant 0 : index
    %3 = vector.load %arg6[%c0, %c0_1] : memref<32x32xf32, #tpu.memory_space<vmem>>, vector<32x32xf32>
    %c0_2 = arith.constant 0 : index
    %c0_3 = arith.constant 0 : index
    %4 = vector.load %arg3[%c0_2, %c0_3] : memref<32x64xbf16, #tpu.memory_space<vmem>>, vector<32x64xbf16>
    %c0_4 = arith.constant 0 : index
    %c0_5 = arith.constant 0 : index
    %5 = vector.load %arg4[%c0_4, %c0_5] : memref<64x32xbf16, #tpu.memory_space<vmem>>, vector<64x32xbf16>
    %cst = arith.constant dense<0.000000e+00> : vector<32x32xf32>
    %6 = tpu.matmul %4, %5, %cst {dimension_numbers = #tpu.dot_dimension_numbers<[1], [0], [0], [1], [0, 0, 1, 1], [], []>} : vector<32x64xbf16>, vector<64x32xbf16>, vector<32x32xf32> -> vector<32x32xf32>
    %7 = arith.addf %3, %6 : vector<32x32xf32>
    %c0_6 = arith.constant 0 : index
    %c0_7 = arith.constant 0 : index
    %8 = vector.load %arg6[%c0_6, %c0_7] : memref<32x32xf32, #tpu.memory_space<vmem>>, vector<32x32xf32>
    tpu.vector_store %arg6[%c0_6, %c0_7], %7 {strides = array<i32>} : memref<32x32xf32, #tpu.memory_space<vmem>>, vector<32x32xf32>,
    %c0_i32_8 = arith.constant 0 : i32
    %9 = arith.cmpi eq, %arg2, %c0_i32_8 : i32
    %10 = arith.extui %9 : i1 to i32
    %c0_i32_9 = arith.constant 0 : i32
    %11 = arith.cmpi ne, %10, %c0_i32_9 : i32
    scf.if %11 {
      %c0_10 = arith.constant 0 : index
      %c0_11 = arith.constant 0 : index
      %12 = vector.load %arg6[%c0_10, %c0_11] : memref<32x32xf32, #tpu.memory_space<vmem>>, vector<32x32xf32>
      %c0_12 = arith.constant 0 : index
      %c0_13 = arith.constant 0 : index
      %13 = vector.load %arg5[%c0_12, %c0_13] : memref<1x32xf32, #tpu.memory_space<vmem>>, vector<1x32xf32>
      %14 = vector.broadcast %13 : vector<1x32xf32> to vector<32x32xf32>
      %15 = arith.addf %12, %14 : vector<32x32xf32>
      %c0_14 = arith.constant 0 : index
      %c0_15 = arith.constant 0 : index
      %16 = vector.load %arg6[%c0_14, %c0_15] : memref<32x32xf32, #tpu.memory_space<vmem>>, vector<32x32xf32>
      tpu.vector_store %arg6[%c0_14, %c0_15], %15 {strides = array<i32>} : memref<32x32xf32, #tpu.memory_space<vmem>>, vector<32x32xf32>,
    } else {
    }
    return
  }
  func.func @transform_0(%arg0: i32, %arg1: i32, %arg2: i32) -> (i32, i32) {
    %c0_i32 = arith.constant 0 : i32
    return %arg0, %arg2 : i32, i32
  }
  func.func @transform_1(%arg0: i32, %arg1: i32, %arg2: i32) -> (i32, i32) {
    %c0_i32 = arith.constant 0 : i32
    return %arg2, %arg1 : i32, i32
  }
  func.func @transform_2(%arg0: i32, %arg1: i32, %arg2: i32) -> (i32, i32) {
    %c0_i32 = arith.constant 0 : i32
    %c0_i32_0 = arith.constant 0 : i32
    return %c0_i32, %arg1 : i32, i32
  }
  func.func @transform_3(%arg0: i32, %arg1: i32, %arg2: i32) -> (i32, i32) {
    %c0_i32 = arith.constant 0 : i32
    return %arg0, %arg1 : i32, i32
  }
}

module attributes {stable_mosaic.version = 11 : i64} {
  func.func @_ln_linear_kernel(%arg0: i32, %arg1: i32, %arg2: memref<8x32xf32, #tpu.memory_space<vmem>>, %arg3: memref<1x32xf32, #tpu.memory_space<vmem>>, %arg4: memref<1x32xf32, #tpu.memory_space<vmem>>, %arg5: memref<32x96xbf16, #tpu.memory_space<vmem>>, %arg6: memref<8x96xbf16, #tpu.memory_space<vmem>>, %arg7: memref<8x32xbf16, #tpu.memory_space<vmem>>) attributes {dimension_semantics = [#tpu.dimension_semantics<parallel>, #tpu.dimension_semantics<arbitrary>], iteration_bounds = array<i64: 1, 1>, scalar_prefetch = 0 : i64, scratch_operands = 1 : i64, tpu.core_type = #tpu.core_type<tc>, window_params = [{transform_indices = @transform_0, window_bounds = array<i64: 8, 32>}, {pipeline_mode = #tpu.pipeline_mode<synchronous>, transform_indices = @transform_1, window_bounds = array<i64: 1, 32>}, {pipeline_mode = #tpu.pipeline_mode<synchronous>, transform_indices = @transform_2, window_bounds = array<i64: 1, 32>}, {transform_indices = @transform_3, window_bounds = array<i64: 32, 96>}, {transform_indices = @transform_4, window_bounds = array<i64: 8, 96>}]} {
    %c0_i32 = arith.constant 0 : i32
    %0 = arith.cmpi eq, %arg1, %c0_i32 : i32
    %1 = arith.extui %0 : i1 to i32
    %c0_i32_0 = arith.constant 0 : i32
    %2 = arith.cmpi ne, %1, %c0_i32_0 : i32
    scf.if %2 {
      %c0_6 = arith.constant 0 : index
      %c0_7 = arith.constant 0 : index
      %8 = vector.load %arg2[%c0_6, %c0_7] : memref<8x32xf32, #tpu.memory_space<vmem>>, vector<8x32xf32>
      %cst_8 = arith.constant dense<0.000000e+00> : vector<8xf32>
      %9 = vector.multi_reduction <add>, %8, %cst_8 [1] : vector<8x32xf32> to vector<8xf32>
      %10 = vector.shape_cast %9 : vector<8xf32> to vector<8x1xf32>
      %cst_9 = arith.constant 3.200000e+01 : f32
      %11 = vector.broadcast %cst_9 : f32 to vector<8x1xf32>
      %12 = arith.divf %10, %11 : vector<8x1xf32>
      %13 = vector.broadcast %12 : vector<8x1xf32> to vector<8x32xf32>
      %14 = arith.subf %8, %13 : vector<8x32xf32>
      %15 = arith.mulf %14, %14 : vector<8x32xf32>
      %cst_10 = arith.constant dense<0.000000e+00> : vector<8xf32>
      %16 = vector.multi_reduction <add>, %15, %cst_10 [1] : vector<8x32xf32> to vector<8xf32>
      %17 = vector.shape_cast %16 : vector<8xf32> to vector<8x1xf32>
      %cst_11 = arith.constant 3.200000e+01 : f32
      %18 = vector.broadcast %cst_11 : f32 to vector<8x1xf32>
      %19 = arith.divf %17, %18 : vector<8x1xf32>
      %20 = vector.broadcast %12 : vector<8x1xf32> to vector<8x32xf32>
      %21 = arith.subf %8, %20 : vector<8x32xf32>
      %cst_12 = arith.constant 9.99999974E-6 : f32
      %22 = vector.broadcast %cst_12 : f32 to vector<8x1xf32>
      %23 = arith.addf %19, %22 : vector<8x1xf32>
      %24 = math.rsqrt %23 : vector<8x1xf32>
      %25 = vector.broadcast %24 : vector<8x1xf32> to vector<8x32xf32>
      %26 = arith.mulf %21, %25 : vector<8x32xf32>
      %c0_13 = arith.constant 0 : index
      %c0_14 = arith.constant 0 : index
      %27 = vector.load %arg3[%c0_13, %c0_14] : memref<1x32xf32, #tpu.memory_space<vmem>>, vector<1x32xf32>
      %28 = vector.broadcast %27 : vector<1x32xf32> to vector<8x32xf32>
      %29 = arith.mulf %26, %28 : vector<8x32xf32>
      %c0_15 = arith.constant 0 : index
      %c0_16 = arith.constant 0 : index
      %30 = vector.load %arg4[%c0_15, %c0_16] : memref<1x32xf32, #tpu.memory_space<vmem>>, vector<1x32xf32>
      %31 = vector.broadcast %30 : vector<1x32xf32> to vector<8x32xf32>
      %32 = arith.addf %29, %31 : vector<8x32xf32>
      %33 = arith.truncf %32 : vector<8x32xf32> to vector<8x32xbf16>
      %c0_17 = arith.constant 0 : index
      %c0_18 = arith.constant 0 : index
      %34 = vector.load %arg7[%c0_17, %c0_18] : memref<8x32xbf16, #tpu.memory_space<vmem>>, vector<8x32xbf16>
      tpu.vector_store %arg7[%c0_17, %c0_18], %33 {strides = array<i32>} : memref<8x32xbf16, #tpu.memory_space<vmem>>, vector<8x32xbf16>,
    } else {
    }
    %c0 = arith.constant 0 : index
    %c0_1 = arith.constant 0 : index
    %3 = vector.load %arg7[%c0, %c0_1] : memref<8x32xbf16, #tpu.memory_space<vmem>>, vector<8x32xbf16>
    %c0_2 = arith.constant 0 : index
    %c0_3 = arith.constant 0 : index
    %4 = vector.load %arg5[%c0_2, %c0_3] : memref<32x96xbf16, #tpu.memory_space<vmem>>, vector<32x96xbf16>
    %cst = arith.constant dense<0.000000e+00> : vector<8x96xf32>
    %5 = tpu.matmul %3, %4, %cst {dimension_numbers = #tpu.dot_dimension_numbers<[1], [0], [0], [1], [0, 0, 1, 1], [], []>} : vector<8x32xbf16>, vector<32x96xbf16>, vector<8x96xf32> -> vector<8x96xf32>
    %6 = arith.truncf %5 : vector<8x96xf32> to vector<8x96xbf16>
    %c0_4 = arith.constant 0 : index
    %c0_5 = arith.constant 0 : index
    %7 = vector.load %arg6[%c0_4, %c0_5] : memref<8x96xbf16, #tpu.memory_space<vmem>>, vector<8x96xbf16>
    tpu.vector_store %arg6[%c0_4, %c0_5], %6 {strides = array<i32>} : memref<8x96xbf16, #tpu.memory_space<vmem>>, vector<8x96xbf16>,
    return
  }
  func.func @transform_0(%arg0: i32, %arg1: i32) -> (i32, i32) {
    %c0_i32 = arith.constant 0 : i32
    %c0_i32_0 = arith.constant 0 : i32
    return %arg0, %c0_i32 : i32, i32
  }
  func.func @transform_1(%arg0: i32, %arg1: i32) -> (i32, i32) {
    %c0_i32 = arith.constant 0 : i32
    %c0_i32_0 = arith.constant 0 : i32
    %c0_i32_1 = arith.constant 0 : i32
    return %c0_i32, %c0_i32_0 : i32, i32
  }
  func.func @transform_2(%arg0: i32, %arg1: i32) -> (i32, i32) {
    %c0_i32 = arith.constant 0 : i32
    %c0_i32_0 = arith.constant 0 : i32
    %c0_i32_1 = arith.constant 0 : i32
    return %c0_i32, %c0_i32_0 : i32, i32
  }
  func.func @transform_3(%arg0: i32, %arg1: i32) -> (i32, i32) {
    %c0_i32 = arith.constant 0 : i32
    %c0_i32_0 = arith.constant 0 : i32
    return %c0_i32, %arg1 : i32, i32
  }
  func.func @transform_4(%arg0: i32, %arg1: i32) -> (i32, i32) {
    %c0_i32 = arith.constant 0 : i32
    return %arg0, %arg1 : i32, i32
  }
}

module attributes {stable_mosaic.version = 11 : i64} {
  func.func @_attn_kernel(%arg0: i32, %arg1: memref<8x4x8xbf16, #tpu.memory_space<vmem>>, %arg2: memref<8x4x8xbf16, #tpu.memory_space<vmem>>, %arg3: memref<8x4x8xbf16, #tpu.memory_space<vmem>>, %arg4: memref<8x4x8xbf16, #tpu.memory_space<vmem>>) attributes {dimension_semantics = [#tpu.dimension_semantics<parallel>], iteration_bounds = array<i64: 1>, scalar_prefetch = 0 : i64, scratch_operands = 0 : i64, tpu.core_type = #tpu.core_type<tc>, window_params = [{transform_indices = @transform_0, window_bounds = array<i64: 8, 4, 8>}, {transform_indices = @transform_1, window_bounds = array<i64: 8, 4, 8>}, {transform_indices = @transform_2, window_bounds = array<i64: 8, 4, 8>}, {transform_indices = @transform_3, window_bounds = array<i64: 8, 4, 8>}]} {
    %c0 = arith.constant 0 : index
    %c0_0 = arith.constant 0 : index
    %c0_1 = arith.constant 0 : index
    %0 = vector.load %arg1[%c0, %c0_0, %c0_1] : memref<8x4x8xbf16, #tpu.memory_space<vmem>>, vector<8x4x8xbf16>
    %c0_2 = arith.constant 0 : index
    %c0_3 = arith.constant 0 : index
    %c0_4 = arith.constant 0 : index
    %1 = vector.load %arg2[%c0_2, %c0_3, %c0_4] : memref<8x4x8xbf16, #tpu.memory_space<vmem>>, vector<8x4x8xbf16>
    "tpu.trace_start"() <{level = 10 : i32, message = "bqd,bkd->bqk"}> : () -> ()
    %cst = arith.constant dense<0.000000e+00> : vector<8x4x4xf32>
    %2 = tpu.matmul %0, %1, %cst {dimension_numbers = #tpu.dot_dimension_numbers<[2], [2], [1], [1], [0, 0, 0, 1, 1, 1], [0], [0]>} : vector<8x4x8xbf16>, vector<8x4x8xbf16>, vector<8x4x4xf32> -> vector<8x4x4xf32>
    "tpu.trace_stop"() : () -> ()
    %cst_5 = arith.constant 0.353553385 : f32
    %3 = vector.broadcast %cst_5 : f32 to vector<8x4x4xf32>
    %4 = arith.mulf %2, %3 : vector<8x4x4xf32>
    %cst_6 = arith.constant dense<0xFF800000> : vector<8x4xf32>
    %5 = vector.multi_reduction <maximumf>, %4, %cst_6 [2] : vector<8x4x4xf32> to vector<8x4xf32>
    %6 = vector.shape_cast %5 : vector<8x4xf32> to vector<8x4x1xf32>
    %7 = vector.broadcast %6 : vector<8x4x1xf32> to vector<8x4x4xf32>
    %8 = arith.subf %4, %7 : vector<8x4x4xf32>
    %9 = math.exp %8 : vector<8x4x4xf32>
    %cst_7 = arith.constant dense<0.000000e+00> : vector<8x4xf32>
    %10 = vector.multi_reduction <add>, %9, %cst_7 [2] : vector<8x4x4xf32> to vector<8x4xf32>
    %11 = vector.shape_cast %10 : vector<8x4xf32> to vector<8x4x1xf32>
    %12 = tpu.reciprocal %11 {approx = true} : vector<8x4x1xf32> -> vector<8x4x1xf32>
    %13 = vector.broadcast %12 : vector<8x4x1xf32> to vector<8x4x4xf32>
    %14 = arith.mulf %9, %13 : vector<8x4x4xf32>
    %15 = arith.truncf %14 : vector<8x4x4xf32> to vector<8x4x4xbf16>
    %c0_8 = arith.constant 0 : index
    %c0_9 = arith.constant 0 : index
    %c0_10 = arith.constant 0 : index
    %16 = vector.load %arg3[%c0_8, %c0_9, %c0_10] : memref<8x4x8xbf16, #tpu.memory_space<vmem>>, vector<8x4x8xbf16>
    "tpu.trace_start"() <{level = 10 : i32, message = "bqk,bkd->bqd"}> : () -> ()
    %cst_11 = arith.constant dense<0.000000e+00> : vector<8x4x8xf32>
    %17 = tpu.matmul %15, %16, %cst_11 {dimension_numbers = #tpu.dot_dimension_numbers<[2], [1], [1], [2], [0, 0, 0, 1, 1, 2], [0], [0]>} : vector<8x4x4xbf16>, vector<8x4x8xbf16>, vector<8x4x8xf32> -> vector<8x4x8xf32>
    "tpu.trace_stop"() : () -> ()
    %18 = arith.truncf %17 : vector<8x4x8xf32> to vector<8x4x8xbf16>
    %c0_12 = arith.constant 0 : index
    %c0_13 = arith.constant 0 : index
    %c0_14 = arith.constant 0 : index
    %19 = vector.load %arg4[%c0_12, %c0_13, %c0_14] : memref<8x4x8xbf16, #tpu.memory_space<vmem>>, vector<8x4x8xbf16>
    tpu.vector_store %arg4[%c0_12, %c0_13, %c0_14], %18 {strides = array<i32>} : memref<8x4x8xbf16, #tpu.memory_space<vmem>>, vector<8x4x8xbf16>,
    return
  }
  func.func @transform_0(%arg0: i32) -> (i32, i32, i32) {
    %c0_i32 = arith.constant 0 : i32
    %c0_i32_0 = arith.constant 0 : i32
    %c0_i32_1 = arith.constant 0 : i32
    return %arg0, %c0_i32, %c0_i32_0 : i32, i32, i32
  }
  func.func @transform_1(%arg0: i32) -> (i32, i32, i32) {
    %c0_i32 = arith.constant 0 : i32
    %c0_i32_0 = arith.constant 0 : i32
    %c0_i32_1 = arith.constant 0 : i32
    return %arg0, %c0_i32, %c0_i32_0 : i32, i32, i32
  }
  func.func @transform_2(%arg0: i32) -> (i32, i32, i32) {
    %c0_i32 = arith.constant 0 : i32
    %c0_i32_0 = arith.constant 0 : i32
    %c0_i32_1 = arith.constant 0 : i32
    return %arg0, %c0_i32, %c0_i32_0 : i32, i32, i32
  }
  func.func @transform_3(%arg0: i32) -> (i32, i32, i32) {
    %c0_i32 = arith.constant 0 : i32
    %c0_i32_0 = arith.constant 0 : i32
    %c0_i32_1 = arith.constant 0 : i32
    return %arg0, %c0_i32, %c0_i32_0 : i32, i32, i32
  }
}

module attributes {stable_mosaic.version = 11 : i64} {
  func.func @_ln_linear_kernel(%arg0: i32, %arg1: i32, %arg2: memref<8x32xf32, #tpu.memory_space<vmem>>, %arg3: memref<1x32xf32, #tpu.memory_space<vmem>>, %arg4: memref<1x32xf32, #tpu.memory_space<vmem>>, %arg5: memref<32x128xbf16, #tpu.memory_space<vmem>>, %arg6: memref<1x128xf32, #tpu.memory_space<vmem>>, %arg7: memref<8x128xbf16, #tpu.memory_space<vmem>>, %arg8: memref<8x32xbf16, #tpu.memory_space<vmem>>) attributes {dimension_semantics = [#tpu.dimension_semantics<parallel>, #tpu.dimension_semantics<arbitrary>], iteration_bounds = array<i64: 1, 1>, scalar_prefetch = 0 : i64, scratch_operands = 1 : i64, tpu.core_type = #tpu.core_type<tc>, window_params = [{transform_indices = @transform_0, window_bounds = array<i64: 8, 32>}, {pipeline_mode = #tpu.pipeline_mode<synchronous>, transform_indices = @transform_1, window_bounds = array<i64: 1, 32>}, {pipeline_mode = #tpu.pipeline_mode<synchronous>, transform_indices = @transform_2, window_bounds = array<i64: 1, 32>}, {transform_indices = @transform_3, window_bounds = array<i64: 32, 128>}, {transform_indices = @transform_4, window_bounds = array<i64: 1, 128>}, {transform_indices = @transform_5, window_bounds = array<i64: 8, 128>}]} {
    %c0_i32 = arith.constant 0 : i32
    %0 = arith.cmpi eq, %arg1, %c0_i32 : i32
    %1 = arith.extui %0 : i1 to i32
    %c0_i32_0 = arith.constant 0 : i32
    %2 = arith.cmpi ne, %1, %c0_i32_0 : i32
    scf.if %2 {
      %c0_12 = arith.constant 0 : index
      %c0_13 = arith.constant 0 : index
      %24 = vector.load %arg2[%c0_12, %c0_13] : memref<8x32xf32, #tpu.memory_space<vmem>>, vector<8x32xf32>
      %cst_14 = arith.constant dense<0.000000e+00> : vector<8xf32>
      %25 = vector.multi_reduction <add>, %24, %cst_14 [1] : vector<8x32xf32> to vector<8xf32>
      %26 = vector.shape_cast %25 : vector<8xf32> to vector<8x1xf32>
      %cst_15 = arith.constant 3.200000e+01 : f32
      %27 = vector.broadcast %cst_15 : f32 to vector<8x1xf32>
      %28 = arith.divf %26, %27 : vector<8x1xf32>
      %29 = vector.broadcast %28 : vector<8x1xf32> to vector<8x32xf32>
      %30 = arith.subf %24, %29 : vector<8x32xf32>
      %31 = arith.mulf %30, %30 : vector<8x32xf32>
      %cst_16 = arith.constant dense<0.000000e+00> : vector<8xf32>
      %32 = vector.multi_reduction <add>, %31, %cst_16 [1] : vector<8x32xf32> to vector<8xf32>
      %33 = vector.shape_cast %32 : vector<8xf32> to vector<8x1xf32>
      %cst_17 = arith.constant 3.200000e+01 : f32
      %34 = vector.broadcast %cst_17 : f32 to vector<8x1xf32>
      %35 = arith.divf %33, %34 : vector<8x1xf32>
      %36 = vector.broadcast %28 : vector<8x1xf32> to vector<8x32xf32>
      %37 = arith.subf %24, %36 : vector<8x32xf32>
      %cst_18 = arith.constant 9.99999974E-6 : f32
      %38 = vector.broadcast %cst_18 : f32 to vector<8x1xf32>
      %39 = arith.addf %35, %38 : vector<8x1xf32>
      %40 = math.rsqrt %39 : vector<8x1xf32>
      %41 = vector.broadcast %40 : vector<8x1xf32> to vector<8x32xf32>
      %42 = arith.mulf %37, %41 : vector<8x32xf32>
      %c0_19 = arith.constant 0 : index
      %c0_20 = arith.constant 0 : index
      %43 = vector.load %arg3[%c0_19, %c0_20] : memref<1x32xf32, #tpu.memory_space<vmem>>, vector<1x32xf32>
      %44 = vector.broadcast %43 : vector<1x32xf32> to vector<8x32xf32>
      %45 = arith.mulf %42, %44 : vector<8x32xf32>
      %c0_21 = arith.constant 0 : index
      %c0_22 = arith.constant 0 : index
      %46 = vector.load %arg4[%c0_21, %c0_22] : memref<1x32xf32, #tpu.memory_space<vmem>>, vector<1x32xf32>
      %47 = vector.broadcast %46 : vector<1x32xf32> to vector<8x32xf32>
      %48 = arith.addf %45, %47 : vector<8x32xf32>
      %49 = arith.truncf %48 : vector<8x32xf32> to vector<8x32xbf16>
      %c0_23 = arith.constant 0 : index
      %c0_24 = arith.constant 0 : index
      %50 = vector.load %arg8[%c0_23, %c0_24] : memref<8x32xbf16, #tpu.memory_space<vmem>>, vector<8x32xbf16>
      tpu.vector_store %arg8[%c0_23, %c0_24], %49 {strides = array<i32>} : memref<8x32xbf16, #tpu.memory_space<vmem>>, vector<8x32xbf16>,
    } else {
    }
    %c0 = arith.constant 0 : index
    %c0_1 = arith.constant 0 : index
    %3 = vector.load %arg8[%c0, %c0_1] : memref<8x32xbf16, #tpu.memory_space<vmem>>, vector<8x32xbf16>
    %c0_2 = arith.constant 0 : index
    %c0_3 = arith.constant 0 : index
    %4 = vector.load %arg5[%c0_2, %c0_3] : memref<32x128xbf16, #tpu.memory_space<vmem>>, vector<32x128xbf16>
    %cst = arith.constant dense<0.000000e+00> : vector<8x128xf32>
    %5 = tpu.matmul %3, %4, %cst {dimension_numbers = #tpu.dot_dimension_numbers<[1], [0], [0], [1], [0, 0, 1, 1], [], []>} : vector<8x32xbf16>, vector<32x128xbf16>, vector<8x128xf32> -> vector<8x128xf32>
    %c0_4 = arith.constant 0 : index
    %c0_5 = arith.constant 0 : index
    %6 = vector.load %arg6[%c0_4, %c0_5] : memref<1x128xf32, #tpu.memory_space<vmem>>, vector<1x128xf32>
    %7 = vector.broadcast %6 : vector<1x128xf32> to vector<8x128xf32>
    %8 = arith.addf %5, %7 : vector<8x128xf32>
    %9 = arith.mulf %8, %8 : vector<8x128xf32>
    %10 = arith.mulf %8, %9 : vector<8x128xf32>
    %cst_6 = arith.constant 4.471500e-02 : f32
    %11 = vector.broadcast %cst_6 : f32 to vector<8x128xf32>
    %12 = arith.mulf %11, %10 : vector<8x128xf32>
    %13 = arith.addf %8, %12 : vector<8x128xf32>
    %cst_7 = arith.constant 0.797884583 : f32
    %14 = vector.broadcast %cst_7 : f32 to vector<8x128xf32>
    %15 = arith.mulf %14, %13 : vector<8x128xf32>
    %16 = math.tanh %15 : vector<8x128xf32>
    %cst_8 = arith.constant 1.000000e+00 : f32
    %17 = vector.broadcast %cst_8 : f32 to vector<8x128xf32>
    %18 = arith.addf %17, %16 : vector<8x128xf32>
    %cst_9 = arith.constant 5.000000e-01 : f32
    %19 = vector.broadcast %cst_9 : f32 to vector<8x128xf32>
    %20 = arith.mulf %19, %18 : vector<8x128xf32>
    %21 = arith.mulf %8, %20 : vector<8x128xf32>
    %22 = arith.truncf %21 : vector<8x128xf32> to vector<8x128xbf16>
    %c0_10 = arith.constant 0 : index
    %c0_11 = arith.constant 0 : index
    %23 = vector.load %arg7[%c0_10, %c0_11] : memref<8x128xbf16, #tpu.memory_space<vmem>>, vector<8x128xbf16>
    tpu.vector_store %arg7[%c0_10, %c0_11], %22 {strides = array<i32>} : memref<8x128xbf16, #tpu.memory_space<vmem>>, vector<8x128xbf16>,
    return
  }
  func.func @transform_0(%arg0: i32, %arg1: i32) -> (i32, i32) {
    %c0_i32 = arith.constant 0 : i32
    %c0_i32_0 = arith.constant 0 : i32
    return %arg0, %c0_i32 : i32, i32
  }
  func.func @transform_1(%arg0: i32, %arg1: i32) -> (i32, i32) {
    %c0_i32 = arith.constant 0 : i32
    %c0_i32_0 = arith.constant 0 : i32
    %c0_i32_1 = arith.constant 0 : i32
    return %c0_i32, %c0_i32_0 : i32, i32
  }
  func.func @transform_2(%arg0: i32, %arg1: i32) -> (i32, i32) {
    %c0_i32 = arith.constant 0 : i32
    %c0_i32_0 = arith.constant 0 : i32
    %c0_i32_1 = arith.constant 0 : i32
    return %c0_i32, %c0_i32_0 : i32, i32
  }
  func.func @transform_3(%arg0: i32, %arg1: i32) -> (i32, i32) {
    %c0_i32 = arith.constant 0 : i32
    %c0_i32_0 = arith.constant 0 : i32
    return %c0_i32, %arg1 : i32, i32
  }
  func.func @transform_4(%arg0: i32, %arg1: i32) -> (i32, i32) {
    %c0_i32 = arith.constant 0 : i32
    %c0_i32_0 = arith.constant 0 : i32
    return %c0_i32, %arg1 : i32, i32
  }
  func.func @transform_5(%arg0: i32, %arg1: i32) -> (i32, i32) {
    %c0_i32 = arith.constant 0 : i32
    return %arg0, %arg1 : i32, i32
  }
}

module attributes {stable_mosaic.version = 11 : i64} {
  func.func @_linear_kernel(%arg0: i32, %arg1: i32, %arg2: i32, %arg3: memref<8x32xbf16, #tpu.memory_space<vmem>>, %arg4: memref<32x32xbf16, #tpu.memory_space<vmem>>, %arg5: memref<1x32xf32, #tpu.memory_space<vmem>>, %arg6: memref<8x32xf32, #tpu.memory_space<vmem>>, %arg7: memref<8x32xf32, #tpu.memory_space<vmem>>) attributes {dimension_semantics = [#tpu.dimension_semantics<parallel>, #tpu.dimension_semantics<parallel>, #tpu.dimension_semantics<arbitrary>], iteration_bounds = array<i64: 1, 1, 1>, scalar_prefetch = 0 : i64, scratch_operands = 0 : i64, tpu.core_type = #tpu.core_type<tc>, window_params = [{transform_indices = @transform_0, window_bounds = array<i64: 8, 32>}, {transform_indices = @transform_1, window_bounds = array<i64: 32, 32>}, {transform_indices = @transform_2, window_bounds = array<i64: 1, 32>}, {transform_indices = @transform_3, window_bounds = array<i64: 8, 32>}, {transform_indices = @transform_4, window_bounds = array<i64: 8, 32>}]} {
    %c0_i32 = arith.constant 0 : i32
    %0 = arith.cmpi eq, %arg2, %c0_i32 : i32
    %1 = arith.extui %0 : i1 to i32
    %c0_i32_0 = arith.constant 0 : i32
    %2 = arith.cmpi ne, %1, %c0_i32_0 : i32
    scf.if %2 {
      %cst_10 = arith.constant 0.000000e+00 : f32
      %12 = vector.broadcast %cst_10 : f32 to vector<8x32xf32>
      %c0_11 = arith.constant 0 : index
      %c0_12 = arith.constant 0 : index
      %13 = vector.load %arg7[%c0_11, %c0_12] : memref<8x32xf32, #tpu.memory_space<vmem>>, vector<8x32xf32>
      tpu.vector_store %arg7[%c0_11, %c0_12], %12 {strides = array<i32>} : memref<8x32xf32, #tpu.memory_space<vmem>>, vector<8x32xf32>,
    } else {
    }
    %c0 = arith.constant 0 : index
    %c0_1 = arith.constant 0 : index
    %3 = vector.load %arg7[%c0, %c0_1] : memref<8x32xf32, #tpu.memory_space<vmem>>, vector<8x32xf32>
    %c0_2 = arith.constant 0 : index
    %c0_3 = arith.constant 0 : index
    %4 = vector.load %arg3[%c0_2, %c0_3] : memref<8x32xbf16, #tpu.memory_space<vmem>>, vector<8x32xbf16>
    %c0_4 = arith.constant 0 : index
    %c0_5 = arith.constant 0 : index
    %5 = vector.load %arg4[%c0_4, %c0_5] : memref<32x32xbf16, #tpu.memory_space<vmem>>, vector<32x32xbf16>
    %cst = arith.constant dense<0.000000e+00> : vector<8x32xf32>
    %6 = tpu.matmul %4, %5, %cst {dimension_numbers = #tpu.dot_dimension_numbers<[1], [0], [0], [1], [0, 0, 1, 1], [], []>} : vector<8x32xbf16>, vector<32x32xbf16>, vector<8x32xf32> -> vector<8x32xf32>
    %7 = arith.addf %3, %6 : vector<8x32xf32>
    %c0_6 = arith.constant 0 : index
    %c0_7 = arith.constant 0 : index
    %8 = vector.load %arg7[%c0_6, %c0_7] : memref<8x32xf32, #tpu.memory_space<vmem>>, vector<8x32xf32>
    tpu.vector_store %arg7[%c0_6, %c0_7], %7 {strides = array<i32>} : memref<8x32xf32, #tpu.memory_space<vmem>>, vector<8x32xf32>,
    %c0_i32_8 = arith.constant 0 : i32
    %9 = arith.cmpi eq, %arg2, %c0_i32_8 : i32
    %10 = arith.extui %9 : i1 to i32
    %c0_i32_9 = arith.constant 0 : i32
    %11 = arith.cmpi ne, %10, %c0_i32_9 : i32
    scf.if %11 {
      %c0_10 = arith.constant 0 : index
      %c0_11 = arith.constant 0 : index
      %12 = vector.load %arg7[%c0_10, %c0_11] : memref<8x32xf32, #tpu.memory_space<vmem>>, vector<8x32xf32>
      %c0_12 = arith.constant 0 : index
      %c0_13 = arith.constant 0 : index
      %13 = vector.load %arg5[%c0_12, %c0_13] : memref<1x32xf32, #tpu.memory_space<vmem>>, vector<1x32xf32>
      %14 = vector.broadcast %13 : vector<1x32xf32> to vector<8x32xf32>
      %15 = arith.addf %12, %14 : vector<8x32xf32>
      %c0_14 = arith.constant 0 : index
      %c0_15 = arith.constant 0 : index
      %16 = vector.load %arg6[%c0_14, %c0_15] : memref<8x32xf32, #tpu.memory_space<vmem>>, vector<8x32xf32>
      %17 = arith.addf %15, %16 : vector<8x32xf32>
      %c0_16 = arith.constant 0 : index
      %c0_17 = arith.constant 0 : index
      %18 = vector.load %arg7[%c0_16, %c0_17] : memref<8x32xf32, #tpu.memory_space<vmem>>, vector<8x32xf32>
      tpu.vector_store %arg7[%c0_16, %c0_17], %17 {strides = array<i32>} : memref<8x32xf32, #tpu.memory_space<vmem>>, vector<8x32xf32>,
    } else {
    }
    return
  }
  func.func @transform_0(%arg0: i32, %arg1: i32, %arg2: i32) -> (i32, i32) {
    %c0_i32 = arith.constant 0 : i32
    return %arg0, %arg2 : i32, i32
  }
  func.func @transform_1(%arg0: i32, %arg1: i32, %arg2: i32) -> (i32, i32) {
    %c0_i32 = arith.constant 0 : i32
    return %arg2, %arg1 : i32, i32
  }
  func.func @transform_2(%arg0: i32, %arg1: i32, %arg2: i32) -> (i32, i32) {
    %c0_i32 = arith.constant 0 : i32
    %c0_i32_0 = arith.constant 0 : i32
    return %c0_i32, %arg1 : i32, i32
  }
  func.func @transform_3(%arg0: i32, %arg1: i32, %arg2: i32) -> (i32, i32) {
    %c0_i32 = arith.constant 0 : i32
    return %arg0, %arg1 : i32, i32
  }
  func.func @transform_4(%arg0: i32, %arg1: i32, %arg2: i32) -> (i32, i32) {
    %c0_i32 = arith.constant 0 : i32
    return %arg0, %arg1 : i32, i32
  }
}

module attributes {stable_mosaic.version = 11 : i64} {
  func.func @_linear_kernel(%arg0: i32, %arg1: i32, %arg2: i32, %arg3: memref<8x128xbf16, #tpu.memory_space<vmem>>, %arg4: memref<128x32xbf16, #tpu.memory_space<vmem>>, %arg5: memref<1x32xf32, #tpu.memory_space<vmem>>, %arg6: memref<8x32xf32, #tpu.memory_space<vmem>>, %arg7: memref<8x32xf32, #tpu.memory_space<vmem>>) attributes {dimension_semantics = [#tpu.dimension_semantics<parallel>, #tpu.dimension_semantics<parallel>, #tpu.dimension_semantics<arbitrary>], iteration_bounds = array<i64: 1, 1, 1>, scalar_prefetch = 0 : i64, scratch_operands = 0 : i64, tpu.core_type = #tpu.core_type<tc>, window_params = [{transform_indices = @transform_0, window_bounds = array<i64: 8, 128>}, {transform_indices = @transform_1, window_bounds = array<i64: 128, 32>}, {transform_indices = @transform_2, window_bounds = array<i64: 1, 32>}, {transform_indices = @transform_3, window_bounds = array<i64: 8, 32>}, {transform_indices = @transform_4, window_bounds = array<i64: 8, 32>}]} {
    %c0_i32 = arith.constant 0 : i32
    %0 = arith.cmpi eq, %arg2, %c0_i32 : i32
    %1 = arith.extui %0 : i1 to i32
    %c0_i32_0 = arith.constant 0 : i32
    %2 = arith.cmpi ne, %1, %c0_i32_0 : i32
    scf.if %2 {
      %cst_10 = arith.constant 0.000000e+00 : f32
      %12 = vector.broadcast %cst_10 : f32 to vector<8x32xf32>
      %c0_11 = arith.constant 0 : index
      %c0_12 = arith.constant 0 : index
      %13 = vector.load %arg7[%c0_11, %c0_12] : memref<8x32xf32, #tpu.memory_space<vmem>>, vector<8x32xf32>
      tpu.vector_store %arg7[%c0_11, %c0_12], %12 {strides = array<i32>} : memref<8x32xf32, #tpu.memory_space<vmem>>, vector<8x32xf32>,
    } else {
    }
    %c0 = arith.constant 0 : index
    %c0_1 = arith.constant 0 : index
    %3 = vector.load %arg7[%c0, %c0_1] : memref<8x32xf32, #tpu.memory_space<vmem>>, vector<8x32xf32>
    %c0_2 = arith.constant 0 : index
    %c0_3 = arith.constant 0 : index
    %4 = vector.load %arg3[%c0_2, %c0_3] : memref<8x128xbf16, #tpu.memory_space<vmem>>, vector<8x128xbf16>
    %c0_4 = arith.constant 0 : index
    %c0_5 = arith.constant 0 : index
    %5 = vector.load %arg4[%c0_4, %c0_5] : memref<128x32xbf16, #tpu.memory_space<vmem>>, vector<128x32xbf16>
    %cst = arith.constant dense<0.000000e+00> : vector<8x32xf32>
    %6 = tpu.matmul %4, %5, %cst {dimension_numbers = #tpu.dot_dimension_numbers<[1], [0], [0], [1], [0, 0, 1, 1], [], []>} : vector<8x128xbf16>, vector<128x32xbf16>, vector<8x32xf32> -> vector<8x32xf32>
    %7 = arith.addf %3, %6 : vector<8x32xf32>
    %c0_6 = arith.constant 0 : index
    %c0_7 = arith.constant 0 : index
    %8 = vector.load %arg7[%c0_6, %c0_7] : memref<8x32xf32, #tpu.memory_space<vmem>>, vector<8x32xf32>
    tpu.vector_store %arg7[%c0_6, %c0_7], %7 {strides = array<i32>} : memref<8x32xf32, #tpu.memory_space<vmem>>, vector<8x32xf32>,
    %c0_i32_8 = arith.constant 0 : i32
    %9 = arith.cmpi eq, %arg2, %c0_i32_8 : i32
    %10 = arith.extui %9 : i1 to i32
    %c0_i32_9 = arith.constant 0 : i32
    %11 = arith.cmpi ne, %10, %c0_i32_9 : i32
    scf.if %11 {
      %c0_10 = arith.constant 0 : index
      %c0_11 = arith.constant 0 : index
      %12 = vector.load %arg7[%c0_10, %c0_11] : memref<8x32xf32, #tpu.memory_space<vmem>>, vector<8x32xf32>
      %c0_12 = arith.constant 0 : index
      %c0_13 = arith.constant 0 : index
      %13 = vector.load %arg5[%c0_12, %c0_13] : memref<1x32xf32, #tpu.memory_space<vmem>>, vector<1x32xf32>
      %14 = vector.broadcast %13 : vector<1x32xf32> to vector<8x32xf32>
      %15 = arith.addf %12, %14 : vector<8x32xf32>
      %c0_14 = arith.constant 0 : index
      %c0_15 = arith.constant 0 : index
      %16 = vector.load %arg6[%c0_14, %c0_15] : memref<8x32xf32, #tpu.memory_space<vmem>>, vector<8x32xf32>
      %17 = arith.addf %15, %16 : vector<8x32xf32>
      %c0_16 = arith.constant 0 : index
      %c0_17 = arith.constant 0 : index
      %18 = vector.load %arg7[%c0_16, %c0_17] : memref<8x32xf32, #tpu.memory_space<vmem>>, vector<8x32xf32>
      tpu.vector_store %arg7[%c0_16, %c0_17], %17 {strides = array<i32>} : memref<8x32xf32, #tpu.memory_space<vmem>>, vector<8x32xf32>,
    } else {
    }
    return
  }
  func.func @transform_0(%arg0: i32, %arg1: i32, %arg2: i32) -> (i32, i32) {
    %c0_i32 = arith.constant 0 : i32
    return %arg0, %arg2 : i32, i32
  }
  func.func @transform_1(%arg0: i32, %arg1: i32, %arg2: i32) -> (i32, i32) {
    %c0_i32 = arith.constant 0 : i32
    return %arg2, %arg1 : i32, i32
  }
  func.func @transform_2(%arg0: i32, %arg1: i32, %arg2: i32) -> (i32, i32) {
    %c0_i32 = arith.constant 0 : i32
    %c0_i32_0 = arith.constant 0 : i32
    return %c0_i32, %arg1 : i32, i32
  }
  func.func @transform_3(%arg0: i32, %arg1: i32, %arg2: i32) -> (i32, i32) {
    %c0_i32 = arith.constant 0 : i32
    return %arg0, %arg1 : i32, i32
  }
  func.func @transform_4(%arg0: i32, %arg1: i32, %arg2: i32) -> (i32, i32) {
    %c0_i32 = arith.constant 0 : i32
    return %arg0, %arg1 : i32, i32
  }
}

module attributes {stable_mosaic.version = 11 : i64} {
  func.func @_ln_linear_kernel(%arg0: i32, %arg1: i32, %arg2: memref<6x32xf32, #tpu.memory_space<vmem>>, %arg3: memref<1x32xf32, #tpu.memory_space<vmem>>, %arg4: memref<1x32xf32, #tpu.memory_space<vmem>>, %arg5: memref<32x32xbf16, #tpu.memory_space<vmem>>, %arg6: memref<1x32xf32, #tpu.memory_space<vmem>>, %arg7: memref<6x32xf32, #tpu.memory_space<vmem>>, %arg8: memref<6x32xbf16, #tpu.memory_space<vmem>>) attributes {dimension_semantics = [#tpu.dimension_semantics<parallel>, #tpu.dimension_semantics<arbitrary>], iteration_bounds = array<i64: 1, 1>, scalar_prefetch = 0 : i64, scratch_operands = 1 : i64, tpu.core_type = #tpu.core_type<tc>, window_params = [{transform_indices = @transform_0, window_bounds = array<i64: 6, 32>}, {pipeline_mode = #tpu.pipeline_mode<synchronous>, transform_indices = @transform_1, window_bounds = array<i64: 1, 32>}, {pipeline_mode = #tpu.pipeline_mode<synchronous>, transform_indices = @transform_2, window_bounds = array<i64: 1, 32>}, {transform_indices = @transform_3, window_bounds = array<i64: 32, 32>}, {transform_indices = @transform_4, window_bounds = array<i64: 1, 32>}, {transform_indices = @transform_5, window_bounds = array<i64: 6, 32>}]} {
    %c0_i32 = arith.constant 0 : i32
    %0 = arith.cmpi eq, %arg1, %c0_i32 : i32
    %1 = arith.extui %0 : i1 to i32
    %c0_i32_0 = arith.constant 0 : i32
    %2 = arith.cmpi ne, %1, %c0_i32_0 : i32
    scf.if %2 {
      %c0_8 = arith.constant 0 : index
      %c0_9 = arith.constant 0 : index
      %10 = vector.load %arg2[%c0_8, %c0_9] : memref<6x32xf32, #tpu.memory_space<vmem>>, vector<6x32xf32>
      %cst_10 = arith.constant dense<0.000000e+00> : vector<6xf32>
      %11 = vector.multi_reduction <add>, %10, %cst_10 [1] : vector<6x32xf32> to vector<6xf32>
      %12 = vector.shape_cast %11 : vector<6xf32> to vector<6x1xf32>
      %cst_11 = arith.constant 3.200000e+01 : f32
      %13 = vector.broadcast %cst_11 : f32 to vector<6x1xf32>
      %14 = arith.divf %12, %13 : vector<6x1xf32>
      %15 = vector.broadcast %14 : vector<6x1xf32> to vector<6x32xf32>
      %16 = arith.subf %10, %15 : vector<6x32xf32>
      %17 = arith.mulf %16, %16 : vector<6x32xf32>
      %cst_12 = arith.constant dense<0.000000e+00> : vector<6xf32>
      %18 = vector.multi_reduction <add>, %17, %cst_12 [1] : vector<6x32xf32> to vector<6xf32>
      %19 = vector.shape_cast %18 : vector<6xf32> to vector<6x1xf32>
      %cst_13 = arith.constant 3.200000e+01 : f32
      %20 = vector.broadcast %cst_13 : f32 to vector<6x1xf32>
      %21 = arith.divf %19, %20 : vector<6x1xf32>
      %22 = vector.broadcast %14 : vector<6x1xf32> to vector<6x32xf32>
      %23 = arith.subf %10, %22 : vector<6x32xf32>
      %cst_14 = arith.constant 9.99999974E-6 : f32
      %24 = vector.broadcast %cst_14 : f32 to vector<6x1xf32>
      %25 = arith.addf %21, %24 : vector<6x1xf32>
      %26 = math.rsqrt %25 : vector<6x1xf32>
      %27 = vector.broadcast %26 : vector<6x1xf32> to vector<6x32xf32>
      %28 = arith.mulf %23, %27 : vector<6x32xf32>
      %c0_15 = arith.constant 0 : index
      %c0_16 = arith.constant 0 : index
      %29 = vector.load %arg3[%c0_15, %c0_16] : memref<1x32xf32, #tpu.memory_space<vmem>>, vector<1x32xf32>
      %30 = vector.broadcast %29 : vector<1x32xf32> to vector<6x32xf32>
      %31 = arith.mulf %28, %30 : vector<6x32xf32>
      %c0_17 = arith.constant 0 : index
      %c0_18 = arith.constant 0 : index
      %32 = vector.load %arg4[%c0_17, %c0_18] : memref<1x32xf32, #tpu.memory_space<vmem>>, vector<1x32xf32>
      %33 = vector.broadcast %32 : vector<1x32xf32> to vector<6x32xf32>
      %34 = arith.addf %31, %33 : vector<6x32xf32>
      %35 = arith.truncf %34 : vector<6x32xf32> to vector<6x32xbf16>
      %c0_19 = arith.constant 0 : index
      %c0_20 = arith.constant 0 : index
      %36 = vector.load %arg8[%c0_19, %c0_20] : memref<6x32xbf16, #tpu.memory_space<vmem>>, vector<6x32xbf16>
      tpu.vector_store %arg8[%c0_19, %c0_20], %35 {strides = array<i32>} : memref<6x32xbf16, #tpu.memory_space<vmem>>, vector<6x32xbf16>,
    } else {
    }
    %c0 = arith.constant 0 : index
    %c0_1 = arith.constant 0 : index
    %3 = vector.load %arg8[%c0, %c0_1] : memref<6x32xbf16, #tpu.memory_space<vmem>>, vector<6x32xbf16>
    %c0_2 = arith.constant 0 : index
    %c0_3 = arith.constant 0 : index
    %4 = vector.load %arg5[%c0_2, %c0_3] : memref<32x32xbf16, #tpu.memory_space<vmem>>, vector<32x32xbf16>
    %cst = arith.constant dense<0.000000e+00> : vector<6x32xf32>
    %5 = tpu.matmul %3, %4, %cst {dimension_numbers = #tpu.dot_dimension_numbers<[1], [0], [0], [1], [0, 0, 1, 1], [], []>} : vector<6x32xbf16>, vector<32x32xbf16>, vector<6x32xf32> -> vector<6x32xf32>
    %c0_4 = arith.constant 0 : index
    %c0_5 = arith.constant 0 : index
    %6 = vector.load %arg6[%c0_4, %c0_5] : memref<1x32xf32, #tpu.memory_space<vmem>>, vector<1x32xf32>
    %7 = vector.broadcast %6 : vector<1x32xf32> to vector<6x32xf32>
    %8 = arith.addf %5, %7 : vector<6x32xf32>
    %c0_6 = arith.constant 0 : index
    %c0_7 = arith.constant 0 : index
    %9 = vector.load %arg7[%c0_6, %c0_7] : memref<6x32xf32, #tpu.memory_space<vmem>>, vector<6x32xf32>
    tpu.vector_store %arg7[%c0_6, %c0_7], %8 {strides = array<i32>} : memref<6x32xf32, #tpu.memory_space<vmem>>, vector<6x32xf32>,
    return
  }
  func.func @transform_0(%arg0: i32, %arg1: i32) -> (i32, i32) {
    %c0_i32 = arith.constant 0 : i32
    %c0_i32_0 = arith.constant 0 : i32
    return %arg0, %c0_i32 : i32, i32
  }
  func.func @transform_1(%arg0: i32, %arg1: i32) -> (i32, i32) {
    %c0_i32 = arith.constant 0 : i32
    %c0_i32_0 = arith.constant 0 : i32
    %c0_i32_1 = arith.constant 0 : i32
    return %c0_i32, %c0_i32_0 : i32, i32
  }
  func.func @transform_2(%arg0: i32, %arg1: i32) -> (i32, i32) {
    %c0_i32 = arith.constant 0 : i32
    %c0_i32_0 = arith.constant 0 : i32
    %c0_i32_1 = arith.constant 0 : i32
    return %c0_i32, %c0_i32_0 : i32, i32
  }
  func.func @transform_3(%arg0: i32, %arg1: i32) -> (i32, i32) {
    %c0_i32 = arith.constant 0 : i32
    %c0_i32_0 = arith.constant 0 : i32
    return %c0_i32, %arg1 : i32, i32
  }
  func.func @transform_4(%arg0: i32, %arg1: i32) -> (i32, i32) {
    %c0_i32 = arith.constant 0 : i32
    %c0_i32_0 = arith.constant 0 : i32
    return %c0_i32, %arg1 : i32, i32
  }
  func.func @transform_5(%arg0: i32, %arg1: i32) -> (i32, i32) {
    %c0_i32 = arith.constant 0 : i32
    return %arg0, %arg1 : i32, i32
  }
}

module attributes {stable_mosaic.version = 11 : i64} {
  func.func @_ln_linear_kernel(%arg0: i32, %arg1: i32, %arg2: memref<32x32xf32, #tpu.memory_space<vmem>>, %arg3: memref<1x32xf32, #tpu.memory_space<vmem>>, %arg4: memref<1x32xf32, #tpu.memory_space<vmem>>, %arg5: memref<32x96xbf16, #tpu.memory_space<vmem>>, %arg6: memref<32x96xbf16, #tpu.memory_space<vmem>>, %arg7: memref<32x32xbf16, #tpu.memory_space<vmem>>) attributes {dimension_semantics = [#tpu.dimension_semantics<parallel>, #tpu.dimension_semantics<arbitrary>], iteration_bounds = array<i64: 1, 1>, scalar_prefetch = 0 : i64, scratch_operands = 1 : i64, tpu.core_type = #tpu.core_type<tc>, window_params = [{transform_indices = @transform_0, window_bounds = array<i64: 32, 32>}, {pipeline_mode = #tpu.pipeline_mode<synchronous>, transform_indices = @transform_1, window_bounds = array<i64: 1, 32>}, {pipeline_mode = #tpu.pipeline_mode<synchronous>, transform_indices = @transform_2, window_bounds = array<i64: 1, 32>}, {transform_indices = @transform_3, window_bounds = array<i64: 32, 96>}, {transform_indices = @transform_4, window_bounds = array<i64: 32, 96>}]} {
    %c0_i32 = arith.constant 0 : i32
    %0 = arith.cmpi eq, %arg1, %c0_i32 : i32
    %1 = arith.extui %0 : i1 to i32
    %c0_i32_0 = arith.constant 0 : i32
    %2 = arith.cmpi ne, %1, %c0_i32_0 : i32
    scf.if %2 {
      %c0_6 = arith.constant 0 : index
      %c0_7 = arith.constant 0 : index
      %8 = vector.load %arg2[%c0_6, %c0_7] : memref<32x32xf32, #tpu.memory_space<vmem>>, vector<32x32xf32>
      %cst_8 = arith.constant dense<0.000000e+00> : vector<32xf32>
      %9 = vector.multi_reduction <add>, %8, %cst_8 [1] : vector<32x32xf32> to vector<32xf32>
      %10 = vector.shape_cast %9 : vector<32xf32> to vector<32x1xf32>
      %cst_9 = arith.constant 3.200000e+01 : f32
      %11 = vector.broadcast %cst_9 : f32 to vector<32x1xf32>
      %12 = arith.divf %10, %11 : vector<32x1xf32>
      %13 = vector.broadcast %12 : vector<32x1xf32> to vector<32x32xf32>
      %14 = arith.subf %8, %13 : vector<32x32xf32>
      %15 = arith.mulf %14, %14 : vector<32x32xf32>
      %cst_10 = arith.constant dense<0.000000e+00> : vector<32xf32>
      %16 = vector.multi_reduction <add>, %15, %cst_10 [1] : vector<32x32xf32> to vector<32xf32>
      %17 = vector.shape_cast %16 : vector<32xf32> to vector<32x1xf32>
      %cst_11 = arith.constant 3.200000e+01 : f32
      %18 = vector.broadcast %cst_11 : f32 to vector<32x1xf32>
      %19 = arith.divf %17, %18 : vector<32x1xf32>
      %20 = vector.broadcast %12 : vector<32x1xf32> to vector<32x32xf32>
      %21 = arith.subf %8, %20 : vector<32x32xf32>
      %cst_12 = arith.constant 9.99999974E-6 : f32
      %22 = vector.broadcast %cst_12 : f32 to vector<32x1xf32>
      %23 = arith.addf %19, %22 : vector<32x1xf32>
      %24 = math.rsqrt %23 : vector<32x1xf32>
      %25 = vector.broadcast %24 : vector<32x1xf32> to vector<32x32xf32>
      %26 = arith.mulf %21, %25 : vector<32x32xf32>
      %c0_13 = arith.constant 0 : index
      %c0_14 = arith.constant 0 : index
      %27 = vector.load %arg3[%c0_13, %c0_14] : memref<1x32xf32, #tpu.memory_space<vmem>>, vector<1x32xf32>
      %28 = vector.broadcast %27 : vector<1x32xf32> to vector<32x32xf32>
      %29 = arith.mulf %26, %28 : vector<32x32xf32>
      %c0_15 = arith.constant 0 : index
      %c0_16 = arith.constant 0 : index
      %30 = vector.load %arg4[%c0_15, %c0_16] : memref<1x32xf32, #tpu.memory_space<vmem>>, vector<1x32xf32>
      %31 = vector.broadcast %30 : vector<1x32xf32> to vector<32x32xf32>
      %32 = arith.addf %29, %31 : vector<32x32xf32>
      %33 = arith.truncf %32 : vector<32x32xf32> to vector<32x32xbf16>
      %c0_17 = arith.constant 0 : index
      %c0_18 = arith.constant 0 : index
      %34 = vector.load %arg7[%c0_17, %c0_18] : memref<32x32xbf16, #tpu.memory_space<vmem>>, vector<32x32xbf16>
      tpu.vector_store %arg7[%c0_17, %c0_18], %33 {strides = array<i32>} : memref<32x32xbf16, #tpu.memory_space<vmem>>, vector<32x32xbf16>,
    } else {
    }
    %c0 = arith.constant 0 : index
    %c0_1 = arith.constant 0 : index
    %3 = vector.load %arg7[%c0, %c0_1] : memref<32x32xbf16, #tpu.memory_space<vmem>>, vector<32x32xbf16>
    %c0_2 = arith.constant 0 : index
    %c0_3 = arith.constant 0 : index
    %4 = vector.load %arg5[%c0_2, %c0_3] : memref<32x96xbf16, #tpu.memory_space<vmem>>, vector<32x96xbf16>
    %cst = arith.constant dense<0.000000e+00> : vector<32x96xf32>
    %5 = tpu.matmul %3, %4, %cst {dimension_numbers = #tpu.dot_dimension_numbers<[1], [0], [0], [1], [0, 0, 1, 1], [], []>} : vector<32x32xbf16>, vector<32x96xbf16>, vector<32x96xf32> -> vector<32x96xf32>
    %6 = arith.truncf %5 : vector<32x96xf32> to vector<32x96xbf16>
    %c0_4 = arith.constant 0 : index
    %c0_5 = arith.constant 0 : index
    %7 = vector.load %arg6[%c0_4, %c0_5] : memref<32x96xbf16, #tpu.memory_space<vmem>>, vector<32x96xbf16>
    tpu.vector_store %arg6[%c0_4, %c0_5], %6 {strides = array<i32>} : memref<32x96xbf16, #tpu.memory_space<vmem>>, vector<32x96xbf16>,
    return
  }
  func.func @transform_0(%arg0: i32, %arg1: i32) -> (i32, i32) {
    %c0_i32 = arith.constant 0 : i32
    %c0_i32_0 = arith.constant 0 : i32
    return %arg0, %c0_i32 : i32, i32
  }
  func.func @transform_1(%arg0: i32, %arg1: i32) -> (i32, i32) {
    %c0_i32 = arith.constant 0 : i32
    %c0_i32_0 = arith.constant 0 : i32
    %c0_i32_1 = arith.constant 0 : i32
    return %c0_i32, %c0_i32_0 : i32, i32
  }
  func.func @transform_2(%arg0: i32, %arg1: i32) -> (i32, i32) {
    %c0_i32 = arith.constant 0 : i32
    %c0_i32_0 = arith.constant 0 : i32
    %c0_i32_1 = arith.constant 0 : i32
    return %c0_i32, %c0_i32_0 : i32, i32
  }
  func.func @transform_3(%arg0: i32, %arg1: i32) -> (i32, i32) {
    %c0_i32 = arith.constant 0 : i32
    %c0_i32_0 = arith.constant 0 : i32
    return %c0_i32, %arg1 : i32, i32
  }
  func.func @transform_4(%arg0: i32, %arg1: i32) -> (i32, i32) {
    %c0_i32 = arith.constant 0 : i32
    return %arg0, %arg1 : i32, i32
  }
}

module attributes {stable_mosaic.version = 11 : i64} {
  func.func @_win_attn_kernel(%arg0: i32, %arg1: memref<8x4x4x8xbf16, #tpu.memory_space<vmem>>, %arg2: memref<8x4x4x8xbf16, #tpu.memory_space<vmem>>, %arg3: memref<8x4x4x8xbf16, #tpu.memory_space<vmem>>, %arg4: memref<4x4x4xf32, #tpu.memory_space<vmem>>, %arg5: memref<8x4x4x8xbf16, #tpu.memory_space<vmem>>) attributes {dimension_semantics = [#tpu.dimension_semantics<parallel>], iteration_bounds = array<i64: 1>, scalar_prefetch = 0 : i64, scratch_operands = 0 : i64, tpu.core_type = #tpu.core_type<tc>, window_params = [{transform_indices = @transform_0, window_bounds = array<i64: 8, 4, 4, 8>}, {transform_indices = @transform_1, window_bounds = array<i64: 8, 4, 4, 8>}, {transform_indices = @transform_2, window_bounds = array<i64: 8, 4, 4, 8>}, {pipeline_mode = #tpu.pipeline_mode<synchronous>, transform_indices = @transform_3, window_bounds = array<i64: 4, 4, 4>}, {transform_indices = @transform_4, window_bounds = array<i64: 8, 4, 4, 8>}]} {
    %c0 = arith.constant 0 : index
    %c0_0 = arith.constant 0 : index
    %c0_1 = arith.constant 0 : index
    %c0_2 = arith.constant 0 : index
    %0 = vector.load %arg1[%c0, %c0_0, %c0_1, %c0_2] : memref<8x4x4x8xbf16, #tpu.memory_space<vmem>>, vector<8x4x4x8xbf16>
    %1 = vector.shape_cast %0 : vector<8x4x4x8xbf16> to vector<32x4x8xbf16>
    %c0_3 = arith.constant 0 : index
    %c0_4 = arith.constant 0 : index
    %c0_5 = arith.constant 0 : index
    %c0_6 = arith.constant 0 : index
    %2 = vector.load %arg2[%c0_3, %c0_4, %c0_5, %c0_6] : memref<8x4x4x8xbf16, #tpu.memory_space<vmem>>, vector<8x4x4x8xbf16>
    %3 = vector.shape_cast %2 : vector<8x4x4x8xbf16> to vector<32x4x8xbf16>
    %c0_7 = arith.constant 0 : index
    %c0_8 = arith.constant 0 : index
    %c0_9 = arith.constant 0 : index
    %c0_10 = arith.constant 0 : index
    %4 = vector.load %arg3[%c0_7, %c0_8, %c0_9, %c0_10] : memref<8x4x4x8xbf16, #tpu.memory_space<vmem>>, vector<8x4x4x8xbf16>
    %5 = vector.shape_cast %4 : vector<8x4x4x8xbf16> to vector<32x4x8xbf16>
    "tpu.trace_start"() <{level = 10 : i32, message = "bqd,bkd->bqk"}> : () -> ()
    %cst = arith.constant dense<0.000000e+00> : vector<32x4x4xf32>
    %6 = tpu.matmul %1, %3, %cst {dimension_numbers = #tpu.dot_dimension_numbers<[2], [2], [1], [1], [0, 0, 0, 1, 1, 1], [0], [0]>} : vector<32x4x8xbf16>, vector<32x4x8xbf16>, vector<32x4x4xf32> -> vector<32x4x4xf32>
    "tpu.trace_stop"() : () -> ()
    %cst_11 = arith.constant 0.353553385 : f32
    %7 = vector.broadcast %cst_11 : f32 to vector<32x4x4xf32>
    %8 = arith.mulf %6, %7 : vector<32x4x4xf32>
    %9 = vector.shape_cast %8 : vector<32x4x4xf32> to vector<8x4x4x4xf32>
    %c0_12 = arith.constant 0 : index
    %c0_13 = arith.constant 0 : index
    %c0_14 = arith.constant 0 : index
    %10 = vector.load %arg4[%c0_12, %c0_13, %c0_14] : memref<4x4x4xf32, #tpu.memory_space<vmem>>, vector<4x4x4xf32>
    %11 = vector.shape_cast %10 : vector<4x4x4xf32> to vector<1x4x4x4xf32>
    %12 = vector.broadcast %11 : vector<1x4x4x4xf32> to vector<8x4x4x4xf32>
    %13 = arith.addf %9, %12 : vector<8x4x4x4xf32>
    %cst_15 = arith.constant dense<0xFF800000> : vector<8x4x4xf32>
    %14 = vector.multi_reduction <maximumf>, %13, %cst_15 [3] : vector<8x4x4x4xf32> to vector<8x4x4xf32>
    %15 = vector.shape_cast %14 : vector<8x4x4xf32> to vector<8x4x4x1xf32>
    %16 = vector.broadcast %15 : vector<8x4x4x1xf32> to vector<8x4x4x4xf32>
    %17 = arith.subf %13, %16 : vector<8x4x4x4xf32>
    %18 = math.exp %17 : vector<8x4x4x4xf32>
    %cst_16 = arith.constant dense<0.000000e+00> : vector<8x4x4xf32>
    %19 = vector.multi_reduction <add>, %18, %cst_16 [3] : vector<8x4x4x4xf32> to vector<8x4x4xf32>
    %20 = vector.shape_cast %19 : vector<8x4x4xf32> to vector<8x4x4x1xf32>
    %21 = tpu.reciprocal %20 {approx = true} : vector<8x4x4x1xf32> -> vector<8x4x4x1xf32>
    %22 = vector.broadcast %21 : vector<8x4x4x1xf32> to vector<8x4x4x4xf32>
    %23 = arith.mulf %18, %22 : vector<8x4x4x4xf32>
    %24 = vector.shape_cast %23 : vector<8x4x4x4xf32> to vector<32x4x4xf32>
    %25 = arith.truncf %24 : vector<32x4x4xf32> to vector<32x4x4xbf16>
    "tpu.trace_start"() <{level = 10 : i32, message = "bqk,bkd->bqd"}> : () -> ()
    %cst_17 = arith.constant dense<0.000000e+00> : vector<32x4x8xf32>
    %26 = tpu.matmul %25, %5, %cst_17 {dimension_numbers = #tpu.dot_dimension_numbers<[2], [1], [1], [2], [0, 0, 0, 1, 1, 2], [0], [0]>} : vector<32x4x4xbf16>, vector<32x4x8xbf16>, vector<32x4x8xf32> -> vector<32x4x8xf32>
    "tpu.trace_stop"() : () -> ()
    %27 = vector.shape_cast %26 : vector<32x4x8xf32> to vector<8x4x4x8xf32>
    %28 = arith.truncf %27 : vector<8x4x4x8xf32> to vector<8x4x4x8xbf16>
    %c0_18 = arith.constant 0 : index
    %c0_19 = arith.constant 0 : index
    %c0_20 = arith.constant 0 : index
    %c0_21 = arith.constant 0 : index
    %29 = vector.load %arg5[%c0_18, %c0_19, %c0_20, %c0_21] : memref<8x4x4x8xbf16, #tpu.memory_space<vmem>>, vector<8x4x4x8xbf16>
    tpu.vector_store %arg5[%c0_18, %c0_19, %c0_20, %c0_21], %28 {strides = array<i32>} : memref<8x4x4x8xbf16, #tpu.memory_space<vmem>>, vector<8x4x4x8xbf16>,
    return
  }
  func.func @transform_0(%arg0: i32) -> (i32, i32, i32, i32) {
    %c0_i32 = arith.constant 0 : i32
    %c0_i32_0 = arith.constant 0 : i32
    %c0_i32_1 = arith.constant 0 : i32
    %c0_i32_2 = arith.constant 0 : i32
    return %arg0, %c0_i32, %c0_i32_0, %c0_i32_1 : i32, i32, i32, i32
  }
  func.func @transform_1(%arg0: i32) -> (i32, i32, i32, i32) {
    %c0_i32 = arith.constant 0 : i32
    %c0_i32_0 = arith.constant 0 : i32
    %c0_i32_1 = arith.constant 0 : i32
    %c0_i32_2 = arith.constant 0 : i32
    return %arg0, %c0_i32, %c0_i32_0, %c0_i32_1 : i32, i32, i32, i32
  }
  func.func @transform_2(%arg0: i32) -> (i32, i32, i32, i32) {
    %c0_i32 = arith.constant 0 : i32
    %c0_i32_0 = arith.constant 0 : i32
    %c0_i32_1 = arith.constant 0 : i32
    %c0_i32_2 = arith.constant 0 : i32
    return %arg0, %c0_i32, %c0_i32_0, %c0_i32_1 : i32, i32, i32, i32
  }
  func.func @transform_3(%arg0: i32) -> (i32, i32, i32) {
    %c0_i32 = arith.constant 0 : i32
    %c0_i32_0 = arith.constant 0 : i32
    %c0_i32_1 = arith.constant 0 : i32
    %c0_i32_2 = arith.constant 0 : i32
    return %c0_i32, %c0_i32_0, %c0_i32_1 : i32, i32, i32
  }
  func.func @transform_4(%arg0: i32) -> (i32, i32, i32, i32) {
    %c0_i32 = arith.constant 0 : i32
    %c0_i32_0 = arith.constant 0 : i32
    %c0_i32_1 = arith.constant 0 : i32
    %c0_i32_2 = arith.constant 0 : i32
    return %arg0, %c0_i32, %c0_i32_0, %c0_i32_1 : i32, i32, i32, i32
  }
}

module attributes {stable_mosaic.version = 11 : i64} {
  func.func @_ln_linear_kernel(%arg0: i32, %arg1: i32, %arg2: memref<32x32xf32, #tpu.memory_space<vmem>>, %arg3: memref<1x32xf32, #tpu.memory_space<vmem>>, %arg4: memref<1x32xf32, #tpu.memory_space<vmem>>, %arg5: memref<32x128xbf16, #tpu.memory_space<vmem>>, %arg6: memref<1x128xf32, #tpu.memory_space<vmem>>, %arg7: memref<32x128xbf16, #tpu.memory_space<vmem>>, %arg8: memref<32x32xbf16, #tpu.memory_space<vmem>>) attributes {dimension_semantics = [#tpu.dimension_semantics<parallel>, #tpu.dimension_semantics<arbitrary>], iteration_bounds = array<i64: 1, 1>, scalar_prefetch = 0 : i64, scratch_operands = 1 : i64, tpu.core_type = #tpu.core_type<tc>, window_params = [{transform_indices = @transform_0, window_bounds = array<i64: 32, 32>}, {pipeline_mode = #tpu.pipeline_mode<synchronous>, transform_indices = @transform_1, window_bounds = array<i64: 1, 32>}, {pipeline_mode = #tpu.pipeline_mode<synchronous>, transform_indices = @transform_2, window_bounds = array<i64: 1, 32>}, {transform_indices = @transform_3, window_bounds = array<i64: 32, 128>}, {transform_indices = @transform_4, window_bounds = array<i64: 1, 128>}, {transform_indices = @transform_5, window_bounds = array<i64: 32, 128>}]} {
    %c0_i32 = arith.constant 0 : i32
    %0 = arith.cmpi eq, %arg1, %c0_i32 : i32
    %1 = arith.extui %0 : i1 to i32
    %c0_i32_0 = arith.constant 0 : i32
    %2 = arith.cmpi ne, %1, %c0_i32_0 : i32
    scf.if %2 {
      %c0_12 = arith.constant 0 : index
      %c0_13 = arith.constant 0 : index
      %24 = vector.load %arg2[%c0_12, %c0_13] : memref<32x32xf32, #tpu.memory_space<vmem>>, vector<32x32xf32>
      %cst_14 = arith.constant dense<0.000000e+00> : vector<32xf32>
      %25 = vector.multi_reduction <add>, %24, %cst_14 [1] : vector<32x32xf32> to vector<32xf32>
      %26 = vector.shape_cast %25 : vector<32xf32> to vector<32x1xf32>
      %cst_15 = arith.constant 3.200000e+01 : f32
      %27 = vector.broadcast %cst_15 : f32 to vector<32x1xf32>
      %28 = arith.divf %26, %27 : vector<32x1xf32>
      %29 = vector.broadcast %28 : vector<32x1xf32> to vector<32x32xf32>
      %30 = arith.subf %24, %29 : vector<32x32xf32>
      %31 = arith.mulf %30, %30 : vector<32x32xf32>
      %cst_16 = arith.constant dense<0.000000e+00> : vector<32xf32>
      %32 = vector.multi_reduction <add>, %31, %cst_16 [1] : vector<32x32xf32> to vector<32xf32>
      %33 = vector.shape_cast %32 : vector<32xf32> to vector<32x1xf32>
      %cst_17 = arith.constant 3.200000e+01 : f32
      %34 = vector.broadcast %cst_17 : f32 to vector<32x1xf32>
      %35 = arith.divf %33, %34 : vector<32x1xf32>
      %36 = vector.broadcast %28 : vector<32x1xf32> to vector<32x32xf32>
      %37 = arith.subf %24, %36 : vector<32x32xf32>
      %cst_18 = arith.constant 9.99999974E-6 : f32
      %38 = vector.broadcast %cst_18 : f32 to vector<32x1xf32>
      %39 = arith.addf %35, %38 : vector<32x1xf32>
      %40 = math.rsqrt %39 : vector<32x1xf32>
      %41 = vector.broadcast %40 : vector<32x1xf32> to vector<32x32xf32>
      %42 = arith.mulf %37, %41 : vector<32x32xf32>
      %c0_19 = arith.constant 0 : index
      %c0_20 = arith.constant 0 : index
      %43 = vector.load %arg3[%c0_19, %c0_20] : memref<1x32xf32, #tpu.memory_space<vmem>>, vector<1x32xf32>
      %44 = vector.broadcast %43 : vector<1x32xf32> to vector<32x32xf32>
      %45 = arith.mulf %42, %44 : vector<32x32xf32>
      %c0_21 = arith.constant 0 : index
      %c0_22 = arith.constant 0 : index
      %46 = vector.load %arg4[%c0_21, %c0_22] : memref<1x32xf32, #tpu.memory_space<vmem>>, vector<1x32xf32>
      %47 = vector.broadcast %46 : vector<1x32xf32> to vector<32x32xf32>
      %48 = arith.addf %45, %47 : vector<32x32xf32>
      %49 = arith.truncf %48 : vector<32x32xf32> to vector<32x32xbf16>
      %c0_23 = arith.constant 0 : index
      %c0_24 = arith.constant 0 : index
      %50 = vector.load %arg8[%c0_23, %c0_24] : memref<32x32xbf16, #tpu.memory_space<vmem>>, vector<32x32xbf16>
      tpu.vector_store %arg8[%c0_23, %c0_24], %49 {strides = array<i32>} : memref<32x32xbf16, #tpu.memory_space<vmem>>, vector<32x32xbf16>,
    } else {
    }
    %c0 = arith.constant 0 : index
    %c0_1 = arith.constant 0 : index
    %3 = vector.load %arg8[%c0, %c0_1] : memref<32x32xbf16, #tpu.memory_space<vmem>>, vector<32x32xbf16>
    %c0_2 = arith.constant 0 : index
    %c0_3 = arith.constant 0 : index
    %4 = vector.load %arg5[%c0_2, %c0_3] : memref<32x128xbf16, #tpu.memory_space<vmem>>, vector<32x128xbf16>
    %cst = arith.constant dense<0.000000e+00> : vector<32x128xf32>
    %5 = tpu.matmul %3, %4, %cst {dimension_numbers = #tpu.dot_dimension_numbers<[1], [0], [0], [1], [0, 0, 1, 1], [], []>} : vector<32x32xbf16>, vector<32x128xbf16>, vector<32x128xf32> -> vector<32x128xf32>
    %c0_4 = arith.constant 0 : index
    %c0_5 = arith.constant 0 : index
    %6 = vector.load %arg6[%c0_4, %c0_5] : memref<1x128xf32, #tpu.memory_space<vmem>>, vector<1x128xf32>
    %7 = vector.broadcast %6 : vector<1x128xf32> to vector<32x128xf32>
    %8 = arith.addf %5, %7 : vector<32x128xf32>
    %9 = arith.mulf %8, %8 : vector<32x128xf32>
    %10 = arith.mulf %8, %9 : vector<32x128xf32>
    %cst_6 = arith.constant 4.471500e-02 : f32
    %11 = vector.broadcast %cst_6 : f32 to vector<32x128xf32>
    %12 = arith.mulf %11, %10 : vector<32x128xf32>
    %13 = arith.addf %8, %12 : vector<32x128xf32>
    %cst_7 = arith.constant 0.797884583 : f32
    %14 = vector.broadcast %cst_7 : f32 to vector<32x128xf32>
    %15 = arith.mulf %14, %13 : vector<32x128xf32>
    %16 = math.tanh %15 : vector<32x128xf32>
    %cst_8 = arith.constant 1.000000e+00 : f32
    %17 = vector.broadcast %cst_8 : f32 to vector<32x128xf32>
    %18 = arith.addf %17, %16 : vector<32x128xf32>
    %cst_9 = arith.constant 5.000000e-01 : f32
    %19 = vector.broadcast %cst_9 : f32 to vector<32x128xf32>
    %20 = arith.mulf %19, %18 : vector<32x128xf32>
    %21 = arith.mulf %8, %20 : vector<32x128xf32>
    %22 = arith.truncf %21 : vector<32x128xf32> to vector<32x128xbf16>
    %c0_10 = arith.constant 0 : index
    %c0_11 = arith.constant 0 : index
    %23 = vector.load %arg7[%c0_10, %c0_11] : memref<32x128xbf16, #tpu.memory_space<vmem>>, vector<32x128xbf16>
    tpu.vector_store %arg7[%c0_10, %c0_11], %22 {strides = array<i32>} : memref<32x128xbf16, #tpu.memory_space<vmem>>, vector<32x128xbf16>,
    return
  }
  func.func @transform_0(%arg0: i32, %arg1: i32) -> (i32, i32) {
    %c0_i32 = arith.constant 0 : i32
    %c0_i32_0 = arith.constant 0 : i32
    return %arg0, %c0_i32 : i32, i32
  }
  func.func @transform_1(%arg0: i32, %arg1: i32) -> (i32, i32) {
    %c0_i32 = arith.constant 0 : i32
    %c0_i32_0 = arith.constant 0 : i32
    %c0_i32_1 = arith.constant 0 : i32
    return %c0_i32, %c0_i32_0 : i32, i32
  }
  func.func @transform_2(%arg0: i32, %arg1: i32) -> (i32, i32) {
    %c0_i32 = arith.constant 0 : i32
    %c0_i32_0 = arith.constant 0 : i32
    %c0_i32_1 = arith.constant 0 : i32
    return %c0_i32, %c0_i32_0 : i32, i32
  }
  func.func @transform_3(%arg0: i32, %arg1: i32) -> (i32, i32) {
    %c0_i32 = arith.constant 0 : i32
    %c0_i32_0 = arith.constant 0 : i32
    return %c0_i32, %arg1 : i32, i32
  }
  func.func @transform_4(%arg0: i32, %arg1: i32) -> (i32, i32) {
    %c0_i32 = arith.constant 0 : i32
    %c0_i32_0 = arith.constant 0 : i32
    return %c0_i32, %arg1 : i32, i32
  }
  func.func @transform_5(%arg0: i32, %arg1: i32) -> (i32, i32) {
    %c0_i32 = arith.constant 0 : i32
    return %arg0, %arg1 : i32, i32
  }
}

module attributes {stable_mosaic.version = 11 : i64} {
  func.func @_linear_kernel(%arg0: i32, %arg1: i32, %arg2: i32, %arg3: memref<32x128xbf16, #tpu.memory_space<vmem>>, %arg4: memref<128x32xbf16, #tpu.memory_space<vmem>>, %arg5: memref<1x32xf32, #tpu.memory_space<vmem>>, %arg6: memref<32x32xf32, #tpu.memory_space<vmem>>, %arg7: memref<32x32xf32, #tpu.memory_space<vmem>>) attributes {dimension_semantics = [#tpu.dimension_semantics<parallel>, #tpu.dimension_semantics<parallel>, #tpu.dimension_semantics<arbitrary>], iteration_bounds = array<i64: 1, 1, 1>, scalar_prefetch = 0 : i64, scratch_operands = 0 : i64, tpu.core_type = #tpu.core_type<tc>, window_params = [{transform_indices = @transform_0, window_bounds = array<i64: 32, 128>}, {transform_indices = @transform_1, window_bounds = array<i64: 128, 32>}, {transform_indices = @transform_2, window_bounds = array<i64: 1, 32>}, {transform_indices = @transform_3, window_bounds = array<i64: 32, 32>}, {transform_indices = @transform_4, window_bounds = array<i64: 32, 32>}]} {
    %c0_i32 = arith.constant 0 : i32
    %0 = arith.cmpi eq, %arg2, %c0_i32 : i32
    %1 = arith.extui %0 : i1 to i32
    %c0_i32_0 = arith.constant 0 : i32
    %2 = arith.cmpi ne, %1, %c0_i32_0 : i32
    scf.if %2 {
      %cst_10 = arith.constant 0.000000e+00 : f32
      %12 = vector.broadcast %cst_10 : f32 to vector<32x32xf32>
      %c0_11 = arith.constant 0 : index
      %c0_12 = arith.constant 0 : index
      %13 = vector.load %arg7[%c0_11, %c0_12] : memref<32x32xf32, #tpu.memory_space<vmem>>, vector<32x32xf32>
      tpu.vector_store %arg7[%c0_11, %c0_12], %12 {strides = array<i32>} : memref<32x32xf32, #tpu.memory_space<vmem>>, vector<32x32xf32>,
    } else {
    }
    %c0 = arith.constant 0 : index
    %c0_1 = arith.constant 0 : index
    %3 = vector.load %arg7[%c0, %c0_1] : memref<32x32xf32, #tpu.memory_space<vmem>>, vector<32x32xf32>
    %c0_2 = arith.constant 0 : index
    %c0_3 = arith.constant 0 : index
    %4 = vector.load %arg3[%c0_2, %c0_3] : memref<32x128xbf16, #tpu.memory_space<vmem>>, vector<32x128xbf16>
    %c0_4 = arith.constant 0 : index
    %c0_5 = arith.constant 0 : index
    %5 = vector.load %arg4[%c0_4, %c0_5] : memref<128x32xbf16, #tpu.memory_space<vmem>>, vector<128x32xbf16>
    %cst = arith.constant dense<0.000000e+00> : vector<32x32xf32>
    %6 = tpu.matmul %4, %5, %cst {dimension_numbers = #tpu.dot_dimension_numbers<[1], [0], [0], [1], [0, 0, 1, 1], [], []>} : vector<32x128xbf16>, vector<128x32xbf16>, vector<32x32xf32> -> vector<32x32xf32>
    %7 = arith.addf %3, %6 : vector<32x32xf32>
    %c0_6 = arith.constant 0 : index
    %c0_7 = arith.constant 0 : index
    %8 = vector.load %arg7[%c0_6, %c0_7] : memref<32x32xf32, #tpu.memory_space<vmem>>, vector<32x32xf32>
    tpu.vector_store %arg7[%c0_6, %c0_7], %7 {strides = array<i32>} : memref<32x32xf32, #tpu.memory_space<vmem>>, vector<32x32xf32>,
    %c0_i32_8 = arith.constant 0 : i32
    %9 = arith.cmpi eq, %arg2, %c0_i32_8 : i32
    %10 = arith.extui %9 : i1 to i32
    %c0_i32_9 = arith.constant 0 : i32
    %11 = arith.cmpi ne, %10, %c0_i32_9 : i32
    scf.if %11 {
      %c0_10 = arith.constant 0 : index
      %c0_11 = arith.constant 0 : index
      %12 = vector.load %arg7[%c0_10, %c0_11] : memref<32x32xf32, #tpu.memory_space<vmem>>, vector<32x32xf32>
      %c0_12 = arith.constant 0 : index
      %c0_13 = arith.constant 0 : index
      %13 = vector.load %arg5[%c0_12, %c0_13] : memref<1x32xf32, #tpu.memory_space<vmem>>, vector<1x32xf32>
      %14 = vector.broadcast %13 : vector<1x32xf32> to vector<32x32xf32>
      %15 = arith.addf %12, %14 : vector<32x32xf32>
      %c0_14 = arith.constant 0 : index
      %c0_15 = arith.constant 0 : index
      %16 = vector.load %arg6[%c0_14, %c0_15] : memref<32x32xf32, #tpu.memory_space<vmem>>, vector<32x32xf32>
      %17 = arith.addf %15, %16 : vector<32x32xf32>
      %c0_16 = arith.constant 0 : index
      %c0_17 = arith.constant 0 : index
      %18 = vector.load %arg7[%c0_16, %c0_17] : memref<32x32xf32, #tpu.memory_space<vmem>>, vector<32x32xf32>
      tpu.vector_store %arg7[%c0_16, %c0_17], %17 {strides = array<i32>} : memref<32x32xf32, #tpu.memory_space<vmem>>, vector<32x32xf32>,
    } else {
    }
    return
  }
  func.func @transform_0(%arg0: i32, %arg1: i32, %arg2: i32) -> (i32, i32) {
    %c0_i32 = arith.constant 0 : i32
    return %arg0, %arg2 : i32, i32
  }
  func.func @transform_1(%arg0: i32, %arg1: i32, %arg2: i32) -> (i32, i32) {
    %c0_i32 = arith.constant 0 : i32
    return %arg2, %arg1 : i32, i32
  }
  func.func @transform_2(%arg0: i32, %arg1: i32, %arg2: i32) -> (i32, i32) {
    %c0_i32 = arith.constant 0 : i32
    %c0_i32_0 = arith.constant 0 : i32
    return %c0_i32, %arg1 : i32, i32
  }
  func.func @transform_3(%arg0: i32, %arg1: i32, %arg2: i32) -> (i32, i32) {
    %c0_i32 = arith.constant 0 : i32
    return %arg0, %arg1 : i32, i32
  }
  func.func @transform_4(%arg0: i32, %arg1: i32, %arg2: i32) -> (i32, i32) {
    %c0_i32 = arith.constant 0 : i32
    return %arg0, %arg1 : i32, i32
  }
}

module attributes {stable_mosaic.version = 11 : i64} {
  func.func @_linear_kernel(%arg0: i32, %arg1: i32, %arg2: i32, %arg3: memref<32x32xbf16, #tpu.memory_space<vmem>>, %arg4: memref<32x32xbf16, #tpu.memory_space<vmem>>, %arg5: memref<1x32xf32, #tpu.memory_space<vmem>>, %arg6: memref<32x32xf32, #tpu.memory_space<vmem>>, %arg7: memref<32x32xf32, #tpu.memory_space<vmem>>) attributes {dimension_semantics = [#tpu.dimension_semantics<parallel>, #tpu.dimension_semantics<parallel>, #tpu.dimension_semantics<arbitrary>], iteration_bounds = array<i64: 1, 1, 1>, scalar_prefetch = 0 : i64, scratch_operands = 0 : i64, tpu.core_type = #tpu.core_type<tc>, window_params = [{transform_indices = @transform_0, window_bounds = array<i64: 32, 32>}, {transform_indices = @transform_1, window_bounds = array<i64: 32, 32>}, {transform_indices = @transform_2, window_bounds = array<i64: 1, 32>}, {transform_indices = @transform_3, window_bounds = array<i64: 32, 32>}, {transform_indices = @transform_4, window_bounds = array<i64: 32, 32>}]} {
    %c0_i32 = arith.constant 0 : i32
    %0 = arith.cmpi eq, %arg2, %c0_i32 : i32
    %1 = arith.extui %0 : i1 to i32
    %c0_i32_0 = arith.constant 0 : i32
    %2 = arith.cmpi ne, %1, %c0_i32_0 : i32
    scf.if %2 {
      %cst_10 = arith.constant 0.000000e+00 : f32
      %12 = vector.broadcast %cst_10 : f32 to vector<32x32xf32>
      %c0_11 = arith.constant 0 : index
      %c0_12 = arith.constant 0 : index
      %13 = vector.load %arg7[%c0_11, %c0_12] : memref<32x32xf32, #tpu.memory_space<vmem>>, vector<32x32xf32>
      tpu.vector_store %arg7[%c0_11, %c0_12], %12 {strides = array<i32>} : memref<32x32xf32, #tpu.memory_space<vmem>>, vector<32x32xf32>,
    } else {
    }
    %c0 = arith.constant 0 : index
    %c0_1 = arith.constant 0 : index
    %3 = vector.load %arg7[%c0, %c0_1] : memref<32x32xf32, #tpu.memory_space<vmem>>, vector<32x32xf32>
    %c0_2 = arith.constant 0 : index
    %c0_3 = arith.constant 0 : index
    %4 = vector.load %arg3[%c0_2, %c0_3] : memref<32x32xbf16, #tpu.memory_space<vmem>>, vector<32x32xbf16>
    %c0_4 = arith.constant 0 : index
    %c0_5 = arith.constant 0 : index
    %5 = vector.load %arg4[%c0_4, %c0_5] : memref<32x32xbf16, #tpu.memory_space<vmem>>, vector<32x32xbf16>
    %cst = arith.constant dense<0.000000e+00> : vector<32x32xf32>
    %6 = tpu.matmul %4, %5, %cst {dimension_numbers = #tpu.dot_dimension_numbers<[1], [0], [0], [1], [0, 0, 1, 1], [], []>} : vector<32x32xbf16>, vector<32x32xbf16>, vector<32x32xf32> -> vector<32x32xf32>
    %7 = arith.addf %3, %6 : vector<32x32xf32>
    %c0_6 = arith.constant 0 : index
    %c0_7 = arith.constant 0 : index
    %8 = vector.load %arg7[%c0_6, %c0_7] : memref<32x32xf32, #tpu.memory_space<vmem>>, vector<32x32xf32>
    tpu.vector_store %arg7[%c0_6, %c0_7], %7 {strides = array<i32>} : memref<32x32xf32, #tpu.memory_space<vmem>>, vector<32x32xf32>,
    %c0_i32_8 = arith.constant 0 : i32
    %9 = arith.cmpi eq, %arg2, %c0_i32_8 : i32
    %10 = arith.extui %9 : i1 to i32
    %c0_i32_9 = arith.constant 0 : i32
    %11 = arith.cmpi ne, %10, %c0_i32_9 : i32
    scf.if %11 {
      %c0_10 = arith.constant 0 : index
      %c0_11 = arith.constant 0 : index
      %12 = vector.load %arg7[%c0_10, %c0_11] : memref<32x32xf32, #tpu.memory_space<vmem>>, vector<32x32xf32>
      %c0_12 = arith.constant 0 : index
      %c0_13 = arith.constant 0 : index
      %13 = vector.load %arg5[%c0_12, %c0_13] : memref<1x32xf32, #tpu.memory_space<vmem>>, vector<1x32xf32>
      %14 = vector.broadcast %13 : vector<1x32xf32> to vector<32x32xf32>
      %15 = arith.addf %12, %14 : vector<32x32xf32>
      %c0_14 = arith.constant 0 : index
      %c0_15 = arith.constant 0 : index
      %16 = vector.load %arg6[%c0_14, %c0_15] : memref<32x32xf32, #tpu.memory_space<vmem>>, vector<32x32xf32>
      %17 = arith.addf %15, %16 : vector<32x32xf32>
      %c0_16 = arith.constant 0 : index
      %c0_17 = arith.constant 0 : index
      %18 = vector.load %arg7[%c0_16, %c0_17] : memref<32x32xf32, #tpu.memory_space<vmem>>, vector<32x32xf32>
      tpu.vector_store %arg7[%c0_16, %c0_17], %17 {strides = array<i32>} : memref<32x32xf32, #tpu.memory_space<vmem>>, vector<32x32xf32>,
    } else {
    }
    return
  }
  func.func @transform_0(%arg0: i32, %arg1: i32, %arg2: i32) -> (i32, i32) {
    %c0_i32 = arith.constant 0 : i32
    return %arg0, %arg2 : i32, i32
  }
  func.func @transform_1(%arg0: i32, %arg1: i32, %arg2: i32) -> (i32, i32) {
    %c0_i32 = arith.constant 0 : i32
    return %arg2, %arg1 : i32, i32
  }
  func.func @transform_2(%arg0: i32, %arg1: i32, %arg2: i32) -> (i32, i32) {
    %c0_i32 = arith.constant 0 : i32
    %c0_i32_0 = arith.constant 0 : i32
    return %c0_i32, %arg1 : i32, i32
  }
  func.func @transform_3(%arg0: i32, %arg1: i32, %arg2: i32) -> (i32, i32) {
    %c0_i32 = arith.constant 0 : i32
    return %arg0, %arg1 : i32, i32
  }
  func.func @transform_4(%arg0: i32, %arg1: i32, %arg2: i32) -> (i32, i32) {
    %c0_i32 = arith.constant 0 : i32
    return %arg0, %arg1 : i32, i32
  }
}

module attributes {stable_mosaic.version = 11 : i64} {
  func.func @_ln_linear_kernel(%arg0: i32, %arg1: i32, %arg2: memref<32x32xf32, #tpu.memory_space<vmem>>, %arg3: memref<1x32xf32, #tpu.memory_space<vmem>>, %arg4: memref<1x32xf32, #tpu.memory_space<vmem>>, %arg5: memref<32x64xbf16, #tpu.memory_space<vmem>>, %arg6: memref<1x64xf32, #tpu.memory_space<vmem>>, %arg7: memref<32x64xf32, #tpu.memory_space<vmem>>, %arg8: memref<32x32xbf16, #tpu.memory_space<vmem>>) attributes {dimension_semantics = [#tpu.dimension_semantics<parallel>, #tpu.dimension_semantics<arbitrary>], iteration_bounds = array<i64: 1, 1>, scalar_prefetch = 0 : i64, scratch_operands = 1 : i64, tpu.core_type = #tpu.core_type<tc>, window_params = [{transform_indices = @transform_0, window_bounds = array<i64: 32, 32>}, {pipeline_mode = #tpu.pipeline_mode<synchronous>, transform_indices = @transform_1, window_bounds = array<i64: 1, 32>}, {pipeline_mode = #tpu.pipeline_mode<synchronous>, transform_indices = @transform_2, window_bounds = array<i64: 1, 32>}, {transform_indices = @transform_3, window_bounds = array<i64: 32, 64>}, {transform_indices = @transform_4, window_bounds = array<i64: 1, 64>}, {transform_indices = @transform_5, window_bounds = array<i64: 32, 64>}]} {
    %c0_i32 = arith.constant 0 : i32
    %0 = arith.cmpi eq, %arg1, %c0_i32 : i32
    %1 = arith.extui %0 : i1 to i32
    %c0_i32_0 = arith.constant 0 : i32
    %2 = arith.cmpi ne, %1, %c0_i32_0 : i32
    scf.if %2 {
      %c0_8 = arith.constant 0 : index
      %c0_9 = arith.constant 0 : index
      %10 = vector.load %arg2[%c0_8, %c0_9] : memref<32x32xf32, #tpu.memory_space<vmem>>, vector<32x32xf32>
      %cst_10 = arith.constant dense<0.000000e+00> : vector<32xf32>
      %11 = vector.multi_reduction <add>, %10, %cst_10 [1] : vector<32x32xf32> to vector<32xf32>
      %12 = vector.shape_cast %11 : vector<32xf32> to vector<32x1xf32>
      %cst_11 = arith.constant 3.200000e+01 : f32
      %13 = vector.broadcast %cst_11 : f32 to vector<32x1xf32>
      %14 = arith.divf %12, %13 : vector<32x1xf32>
      %15 = vector.broadcast %14 : vector<32x1xf32> to vector<32x32xf32>
      %16 = arith.subf %10, %15 : vector<32x32xf32>
      %17 = arith.mulf %16, %16 : vector<32x32xf32>
      %cst_12 = arith.constant dense<0.000000e+00> : vector<32xf32>
      %18 = vector.multi_reduction <add>, %17, %cst_12 [1] : vector<32x32xf32> to vector<32xf32>
      %19 = vector.shape_cast %18 : vector<32xf32> to vector<32x1xf32>
      %cst_13 = arith.constant 3.200000e+01 : f32
      %20 = vector.broadcast %cst_13 : f32 to vector<32x1xf32>
      %21 = arith.divf %19, %20 : vector<32x1xf32>
      %22 = vector.broadcast %14 : vector<32x1xf32> to vector<32x32xf32>
      %23 = arith.subf %10, %22 : vector<32x32xf32>
      %cst_14 = arith.constant 9.99999974E-6 : f32
      %24 = vector.broadcast %cst_14 : f32 to vector<32x1xf32>
      %25 = arith.addf %21, %24 : vector<32x1xf32>
      %26 = math.rsqrt %25 : vector<32x1xf32>
      %27 = vector.broadcast %26 : vector<32x1xf32> to vector<32x32xf32>
      %28 = arith.mulf %23, %27 : vector<32x32xf32>
      %c0_15 = arith.constant 0 : index
      %c0_16 = arith.constant 0 : index
      %29 = vector.load %arg3[%c0_15, %c0_16] : memref<1x32xf32, #tpu.memory_space<vmem>>, vector<1x32xf32>
      %30 = vector.broadcast %29 : vector<1x32xf32> to vector<32x32xf32>
      %31 = arith.mulf %28, %30 : vector<32x32xf32>
      %c0_17 = arith.constant 0 : index
      %c0_18 = arith.constant 0 : index
      %32 = vector.load %arg4[%c0_17, %c0_18] : memref<1x32xf32, #tpu.memory_space<vmem>>, vector<1x32xf32>
      %33 = vector.broadcast %32 : vector<1x32xf32> to vector<32x32xf32>
      %34 = arith.addf %31, %33 : vector<32x32xf32>
      %35 = arith.truncf %34 : vector<32x32xf32> to vector<32x32xbf16>
      %c0_19 = arith.constant 0 : index
      %c0_20 = arith.constant 0 : index
      %36 = vector.load %arg8[%c0_19, %c0_20] : memref<32x32xbf16, #tpu.memory_space<vmem>>, vector<32x32xbf16>
      tpu.vector_store %arg8[%c0_19, %c0_20], %35 {strides = array<i32>} : memref<32x32xbf16, #tpu.memory_space<vmem>>, vector<32x32xbf16>,
    } else {
    }
    %c0 = arith.constant 0 : index
    %c0_1 = arith.constant 0 : index
    %3 = vector.load %arg8[%c0, %c0_1] : memref<32x32xbf16, #tpu.memory_space<vmem>>, vector<32x32xbf16>
    %c0_2 = arith.constant 0 : index
    %c0_3 = arith.constant 0 : index
    %4 = vector.load %arg5[%c0_2, %c0_3] : memref<32x64xbf16, #tpu.memory_space<vmem>>, vector<32x64xbf16>
    %cst = arith.constant dense<0.000000e+00> : vector<32x64xf32>
    %5 = tpu.matmul %3, %4, %cst {dimension_numbers = #tpu.dot_dimension_numbers<[1], [0], [0], [1], [0, 0, 1, 1], [], []>} : vector<32x32xbf16>, vector<32x64xbf16>, vector<32x64xf32> -> vector<32x64xf32>
    %c0_4 = arith.constant 0 : index
    %c0_5 = arith.constant 0 : index
    %6 = vector.load %arg6[%c0_4, %c0_5] : memref<1x64xf32, #tpu.memory_space<vmem>>, vector<1x64xf32>
    %7 = vector.broadcast %6 : vector<1x64xf32> to vector<32x64xf32>
    %8 = arith.addf %5, %7 : vector<32x64xf32>
    %c0_6 = arith.constant 0 : index
    %c0_7 = arith.constant 0 : index
    %9 = vector.load %arg7[%c0_6, %c0_7] : memref<32x64xf32, #tpu.memory_space<vmem>>, vector<32x64xf32>
    tpu.vector_store %arg7[%c0_6, %c0_7], %8 {strides = array<i32>} : memref<32x64xf32, #tpu.memory_space<vmem>>, vector<32x64xf32>,
    return
  }
  func.func @transform_0(%arg0: i32, %arg1: i32) -> (i32, i32) {
    %c0_i32 = arith.constant 0 : i32
    %c0_i32_0 = arith.constant 0 : i32
    return %arg0, %c0_i32 : i32, i32
  }
  func.func @transform_1(%arg0: i32, %arg1: i32) -> (i32, i32) {
    %c0_i32 = arith.constant 0 : i32
    %c0_i32_0 = arith.constant 0 : i32
    %c0_i32_1 = arith.constant 0 : i32
    return %c0_i32, %c0_i32_0 : i32, i32
  }
  func.func @transform_2(%arg0: i32, %arg1: i32) -> (i32, i32) {
    %c0_i32 = arith.constant 0 : i32
    %c0_i32_0 = arith.constant 0 : i32
    %c0_i32_1 = arith.constant 0 : i32
    return %c0_i32, %c0_i32_0 : i32, i32
  }
  func.func @transform_3(%arg0: i32, %arg1: i32) -> (i32, i32) {
    %c0_i32 = arith.constant 0 : i32
    %c0_i32_0 = arith.constant 0 : i32
    return %c0_i32, %arg1 : i32, i32
  }
  func.func @transform_4(%arg0: i32, %arg1: i32) -> (i32, i32) {
    %c0_i32 = arith.constant 0 : i32
    %c0_i32_0 = arith.constant 0 : i32
    return %c0_i32, %arg1 : i32, i32
  }
  func.func @transform_5(%arg0: i32, %arg1: i32) -> (i32, i32) {
    %c0_i32 = arith.constant 0 : i32
    return %arg0, %arg1 : i32, i32
  }
}

module attributes {stable_mosaic.version = 11 : i64} {
  func.func @_loss_kernel(%arg0: i32, %arg1: memref<32x64xf32, #tpu.memory_space<vmem>>, %arg2: memref<32x64xf32, #tpu.memory_space<vmem>>, %arg3: memref<32x1xf32, #tpu.memory_space<vmem>>, %arg4: memref<1x128xf32, #tpu.memory_space<vmem>>) attributes {dimension_semantics = [#tpu.dimension_semantics<arbitrary>], iteration_bounds = array<i64: 1>, scalar_prefetch = 0 : i64, scratch_operands = 0 : i64, tpu.core_type = #tpu.core_type<tc>, window_params = [{transform_indices = @transform_0, window_bounds = array<i64: 32, 64>}, {transform_indices = @transform_1, window_bounds = array<i64: 32, 64>}, {transform_indices = @transform_2, window_bounds = array<i64: 32, 1>}, {pipeline_mode = #tpu.pipeline_mode<synchronous>, transform_indices = @transform_3, window_bounds = array<i64: 1, 128>}]} {
    %c0_i32 = arith.constant 0 : i32
    %0 = arith.cmpi eq, %arg0, %c0_i32 : i32
    %1 = arith.extui %0 : i1 to i32
    %c0_i32_0 = arith.constant 0 : i32
    %2 = arith.cmpi ne, %1, %c0_i32_0 : i32
    scf.if %2 {
      %cst_21 = arith.constant 0.000000e+00 : f32
      %54 = vector.broadcast %cst_21 : f32 to vector<1x128xf32>
      %c0_22 = arith.constant 0 : index
      %c0_23 = arith.constant 0 : index
      %55 = vector.load %arg4[%c0_22, %c0_23] : memref<1x128xf32, #tpu.memory_space<vmem>>, vector<1x128xf32>
      tpu.vector_store %arg4[%c0_22, %c0_23], %54 {strides = array<i32>} : memref<1x128xf32, #tpu.memory_space<vmem>>, vector<1x128xf32>,
    } else {
    }
    %c0 = arith.constant 0 : index
    %c0_1 = arith.constant 0 : index
    %3 = vector.load %arg1[%c0, %c0_1] : memref<32x64xf32, #tpu.memory_space<vmem>>, vector<32x64xf32>
    %c0_2 = arith.constant 0 : index
    %c0_3 = arith.constant 0 : index
    %4 = vector.load %arg2[%c0_2, %c0_3] : memref<32x64xf32, #tpu.memory_space<vmem>>, vector<32x64xf32>
    %5 = arith.subf %3, %4 : vector<32x64xf32>
    %cst = arith.constant -2.000000e+00 : f32
    %6 = vector.broadcast %cst : f32 to vector<32x64xf32>
    %7 = arith.mulf %6, %5 : vector<32x64xf32>
    %cst_4 = arith.constant 0.000000e+00 : f32
    %8 = vector.broadcast %cst_4 : f32 to vector<32x64xf32>
    %9 = arith.maximumf %7, %8 : vector<32x64xf32>
    %10 = math.absf %7 : vector<32x64xf32>
    %cst_5 = arith.constant 0.000000e+00 : f32
    %11 = vector.broadcast %cst_5 : f32 to vector<32x64xf32>
    %12 = arith.subf %11, %10 : vector<32x64xf32>
    %13 = math.exp %12 : vector<32x64xf32>
    %cst_6 = arith.constant 1.000000e+00 : f32
    %14 = vector.broadcast %cst_6 : f32 to vector<32x64xf32>
    %15 = arith.addf %14, %13 : vector<32x64xf32>
    %16 = math.log %15 : vector<32x64xf32>
    %17 = arith.addf %9, %16 : vector<32x64xf32>
    %18 = arith.addf %5, %17 : vector<32x64xf32>
    %cst_7 = arith.constant 0.693147182 : f32
    %19 = vector.broadcast %cst_7 : f32 to vector<32x64xf32>
    %20 = arith.subf %18, %19 : vector<32x64xf32>
    %cst_8 = arith.constant dense<0.000000e+00> : vector<32xf32>
    %21 = vector.multi_reduction <add>, %20, %cst_8 [1] : vector<32x64xf32> to vector<32xf32>
    %22 = vector.shape_cast %21 : vector<32xf32> to vector<32x1xf32>
    %cst_9 = arith.constant 6.400000e+01 : f32
    %23 = vector.broadcast %cst_9 : f32 to vector<32x1xf32>
    %24 = arith.divf %22, %23 : vector<32x1xf32>
    %c0_10 = arith.constant 0 : index
    %c0_11 = arith.constant 0 : index
    %25 = vector.load %arg3[%c0_10, %c0_11] : memref<32x1xf32, #tpu.memory_space<vmem>>, vector<32x1xf32>
    %26 = arith.mulf %24, %25 : vector<32x1xf32>
    %27 = vector.shape_cast %26 : vector<32x1xf32> to vector<1x32x1xf32>
    %cst_12 = arith.constant dense<0.000000e+00> : vector<1xf32>
    %28 = vector.multi_reduction <add>, %27, %cst_12 [1, 2] : vector<1x32x1xf32> to vector<1xf32>
    %29 = vector.shape_cast %28 : vector<1xf32> to vector<1x1x1xf32>
    %30 = vector.extract %29[0, 0, 0] : f32 from vector<1x1x1xf32>
    %31 = vector.broadcast %30 : f32 to vector<1x1xf32>
    %32 = vector.shape_cast %25 : vector<32x1xf32> to vector<1x32x1xf32>
    %cst_13 = arith.constant dense<0.000000e+00> : vector<1xf32>
    %33 = vector.multi_reduction <add>, %32, %cst_13 [1, 2] : vector<1x32x1xf32> to vector<1xf32>
    %34 = vector.shape_cast %33 : vector<1xf32> to vector<1x1x1xf32>
    %35 = vector.extract %34[0, 0, 0] : f32 from vector<1x1x1xf32>
    %36 = vector.broadcast %35 : f32 to vector<1x1xf32>
    %37 = tpu.iota {dimensions = array<i32: 1>} : vector<1x128xi32>
    %c0_14 = arith.constant 0 : index
    %c0_15 = arith.constant 0 : index
    %38 = vector.load %arg4[%c0_14, %c0_15] : memref<1x128xf32, #tpu.memory_space<vmem>>, vector<1x128xf32>
    %c0_i32_16 = arith.constant 0 : i32
    %39 = vector.broadcast %c0_i32_16 : i32 to vector<1x128xi32>
    %40 = arith.cmpi eq, %37, %39 : vector<1x128xi32>
    %cst_17 = arith.constant 0.000000e+00 : f32
    %41 = vector.shape_cast %31 : vector<1x1xf32> to vector<1x1xf32>
    %42 = vector.broadcast %41 : vector<1x1xf32> to vector<1x128xf32>
    %43 = vector.broadcast %cst_17 : f32 to vector<1x128xf32>
    %44 = arith.select %40, %42, %43 : vector<1x128xi1>, vector<1x128xf32>
    %c1_i32 = arith.constant 1 : i32
    %45 = vector.broadcast %c1_i32 : i32 to vector<1x128xi32>
    %46 = arith.cmpi eq, %37, %45 : vector<1x128xi32>
    %cst_18 = arith.constant 0.000000e+00 : f32
    %47 = vector.shape_cast %36 : vector<1x1xf32> to vector<1x1xf32>
    %48 = vector.broadcast %47 : vector<1x1xf32> to vector<1x128xf32>
    %49 = vector.broadcast %cst_18 : f32 to vector<1x128xf32>
    %50 = arith.select %46, %48, %49 : vector<1x128xi1>, vector<1x128xf32>
    %51 = arith.addf %44, %50 : vector<1x128xf32>
    %52 = arith.addf %38, %51 : vector<1x128xf32>
    %c0_19 = arith.constant 0 : index
    %c0_20 = arith.constant 0 : index
    %53 = vector.load %arg4[%c0_19, %c0_20] : memref<1x128xf32, #tpu.memory_space<vmem>>, vector<1x128xf32>
    tpu.vector_store %arg4[%c0_19, %c0_20], %52 {strides = array<i32>} : memref<1x128xf32, #tpu.memory_space<vmem>>, vector<1x128xf32>,
    return
  }
  func.func @transform_0(%arg0: i32) -> (i32, i32) {
    %c0_i32 = arith.constant 0 : i32
    %c0_i32_0 = arith.constant 0 : i32
    return %arg0, %c0_i32 : i32, i32
  }
  func.func @transform_1(%arg0: i32) -> (i32, i32) {
    %c0_i32 = arith.constant 0 : i32
    %c0_i32_0 = arith.constant 0 : i32
    return %arg0, %c0_i32 : i32, i32
  }
  func.func @transform_2(%arg0: i32) -> (i32, i32) {
    %c0_i32 = arith.constant 0 : i32
    %c0_i32_0 = arith.constant 0 : i32
    return %arg0, %c0_i32 : i32, i32
  }
  func.func @transform_3(%arg0: i32) -> (i32, i32) {
    %c0_i32 = arith.constant 0 : i32
    %c0_i32_0 = arith.constant 0 : i32
    %c0_i32_1 = arith.constant 0 : i32
    return %c0_i32, %c0_i32_0 : i32, i32
  }
}

</mosaic_0001>

<bundles_post_ra>
// kernel: _lambda_.24
= control target key start
LH: loop header
LB: loop body
LE: loop exit
PB: predicated region body
PF: predicated region fallthrough
CT: control target
= control target key end

     0   :  { %vm19_vm0 = vcmask 261120   ;;  %v199_v1 = vmov 0.0   ;;  %vm74_vm1 = vcmask 523264   ;;  %s313_s1 = inlined_call_operand.vmem [shape: bf16[64,32], index: 1, kind: input, shape index: {}]   ;;  %s314_s3 = inlined_call_operand.vmem [shape: f32[32,32], index: 3, kind: output, shape index: {}]   ;;  %s315_s0 = inlined_call_operand.vmem [shape: bf16[32,64], index: 0, kind: input, shape index: {}]   ;;  %s316_s2 = inlined_call_operand.vmem [shape: f32[1,32], index: 2, kind: input, shape index: {}]  }
   0x1   :  { %v193_v0 = vld [vmem:[%s313_s1] sm:$0xff]   ;;  %22 = vst.msk [vmem:[%s314_s3 + $0x10] sm:$0xff] %vm19_vm0, %v199_v1  ;;  %20 = vst.msk [vmem:[%s314_s3] sm:$0xff] %vm19_vm0, %v199_v1  ;;  %v194_v2 = vld [vmem:[%s313_s1 + $0x8] sm:$0xff]  }
   0x2   :  { %21 = vst.msk [vmem:[%s314_s3 + $0x8] sm:$0xff] %vm19_vm0, %v199_v1  ;;  %23 = vst.msk [vmem:[%s314_s3 + $0x18] sm:$0xff] %vm19_vm0, %v199_v1  ;;  %180 = vmatprep.subr.bf16.mxu0 %v193_v0  ;;  %v195_v3 = vld [vmem:[%s313_s1 + $0x10] sm:$0xff]   ;;  %v197_v4 = vld [vmem:[%s315_s0] sm:$0xff]  }
   0x3   :  { %181 = vmatpush3.bf16.msra.mxu0 %v193_v0  ;;  %188 = vmatprep.mubr.msk.bf16.mxu0 %vm74_vm1, %v197_v4  ;;  %v196_v5 = vld [vmem:[%s313_s1 + $0x18] sm:$0xff]   ;;  %v198_v6 = vld [vmem:[%s315_s0 + $0x8] sm:$0xff]   ;;  %v173_v19 = vld [vmem:[%s316_s2] ss:$0 sm:$0xff] }
   0x4   :  { %182 = vmatprep.subr.bf16.mxu0 %v194_v2 }
   0x7   :  { %183 = vmatpush3.bf16.msra.mxu0 %v194_v2 }
   0x8   :  { %184 = vmatprep.subr.bf16.mxu0 %v195_v3  ;;  %v26_v7 = vld [vmem:[%s314_s3 + $0x10] sm:$0xff]  ;;  %v24_v8 = vld [vmem:[%s314_s3] sm:$0xff] }
   0x9   :  { %v27_v10 = vld [vmem:[%s314_s3 + $0x18] sm:$0xff]  ;;  %v25_v13 = vld [vmem:[%s314_s3 + $0x8] sm:$0xff] }
   0xb   :  { %185 = vmatpush3.bf16.msra.mxu0 %v195_v3 }
   0xc   :  { %186 = vmatprep.subr.bf16.mxu0 %v196_v5 }
   0xf   :  { %187 = vmatpush3.bf16.msra.mxu0 %v196_v5 }
  0x12   :  { %189 = vmatmul.mubr.msk.bf16.vlgmr.msra.gmra.mrb[0].mxu0 %vm74_vm1, %v198_v6 }
  0xe5   :  { %v190_v9 = vpop.f32.mrb[0].mxu0 }
  0xe6   :  { %v132_v11 = vadd.f32 %v190_v9, %v26_v7  ;;  %v115_v12 = vpop.f32.mrb[1].mxu0 }
  0xe7   :  { %v130_v14 = vadd.f32 %v115_v12, %v24_v8  ;;  %v191_v15 = vpop.f32.mrb[2].mxu0 }
  0xe8   :  { %137 = vst.msk [vmem:[%s314_s3 + $0x10] sm:$0xff] %vm19_vm0, %v132_v11  ;;  %v133_v16 = vadd.f32 %v191_v15, %v27_v10  ;;  %v118_v17 = vpop.f32.mrb[3].mxu0 }
  0xe9   :  { %135 = vst.msk [vmem:[%s314_s3] sm:$0xff] %vm19_vm0, %v130_v14  ;;  %v131_v18 = vadd.f32 %v118_v17, %v25_v13 }
  0xea   :  { %138 = vst.msk [vmem:[%s314_s3 + $0x18] sm:$0xff] %vm19_vm0, %v133_v16 }
  0xeb   :  { %136 = vst.msk [vmem:[%s314_s3 + $0x8] sm:$0xff] %vm19_vm0, %v131_v18 }
  0xef   :  { %v144_v20 = vld [vmem:[%s314_s3 + $0x10] sm:$0xff] }
  0xf0   :  { %v155_v21 = vadd.f32 %v173_v19, %v144_v20  ;;  %v142_v22 = vld [vmem:[%s314_s3] sm:$0xff] }
  0xf1   :  { %v153_v23 = vadd.f32 %v173_v19, %v142_v22  ;;  %v145_v24 = vld [vmem:[%s314_s3 + $0x18] sm:$0xff] }
  0xf2   :  { %159 = vst.msk [vmem:[%s314_s3 + $0x10] sm:$0xff] %vm19_vm0, %v155_v21  ;;  %v156_v25 = vadd.f32 %v173_v19, %v145_v24  ;;  %v143_v26 = vld [vmem:[%s314_s3 + $0x8] sm:$0xff] }
  0xf3   :  { %157 = vst.msk [vmem:[%s314_s3] sm:$0xff] %vm19_vm0, %v153_v23  ;;  %v154_v27 = vadd.f32 %v173_v19, %v143_v26 }
  0xf4   :  { %160 = vst.msk [vmem:[%s314_s3 + $0x18] sm:$0xff] %vm19_vm0, %v156_v25 }
  0xf5   :  { %158 = vst.msk [vmem:[%s314_s3 + $0x8] sm:$0xff] %vm19_vm0, %v154_v27 }

// kernel: _lambda_.25
= control target key start
LH: loop header
LB: loop body
LE: loop exit
PB: predicated region body
PF: predicated region fallthrough
CT: control target
= control target key end

     0   :  { %vm23_vm0 = vcmask 261120   ;;  %v147_v8 = vmov 0.0   ;;  %vm148_vm1 = vmmov 0   ;;  %vm55_vm2 = vcmask 257024   ;;  %s195_s0 = inlined_call_operand.vmem [shape: f32[8,32], index: 0, kind: input, shape index: {}]   ;;  %s196_s3 = inlined_call_operand.vmem [shape: bf16[32,96], index: 3, kind: input, shape index: {}]   ;;  %s197_s1 = inlined_call_operand.vmem [shape: f32[1,32], index: 1, kind: input, shape index: {}]   ;;  %s198_s2 = inlined_call_operand.vmem [shape: f32[1,32], index: 2, kind: input, shape index: {}]   ;;  %s199_s4 = inlined_call_operand.vmem [shape: bf16[8,96], index: 4, kind: output, shape index: {}]  }
   0x1   :  { %v22_v0 = vld [vmem:[%s195_s0] sm:$0xff]  ;;  %133 = vmatprep.subr.bf16.mxu0 %v147_v8  ;;  %v144_v9 = vld [vmem:[%s196_s3 + $0x8] sm:$0xff]   ;;  %137 = vmatprep.mubr.msk.bf16.mxu0 %vm148_vm1, %v147_v8  ;;  %vm119_vm3 = vcmask 781312  }
   0x2   :  { %v24_v1 = vsel %vm23_vm0, %v22_v0, 0.0  ;;  %v143_v7 = vld [vmem:[%s196_s3] sm:$0xff]  }
   0x3   :  { %25 = vadd.xlane.f32.xlu0 %v24_v1  ;;  %134 = vmatpush3.bf16.msra.mxu0 %v143_v7  ;;  %v125_v14 = vld [vmem:[%s197_s1] ss:$0 sm:$0xff] }
   0x4   :  { %135 = vmatprep.subr.bf16.mxu0 %v147_v8  ;;  %v126_v16 = vld [vmem:[%s198_s2] ss:$0 sm:$0xff] }
   0x7   :  { %136 = vmatpush3.bf16.msra.mxu0 %v144_v9 }
  0x90   :  { %v26_v2 = vpop.xlane.xlu0 %25 }
  0x91   :  { %v28_v3 = vmul.f32 0.03125, %v26_v2 }
  0x93   :  { %v29_v4 = vsub.f32 %v22_v0, %v28_v3 }
  0x95   :  { %v30_v5 = vmul.f32 %v29_v4, %v29_v4 }
  0x97   :  { %v31_v6 = vsel %vm23_vm0, %v30_v5, 0.0 }
  0x98   :  { %32 = vadd.xlane.f32.xlu0 %v31_v6 }
 0x125   :  { %v33_v10 = vpop.xlane.xlu0 %32 }
 0x126   :  { %v34_v11 = vmul.f32 0.03125, %v33_v10 }
 0x128   :  { %v35_v12 = vadd.f32 1e-05, %v34_v11 }
 0x12a   :  { %145 = vrsqrt.f32 %v35_v12 }
 0x134   :  { %v146_v13 = vpop.eup %145 }
 0x135   :  { %v37_v15 = vmul.f32 %v146_v13, %v29_v4 }
 0x137   :  { %v45_v17 = vmul.f32 %v125_v14, %v37_v15 }
 0x139   :  { %v53_v18 = vadd.f32 %v126_v16, %v45_v17 }
 0x13b   :  { %v54_v19 = vpack.c.bf16 %v53_v18, %v53_v18 }
 0x13d   :  { %56 = vst.msk [vmem:[#allocation2] sm:$0xf] %vm55_vm2, %v54_v19 }
 0x144   :  { %v57_v20 = vld [vmem:[#allocation2] sm:$0xf] }
 0x145   :  { %138 = vmatmul.mubr.msk.bf16.vlgmr.msra.gmra.mrb[0].mxu0 %vm23_vm0, %v57_v20 }
 0x218   :  { %v112_v21 = vpop.f32.mrb[0].mxu0 }
 0x219   :  { %v118_v22 = vpack.c.bf16 %v112_v21, %v112_v21  ;;  %v139_v23 = vpop.f32.mrb[1].mxu0 }
 0x21a   :  { %v115_v24 = vpop.f32.mrb[2].mxu0 }
 0x21b   :  { %120 = vst.msk [vmem:[%s199_s4] sm:$0xf] %vm119_vm3, %v118_v22  ;;  %v140_v25 = vpop.f32.mrb[3].mxu0 }

// kernel: _lambda_.26
= control target key start
LH: loop header
LB: loop body
LE: loop exit
PB: predicated region body
PF: predicated region fallthrough
CT: control target
= control target key end

     0   :  { %vm31_vm0 = vcmask 64512   ;;  %v1082_v0 = vmov 0.0   ;;  %vm1083_vm1 = vmmov 0   ;;  %vm408_vm2 = vcmask 27648   ;;  %s1336_s1 = inlined_call_operand.vmem [shape: bf16[8,4,8], index: 1, kind: input, shape index: {}]   ;;  %s1337_s0 = inlined_call_operand.vmem [shape: bf16[8,4,8], index: 0, kind: input, shape index: {}]   ;;  %s1338_s2 = inlined_call_operand.vmem [shape: bf16[8,4,8], index: 2, kind: input, shape index: {}]   ;;  %s1339_s3 = inlined_call_operand.vmem [shape: bf16[8,4,8], index: 3, kind: output, shape index: {}]  }
   0x1   :  { %952 = vmatprep.subr.bf16.mxu0 %v1082_v0  ;;  %958 = vmatprep.subr.bf16.mxu1 %v1082_v0  ;;  %v23_v1 = vld [vmem:[%s1336_s1] sm:$0x3]  ;;  %v24_v2 = vld [vmem:[%s1336_s1 + $0x2] sm:$0x3]  ;;  %v25_v5 = vld [vmem:[%s1336_s1 + $0x4] sm:$0x3] }
   0x2   :  { %v36_v3 = vsel %vm31_vm0, %v23_v1, 0  ;;  %v82_v4 = vsel %vm31_vm0, %v24_v2, 0  ;;  %954 = vmatprep.mubr.msk.bf16.mxu0 %vm1083_vm1, %v1082_v0  ;;  %960 = vmatprep.mubr.msk.bf16.mxu1 %vm1083_vm1, %v1082_v0  ;;  %v26_v6 = vld [vmem:[%s1336_s1 + $0x6] sm:$0x3]  ;;  %v15_v7 = vld [vmem:[%s1337_s0] sm:$0x3] }
   0x3   :  { %953 = vmatpush3.bf16.xpose.msra.mxu0 %v36_v3  ;;  %959 = vmatpush3.bf16.xpose.msra.mxu1 %v82_v4  ;;  %v16_v8 = vld [vmem:[%s1337_s0 + $0x2] sm:$0x3]  ;;  %v128_v9 = vsel %vm31_vm0, %v25_v5, 0  ;;  %v174_v10 = vsel %vm31_vm0, %v26_v6, 0  ;;  %v27_v11 = vld [vmem:[%s1336_s1 + $0x8] sm:$0x3] }
   0x4   :  { %964 = vmatprep.subr.bf16.mxu0 %v1082_v0  ;;  %970 = vmatprep.subr.bf16.mxu1 %v1082_v0  ;;  %v28_v12 = vld [vmem:[%s1336_s1 + $0xa] sm:$0x3]  ;;  %v17_v13 = vld [vmem:[%s1337_s0 + $0x4] sm:$0x3]  ;;  %v18_v14 = vld [vmem:[%s1337_s0 + $0x6] sm:$0x3] }
   0x5   :  { %v220_v15 = vsel %vm31_vm0, %v27_v11, 0  ;;  %v266_v16 = vsel %vm31_vm0, %v28_v12, 0  ;;  %v29_v17 = vld [vmem:[%s1336_s1 + $0xc] sm:$0x3]  ;;  %v30_v18 = vld [vmem:[%s1336_s1 + $0xe] sm:$0x3] }
   0x6   :  { %v19_v19 = vld [vmem:[%s1337_s0 + $0x8] sm:$0x3]  ;;  %v20_v20 = vld [vmem:[%s1337_s0 + $0xa] sm:$0x3]  ;;  %v312_v21 = vsel %vm31_vm0, %v29_v17, 0  ;;  %v358_v22 = vsel %vm31_vm0, %v30_v18, 0 }
   0x7   :  { %v21_v23 = vld [vmem:[%s1337_s0 + $0xc] sm:$0x3]  ;;  %v22_v24 = vld [vmem:[%s1337_s0 + $0xe] sm:$0x3]  ;;  %vm517_vm3 = vcmask 1041408   ;;  %vm513_vm4 = vcmask 31744  }
   0x8   :  { %vm891_vm5 = vcmask 58368  }
   0xa   :  { %955 = vmatmul.mubr.msk.bf16.vlgmr.msra.gmra.mrb[0].mxu0 %vm31_vm0, %v15_v7  ;;  %961 = vmatmul.mubr.msk.bf16.vlgmr.msra.gmra.mrb[0].mxu1 %vm31_vm0, %v16_v8 }
   0xb   :  { %965 = vmatpush3.bf16.xpose.msra.mxu0 %v128_v9  ;;  %971 = vmatpush3.bf16.xpose.msra.mxu1 %v174_v10 }
   0xc   :  { %966 = vmatprep.mubr.msk.bf16.mxu0 %vm1083_vm1, %v1082_v0  ;;  %972 = vmatprep.mubr.msk.bf16.mxu1 %vm1083_vm1, %v1082_v0 }
   0xd   :  { %976 = vmatprep.subr.bf16.mxu0 %v1082_v0  ;;  %982 = vmatprep.subr.bf16.mxu1 %v1082_v0 }
  0x12   :  { %967 = vmatmul.mubr.msk.bf16.vlgmr.msra.gmra.mrb[4].mxu0 %vm31_vm0, %v17_v13  ;;  %973 = vmatmul.mubr.msk.bf16.vlgmr.msra.gmra.mrb[4].mxu1 %vm31_vm0, %v18_v14 }
  0x13   :  { %977 = vmatpush3.bf16.xpose.msra.mxu0 %v220_v15  ;;  %983 = vmatpush3.bf16.xpose.msra.mxu1 %v266_v16 }
  0x14   :  { %978 = vmatprep.mubr.msk.bf16.mxu0 %vm1083_vm1, %v1082_v0  ;;  %984 = vmatprep.mubr.msk.bf16.mxu1 %vm1083_vm1, %v1082_v0 }
  0x15   :  { %988 = vmatprep.subr.bf16.mxu0 %v1082_v0  ;;  %994 = vmatprep.subr.bf16.mxu1 %v1082_v0 }
  0x1a   :  { %979 = vmatmul.mubr.msk.bf16.vlgmr.msra.gmra.mrb[8].mxu0 %vm31_vm0, %v19_v19  ;;  %985 = vmatmul.mubr.msk.bf16.vlgmr.msra.gmra.mrb[8].mxu1 %vm31_vm0, %v20_v20 }
  0x1b   :  { %989 = vmatpush3.bf16.xpose.msra.mxu0 %v312_v21  ;;  %995 = vmatpush3.bf16.xpose.msra.mxu1 %v358_v22 }
  0x1c   :  { %990 = vmatprep.mubr.msk.bf16.mxu0 %vm1083_vm1, %v1082_v0  ;;  %996 = vmatprep.mubr.msk.bf16.mxu1 %vm1083_vm1, %v1082_v0 }
  0x1d   :  { %1000 = vmatprep.subr.bf16.mxu0 %v1082_v0  ;;  %1006 = vmatprep.subr.bf16.mxu1 %v1082_v0 }
  0x22   :  { %991 = vmatmul.mubr.msk.bf16.vlgmr.msra.gmra.mrb[12].mxu0 %vm31_vm0, %v21_v23  ;;  %997 = vmatmul.mubr.msk.bf16.vlgmr.msra.gmra.mrb[12].mxu1 %vm31_vm0, %v22_v24 }
  0x23   :  { %1002 = vmatprep.mubr.msk.bf16.mxu0 %vm1083_vm1, %v1082_v0  ;;  %1008 = vmatprep.mubr.msk.bf16.mxu1 %vm1083_vm1, %v1082_v0 }
  0xdd   :  { %v72_v25 = vpop.f32.mrb[0].mxu0  ;;  %v118_v26 = vpop.f32.mrb[0].mxu1 }
  0xde   :  { %v400_v27 = vmul.f32 0.35355338, %v72_v25  ;;  %v956_v28 = vpop.f32.mrb[1].mxu0  ;;  %v401_v29 = vmul.f32 0.35355338, %v118_v26  ;;  %v962_v30 = vpop.f32.mrb[1].mxu1 }
  0xdf   :  { %v75_v31 = vpop.f32.mrb[2].mxu0  ;;  %v121_v32 = vpop.f32.mrb[2].mxu1 }
  0xe0   :  { %v957_v33 = vpop.f32.mrb[3].mxu0  ;;  %v409_v34 = vsel %vm408_vm2, %v400_v27, -inf  ;;  %v963_v35 = vpop.f32.mrb[3].mxu1  ;;  %v412_v36 = vsel %vm408_vm2, %v401_v29, -inf }
  0xe1   :  { %410 = vmax.xlane.f32.xlu0 %v409_v34 }
  0xe5   :  { %413 = vmax.xlane.f32.xlu0 %v412_v36  ;;  %v164_v37 = vpop.f32.mrb[4].mxu0  ;;  %v210_v38 = vpop.f32.mrb[4].mxu1 }
  0xe6   :  { %v402_v39 = vmul.f32 0.35355338, %v164_v37  ;;  %v968_v40 = vpop.f32.mrb[5].mxu0  ;;  %v403_v41 = vmul.f32 0.35355338, %v210_v38  ;;  %v974_v42 = vpop.f32.mrb[5].mxu1 }
  0xe7   :  { %v167_v43 = vpop.f32.mrb[6].mxu0  ;;  %v213_v44 = vpop.f32.mrb[6].mxu1 }
  0xe8   :  { %v969_v45 = vpop.f32.mrb[7].mxu0  ;;  %v415_v46 = vsel %vm408_vm2, %v402_v39, -inf  ;;  %v975_v47 = vpop.f32.mrb[7].mxu1  ;;  %v418_v48 = vsel %vm408_vm2, %v403_v41, -inf }
  0xe9   :  { %416 = vmax.xlane.f32.xlu1 %v415_v46 }
  0xed   :  { %v302_v49 = vpop.f32.mrb[8].mxu1  ;;  %419 = vmax.xlane.f32.xlu1 %v418_v48  ;;  %v256_v50 = vpop.f32.mrb[8].mxu0 }
  0xee   :  { %v405_v51 = vmul.f32 0.35355338, %v302_v49  ;;  %v404_v52 = vmul.f32 0.35355338, %v256_v50  ;;  %v980_v53 = vpop.f32.mrb[9].mxu0  ;;  %v986_v54 = vpop.f32.mrb[9].mxu1 }
  0xef   :  { %v305_v55 = vpop.f32.mrb[10].mxu1  ;;  %v259_v56 = vpop.f32.mrb[10].mxu0  ;;  %v505_v50 = vld [vmem:[%s1338_s2] sm:$0x3]  ;;  %v507_v54 = vld [vmem:[%s1338_s2 + $0x4] sm:$0x3] }
  0xf0   :  { %v424_v57 = vsel %vm408_vm2, %v405_v51, -inf  ;;  %v421_v58 = vsel %vm408_vm2, %v404_v52, -inf  ;;  %v981_v59 = vpop.f32.mrb[11].mxu0  ;;  %v987_v60 = vpop.f32.mrb[11].mxu1  ;;  %v611_v55 = vsel %vm517_vm3, %v507_v54, 0 }
  0xf1   :  { %425 = vmax.xlane.f32.xlu1 %v424_v57  ;;  %422 = vmax.xlane.f32.xlu0 %v421_v58  ;;  %v508_v56 = vld [vmem:[%s1338_s2 + $0x6] sm:$0x3]  ;;  %v509_v58 = vld [vmem:[%s1338_s2 + $0x8] sm:$0x3]  ;;  %v510_v60 = vld [vmem:[%s1338_s2 + $0xa] sm:$0x3] }
  0xf2   :  { %v657_v57 = vsel %vm517_vm3, %v508_v56, 0  ;;  %v703_v59 = vsel %vm517_vm3, %v509_v58, 0 }
  0xf5   :  { %v348_v61 = vpop.f32.mrb[12].mxu0  ;;  %v394_v62 = vpop.f32.mrb[12].mxu1 }
  0xf6   :  { %v406_v63 = vmul.f32 0.35355338, %v348_v61  ;;  %v407_v1 = vmul.f32 0.35355338, %v394_v62  ;;  %v992_v2 = vpop.f32.mrb[13].mxu0  ;;  %v998_v3 = vpop.f32.mrb[13].mxu1 }
  0xf7   :  { %v397_v4 = vpop.f32.mrb[14].mxu1  ;;  %v351_v5 = vpop.f32.mrb[14].mxu0  ;;  %v749_v61 = vsel %vm517_vm3, %v510_v60, 0  ;;  %v511_v62 = vld [vmem:[%s1338_s2 + $0xc] sm:$0x3] }
  0xf8   :  { %v430_v6 = vsel %vm408_vm2, %v407_v1, -inf  ;;  %v427_v7 = vsel %vm408_vm2, %v406_v63, -inf  ;;  %v993_v8 = vpop.f32.mrb[15].mxu0  ;;  %v999_v9 = vpop.f32.mrb[15].mxu1 }
  0xf9   :  { %431 = vmax.xlane.f32.xlu1 %v430_v6  ;;  %428 = vmax.xlane.f32.xlu0 %v427_v7 }
 0x16e   :  { %v411_v10 = vpop.xlane.xlu0 %410 }
 0x16f   :  { %v433_v11 = vsub.f32 %v400_v27, %v411_v10 }
 0x171   :  { %v441_v12 = vmul.f32 1.442695, %v433_v11 }
 0x172   :  { %v414_v13 = vpop.xlane.xlu0 %413 }
 0x173   :  { %1050 = vpow2.f32 %v441_v12  ;;  %v434_v14 = vsub.f32 %v401_v29, %v414_v13 }
 0x175   :  { %v443_v15 = vmul.f32 1.442695, %v434_v14 }
 0x176   :  { %v417_v16 = vpop.xlane.xlu1 %416 }
 0x177   :  { %1052 = vpow2.f32 %v443_v15  ;;  %v435_v17 = vsub.f32 %v402_v39, %v417_v16 }
 0x179   :  { %v445_v18 = vmul.f32 1.442695, %v435_v17 }
 0x17a   :  { %v420_v19 = vpop.xlane.xlu1 %419 }
 0x17b   :  { %1054 = vpow2.f32 %v445_v18  ;;  %v436_v20 = vsub.f32 %v403_v41, %v420_v19 }
 0x17d   :  { %v1206_v21 = vpop.eup %1050  ;;  %v447_v22 = vmul.f32 1.442695, %v436_v20 }
 0x17e   :  { %v426_v23 = vpop.xlane.xlu1 %425  ;;  %v423_v24 = vpop.xlane.xlu0 %422  ;;  %v457_v25 = vsel %vm408_vm2, %v1206_v21, 0.0 }
 0x17f   :  { %1056 = vpow2.f32 %v447_v22  ;;  %v438_v26 = vsub.f32 %v405_v51, %v426_v23  ;;  %v437_v27 = vsub.f32 %v404_v52, %v423_v24  ;;  %458 = vadd.xlane.f32.xlu0 %v457_v25  ;;  %v519_v51 = vsel %vm517_vm3, %v505_v50, 0  ;;  %v506_v52 = vld [vmem:[%s1338_s2 + $0x2] sm:$0x3] }
 0x180   :  { %1001 = vmatpush3.bf16.msra.mxu0 %v519_v51  ;;  %v565_v53 = vsel %vm517_vm3, %v506_v52, 0 }
 0x181   :  { %v1210_v28 = vpop.eup %1052  ;;  %v451_v29 = vmul.f32 1.442695, %v438_v26  ;;  %v449_v30 = vmul.f32 1.442695, %v437_v27  ;;  %1012 = vmatprep.subr.bf16.mxu0 %v1082_v0  ;;  %1007 = vmatpush3.bf16.msra.mxu1 %v565_v53 }
 0x182   :  { %v460_v31 = vsel %vm408_vm2, %v1210_v28, 0.0  ;;  %1018 = vmatprep.subr.bf16.mxu1 %v1082_v0 }
 0x183   :  { %1058 = vpow2.f32 %v451_v29  ;;  %461 = vadd.xlane.f32.xlu1 %v460_v31 }
 0x184   :  { %1060 = vpow2.f32 %v449_v30 }
 0x185   :  { %v1214_v32 = vpop.eup %1054 }
 0x186   :  { %v432_v33 = vpop.xlane.xlu1 %431  ;;  %v429_v34 = vpop.xlane.xlu0 %428  ;;  %v463_v35 = vsel %vm408_vm2, %v1214_v32, 0.0 }
 0x187   :  { %v440_v36 = vsub.f32 %v407_v1, %v432_v33  ;;  %v439_v37 = vsub.f32 %v406_v63, %v429_v34  ;;  %464 = vadd.xlane.f32.xlu0 %v463_v35  ;;  %v795_v63 = vsel %vm517_vm3, %v511_v62, 0  ;;  %v512_v1 = vld [vmem:[%s1338_s2 + $0xe] sm:$0x3] }
 0x188   :  { %v841_v2 = vsel %vm517_vm3, %v512_v1, 0 }
 0x189   :  { %v1218_v38 = vpop.eup %1056  ;;  %v455_v39 = vmul.f32 1.442695, %v440_v36  ;;  %v453_v40 = vmul.f32 1.442695, %v439_v37 }
 0x18a   :  { %v466_v41 = vsel %vm408_vm2, %v1218_v38, 0.0 }
 0x18b   :  { %1062 = vpow2.f32 %v455_v39  ;;  %467 = vadd.xlane.f32.xlu1 %v466_v41 }
 0x18c   :  { %1064 = vpow2.f32 %v453_v40 }
 0x18d   :  { %v1222_v42 = vpop.eup %1058 }
 0x18e   :  { %v1224_v43 = vpop.eup %1060  ;;  %v472_v44 = vsel %vm408_vm2, %v1222_v42, 0.0 }
 0x18f   :  { %473 = vadd.xlane.f32.xlu1 %v472_v44  ;;  %v469_v45 = vsel %vm408_vm2, %v1224_v43, 0.0 }
 0x190   :  { %470 = vadd.xlane.f32.xlu0 %v469_v45 }
 0x195   :  { %v1230_v46 = vpop.eup %1062 }
 0x196   :  { %v1232_v47 = vpop.eup %1064  ;;  %v478_v48 = vsel %vm408_vm2, %v1230_v46, 0.0 }
 0x197   :  { %479 = vadd.xlane.f32.xlu1 %v478_v48  ;;  %v475_v49 = vsel %vm408_vm2, %v1232_v47, 0.0 }
 0x198   :  { %476 = vadd.xlane.f32.xlu0 %v475_v49 }
 0x20c   :  { %v459_v3 = vpop.xlane.xlu0 %458 }
 0x20d   :  { %1066 = vrcp.f32 %v459_v3 }
 0x210   :  { %v462_v4 = vpop.xlane.xlu1 %461 }
 0x211   :  { %1068 = vrcp.f32 %v462_v4 }
 0x214   :  { %v465_v5 = vpop.xlane.xlu0 %464 }
 0x215   :  { %1070 = vrcp.f32 %v465_v5 }
 0x217   :  { %v1067_v6 = vpop.eup %1066 }
 0x218   :  { %v489_v7 = vmul.f32 %v1067_v6, %v1206_v21  ;;  %v468_v8 = vpop.xlane.xlu1 %467 }
 0x219   :  { %1072 = vrcp.f32 %v468_v8 }
 0x21a   :  { %v497_v9 = vpack.c.bf16 %v489_v7, %v489_v7 }
 0x21b   :  { %v1069_v10 = vpop.eup %1068 }
 0x21c   :  { %v490_v11 = vmul.f32 %v1069_v10, %v1210_v28  ;;  %v474_v12 = vpop.xlane.xlu1 %473  ;;  %1003 = vmatmul.mubr.msk.bf16.vlgmr.msra.gmra.mrb[16].mxu0 %vm513_vm4, %v497_v9 }
 0x21d   :  { %1074 = vrcp.f32 %v474_v12  ;;  %v471_v13 = vpop.xlane.xlu0 %470  ;;  %1013 = vmatpush3.bf16.msra.mxu0 %v611_v55  ;;  %1014 = vmatprep.mubr.msk.bf16.mxu0 %vm1083_vm1, %v1082_v0 }
 0x21e   :  { %1076 = vrcp.f32 %v471_v13  ;;  %v498_v14 = vpack.c.bf16 %v490_v11, %v490_v11  ;;  %1024 = vmatprep.subr.bf16.mxu0 %v1082_v0 }
 0x21f   :  { %v1071_v15 = vpop.eup %1070 }
 0x220   :  { %v491_v16 = vmul.f32 %v1071_v15, %v1214_v32  ;;  %1009 = vmatmul.mubr.msk.bf16.vlgmr.msra.gmra.mrb[16].mxu1 %vm513_vm4, %v498_v14 }
 0x221   :  { %1019 = vmatpush3.bf16.msra.mxu1 %v657_v57  ;;  %1020 = vmatprep.mubr.msk.bf16.mxu1 %vm1083_vm1, %v1082_v0 }
 0x222   :  { %v499_v17 = vpack.c.bf16 %v491_v16, %v491_v16  ;;  %1030 = vmatprep.subr.bf16.mxu1 %v1082_v0 }
 0x223   :  { %v1073_v18 = vpop.eup %1072 }
 0x224   :  { %v492_v19 = vmul.f32 %v1073_v18, %v1218_v38  ;;  %v480_v20 = vpop.xlane.xlu1 %479  ;;  %1015 = vmatmul.mubr.msk.bf16.vlgmr.msra.gmra.mrb[20].mxu0 %vm513_vm4, %v499_v17 }
 0x225   :  { %1078 = vrcp.f32 %v480_v20  ;;  %v477_v21 = vpop.xlane.xlu0 %476  ;;  %1025 = vmatpush3.bf16.msra.mxu0 %v703_v59  ;;  %1026 = vmatprep.mubr.msk.bf16.mxu0 %vm1083_vm1, %v1082_v0 }
 0x226   :  { %1080 = vrcp.f32 %v477_v21  ;;  %v500_v22 = vpack.c.bf16 %v492_v19, %v492_v19  ;;  %1036 = vmatprep.subr.bf16.mxu0 %v1082_v0 }
 0x227   :  { %v1075_v23 = vpop.eup %1074 }
 0x228   :  { %v1077_v24 = vpop.eup %1076  ;;  %1021 = vmatmul.mubr.msk.bf16.vlgmr.msra.gmra.mrb[20].mxu1 %vm513_vm4, %v500_v22  ;;  %v494_v26 = vmul.f32 %v1075_v23, %v1222_v42 }
 0x229   :  { %v493_v25 = vmul.f32 %v1077_v24, %v1224_v43  ;;  %1031 = vmatpush3.bf16.msra.mxu1 %v749_v61  ;;  %1032 = vmatprep.mubr.msk.bf16.mxu1 %vm1083_vm1, %v1082_v0 }
 0x22a   :  { %1042 = vmatprep.subr.bf16.mxu1 %v1082_v0  ;;  %v502_v28 = vpack.c.bf16 %v494_v26, %v494_v26 }
 0x22b   :  { %v501_v27 = vpack.c.bf16 %v493_v25, %v493_v25 }
 0x22d   :  { %1027 = vmatmul.mubr.msk.bf16.vlgmr.msra.gmra.mrb[24].mxu0 %vm513_vm4, %v501_v27 }
 0x22e   :  { %1037 = vmatpush3.bf16.msra.mxu0 %v795_v63  ;;  %1038 = vmatprep.mubr.msk.bf16.mxu0 %vm1083_vm1, %v1082_v0 }
 0x22f   :  { %v1079_v29 = vpop.eup %1078 }
 0x230   :  { %v1081_v30 = vpop.eup %1080  ;;  %1033 = vmatmul.mubr.msk.bf16.vlgmr.msra.gmra.mrb[24].mxu1 %vm513_vm4, %v502_v28  ;;  %v496_v32 = vmul.f32 %v1079_v29, %v1230_v46 }
 0x231   :  { %v495_v31 = vmul.f32 %v1081_v30, %v1232_v47  ;;  %1043 = vmatpush3.bf16.msra.mxu1 %v841_v2  ;;  %1044 = vmatprep.mubr.msk.bf16.mxu1 %vm1083_vm1, %v1082_v0 }
 0x232   :  { %v504_v34 = vpack.c.bf16 %v496_v32, %v496_v32 }
 0x233   :  { %v503_v33 = vpack.c.bf16 %v495_v31, %v495_v31 }
 0x235   :  { %1039 = vmatmul.mubr.msk.bf16.vlgmr.msra.gmra.mrb[28].mxu0 %vm513_vm4, %v503_v33 }
 0x238   :  { %1045 = vmatmul.mubr.msk.bf16.vlgmr.msra.gmra.mrb[28].mxu1 %vm513_vm4, %v504_v34 }
 0x2ef   :  { %v555_v35 = vpop.f32.mrb[16].mxu0 }
 0x2f0   :  { %v883_v36 = vpack.c.bf16 %v555_v35, %v555_v35  ;;  %v1004_v37 = vpop.f32.mrb[17].mxu0 }
 0x2f1   :  { %v558_v38 = vpop.f32.mrb[18].mxu0 }
 0x2f2   :  { %892 = vst.msk [vmem:[%s1339_s3] sm:$0x3] %vm891_vm5, %v883_v36  ;;  %v1005_v39 = vpop.f32.mrb[19].mxu0 }
 0x2f3   :  { %v601_v0 = vpop.f32.mrb[16].mxu1 }
 0x2f4   :  { %v884_v40 = vpack.c.bf16 %v601_v0, %v601_v0  ;;  %v1010_v41 = vpop.f32.mrb[17].mxu1 }
 0x2f5   :  { %v604_v42 = vpop.f32.mrb[18].mxu1 }
 0x2f6   :  { %893 = vst.msk [vmem:[%s1339_s3 + $0x2] sm:$0x3] %vm891_vm5, %v884_v40  ;;  %v1011_v43 = vpop.f32.mrb[19].mxu1 }
 0x2f7   :  { %v647_v44 = vpop.f32.mrb[20].mxu0 }
 0x2f8   :  { %v885_v45 = vpack.c.bf16 %v647_v44, %v647_v44  ;;  %v1016_v46 = vpop.f32.mrb[21].mxu0 }
 0x2f9   :  { %v650_v47 = vpop.f32.mrb[22].mxu0 }
 0x2fa   :  { %894 = vst.msk [vmem:[%s1339_s3 + $0x4] sm:$0x3] %vm891_vm5, %v885_v45  ;;  %v1017_v48 = vpop.f32.mrb[23].mxu0 }
 0x2fb   :  { %v693_v49 = vpop.f32.mrb[20].mxu1 }
 0x2fc   :  { %v886_v50 = vpack.c.bf16 %v693_v49, %v693_v49  ;;  %v1022_v51 = vpop.f32.mrb[21].mxu1 }
 0x2fd   :  { %v696_v52 = vpop.f32.mrb[22].mxu1 }
 0x2fe   :  { %895 = vst.msk [vmem:[%s1339_s3 + $0x6] sm:$0x3] %vm891_vm5, %v886_v50  ;;  %v1023_v53 = vpop.f32.mrb[23].mxu1 }
 0x300   :  { %v739_v54 = vpop.f32.mrb[24].mxu0 }
 0x301   :  { %v887_v55 = vpack.c.bf16 %v739_v54, %v739_v54  ;;  %v1028_v56 = vpop.f32.mrb[25].mxu0 }
 0x302   :  { %v742_v57 = vpop.f32.mrb[26].mxu0 }
 0x303   :  { %896 = vst.msk [vmem:[%s1339_s3 + $0x8] sm:$0x3] %vm891_vm5, %v887_v55  ;;  %v1029_v58 = vpop.f32.mrb[27].mxu0  ;;  %v785_v59 = vpop.f32.mrb[24].mxu1 }
 0x304   :  { %v888_v60 = vpack.c.bf16 %v785_v59, %v785_v59  ;;  %v1034_v61 = vpop.f32.mrb[25].mxu1 }
 0x305   :  { %v788_v62 = vpop.f32.mrb[26].mxu1 }
 0x306   :  { %897 = vst.msk [vmem:[%s1339_s3 + $0xa] sm:$0x3] %vm891_vm5, %v888_v60  ;;  %v1035_v63 = vpop.f32.mrb[27].mxu1 }
 0x308   :  { %v831_v1 = vpop.f32.mrb[28].mxu0 }
 0x309   :  { %v889_v2 = vpack.c.bf16 %v831_v1, %v831_v1  ;;  %v1040_v3 = vpop.f32.mrb[29].mxu0 }
 0x30a   :  { %v834_v4 = vpop.f32.mrb[30].mxu0 }
 0x30b   :  { %898 = vst.msk [vmem:[%s1339_s3 + $0xc] sm:$0x3] %vm891_vm5, %v889_v2  ;;  %v1041_v5 = vpop.f32.mrb[31].mxu0  ;;  %v877_v6 = vpop.f32.mrb[28].mxu1 }
 0x30c   :  { %v890_v7 = vpack.c.bf16 %v877_v6, %v877_v6  ;;  %v1046_v8 = vpop.f32.mrb[29].mxu1 }
 0x30d   :  { %v880_v9 = vpop.f32.mrb[30].mxu1 }
 0x30e   :  { %899 = vst.msk [vmem:[%s1339_s3 + $0xe] sm:$0x3] %vm891_vm5, %v890_v7  ;;  %v1047_v10 = vpop.f32.mrb[31].mxu1 }

// kernel: _lambda_.27
= control target key start
LH: loop header
LB: loop body
LE: loop exit
PB: predicated region body
PF: predicated region fallthrough
CT: control target
= control target key end

     0   :  { %vm22_vm0 = vcmask 261120   ;;  %v126_v0 = vmov 0.0   ;;  %vm127_vm1 = vmmov 0   ;;  %s187_s1 = inlined_call_operand.vmem [shape: bf16[32,32], index: 1, kind: input, shape index: {}]   ;;  %s188_s4 = inlined_call_operand.vmem [shape: f32[8,32], index: 4, kind: output, shape index: {}]   ;;  %s189_s0 = inlined_call_operand.vmem [shape: bf16[8,32], index: 0, kind: input, shape index: {}]   ;;  %s190_s2 = inlined_call_operand.vmem [shape: f32[1,32], index: 2, kind: input, shape index: {}]   ;;  %s191_s3 = inlined_call_operand.vmem [shape: f32[8,32], index: 3, kind: input, shape index: {}]  }
   0x1   :  { %114 = vmatprep.subr.bf16.mxu0 %v126_v0  ;;  %v124_v1 = vld [vmem:[%s187_s1] sm:$0xff]   ;;  %118 = vmatprep.mubr.msk.bf16.mxu0 %vm127_vm1, %v126_v0  ;;  %23 = vst.msk [vmem:[%s188_s4] sm:$0xff] %vm22_vm0, %v126_v0  ;;  %v125_v2 = vld [vmem:[%s187_s1 + $0x8] sm:$0xff]  }
   0x2   :  { %115 = vmatpush3.bf16.msra.mxu0 %v124_v1  ;;  %v25_v3 = vld [vmem:[%s189_s0] sm:$0xf] }
   0x3   :  { %116 = vmatprep.subr.bf16.mxu0 %v126_v0  ;;  %v110_v10 = vld [vmem:[%s190_s2] ss:$0 sm:$0xff] }
   0x4   :  { %v100_v12 = vld [vmem:[%s191_s3] sm:$0xff] }
   0x6   :  { %117 = vmatpush3.bf16.msra.mxu0 %v125_v2 }
   0x8   :  { %v24_v4 = vld [vmem:[%s188_s4] sm:$0xff] }
   0x9   :  { %119 = vmatmul.mubr.msk.bf16.vlgmr.msra.gmra.mrb[0].mxu0 %vm22_vm0, %v25_v3 }
  0xdc   :  { %v80_v5 = vpop.f32.mrb[0].mxu0 }
  0xdd   :  { %v86_v6 = vadd.f32 %v80_v5, %v24_v4  ;;  %v120_v7 = vpop.f32.mrb[1].mxu0 }
  0xde   :  { %v83_v8 = vpop.f32.mrb[2].mxu0 }
  0xdf   :  { %87 = vst.msk [vmem:[%s188_s4] sm:$0xff] %vm22_vm0, %v86_v6  ;;  %v121_v9 = vpop.f32.mrb[3].mxu0 }
  0xe6   :  { %v91_v11 = vld [vmem:[%s188_s4] sm:$0xff] }
  0xe7   :  { %v99_v13 = vadd.f32 %v110_v10, %v91_v11 }
  0xe9   :  { %v101_v14 = vadd.f32 %v100_v12, %v99_v13 }
  0xeb   :  { %102 = vst.msk [vmem:[%s188_s4] sm:$0xff] %vm22_vm0, %v101_v14 }

// kernel: _lambda_.28
= control target key start
LH: loop header
LB: loop body
LE: loop exit
PB: predicated region body
PF: predicated region fallthrough
CT: control target
= control target key end

     0   :  { %vm26_vm0 = vcmask 261120   ;;  %v168_v8 = vmov 0.0   ;;  %vm169_vm1 = vmmov 0   ;;  %vm58_vm2 = vcmask 257024   ;;  %s224_s0 = inlined_call_operand.vmem [shape: f32[8,32], index: 0, kind: input, shape index: {}]   ;;  %s225_s3 = inlined_call_operand.vmem [shape: bf16[32,128], index: 3, kind: input, shape index: {}]   ;;  %s226_s1 = inlined_call_operand.vmem [shape: f32[1,32], index: 1, kind: input, shape index: {}]   ;;  %s227_s2 = inlined_call_operand.vmem [shape: f32[1,32], index: 2, kind: input, shape index: {}]   ;;  %s228_s4 = inlined_call_operand.vmem [shape: f32[1,128], index: 4, kind: input, shape index: {}]   ;;  %s229_s5 = inlined_call_operand.vmem [shape: bf16[8,128], index: 5, kind: output, shape index: {}]  }
   0x1   :  { %v25_v0 = vld [vmem:[%s224_s0] sm:$0xff]  ;;  %152 = vmatprep.subr.bf16.mxu0 %v168_v8  ;;  %v163_v9 = vld [vmem:[%s225_s3 + $0x8] sm:$0xff]   ;;  %156 = vmatprep.mubr.msk.bf16.mxu0 %vm169_vm1, %v168_v8 }
   0x2   :  { %v27_v1 = vsel %vm26_vm0, %v25_v0, 0.0  ;;  %v162_v7 = vld [vmem:[%s225_s3] sm:$0xff]  }
   0x3   :  { %28 = vadd.xlane.f32.xlu0 %v27_v1  ;;  %153 = vmatpush3.bf16.msra.mxu0 %v162_v7  ;;  %v143_v14 = vld [vmem:[%s226_s1] ss:$0 sm:$0xff] }
   0x4   :  { %154 = vmatprep.subr.bf16.mxu0 %v168_v8  ;;  %v144_v16 = vld [vmem:[%s227_s2] ss:$0 sm:$0xff] }
   0x5   :  { %v145_v21 = vld [vmem:[%s228_s4] ss:$0 sm:$0xff] }
   0x7   :  { %155 = vmatpush3.bf16.msra.mxu0 %v163_v9 }
  0x90   :  { %v29_v2 = vpop.xlane.xlu0 %28 }
  0x91   :  { %v31_v3 = vmul.f32 0.03125, %v29_v2 }
  0x93   :  { %v32_v4 = vsub.f32 %v25_v0, %v31_v3 }
  0x95   :  { %v33_v5 = vmul.f32 %v32_v4, %v32_v4 }
  0x97   :  { %v34_v6 = vsel %vm26_vm0, %v33_v5, 0.0 }
  0x98   :  { %35 = vadd.xlane.f32.xlu0 %v34_v6 }
 0x125   :  { %v36_v10 = vpop.xlane.xlu0 %35 }
 0x126   :  { %v37_v11 = vmul.f32 0.03125, %v36_v10 }
 0x128   :  { %v38_v12 = vadd.f32 1e-05, %v37_v11 }
 0x12a   :  { %164 = vrsqrt.f32 %v38_v12 }
 0x134   :  { %v165_v13 = vpop.eup %164 }
 0x135   :  { %v40_v15 = vmul.f32 %v165_v13, %v32_v4 }
 0x137   :  { %v48_v17 = vmul.f32 %v143_v14, %v40_v15 }
 0x139   :  { %v56_v18 = vadd.f32 %v144_v16, %v48_v17 }
 0x13b   :  { %v57_v19 = vpack.c.bf16 %v56_v18, %v56_v18 }
 0x13d   :  { %59 = vst.msk [vmem:[#allocation2] sm:$0xf] %vm58_vm2, %v57_v19 }
 0x144   :  { %v60_v20 = vld [vmem:[#allocation2] sm:$0xf] }
 0x145   :  { %157 = vmatmul.mubr.msk.bf16.vlgmr.msra.gmra.mrb[0].mxu0 %vm26_vm0, %v60_v20 }
 0x218   :  { %v122_v22 = vpop.f32.mrb[0].mxu0 }
 0x219   :  { %v123_v23 = vadd.f32 %v145_v21, %v122_v22  ;;  %v158_v24 = vpop.f32.mrb[1].mxu0 }
 0x21a   :  { %v125_v25 = vpop.f32.mrb[2].mxu0 }
 0x21b   :  { %v128_v26 = vmul.f32 %v123_v23, %v123_v23  ;;  %v159_v27 = vpop.f32.mrb[3].mxu0 }
 0x21d   :  { %v129_v28 = vmul.f32 %v128_v26, %v123_v23 }
 0x21f   :  { %v130_v29 = vmul.f32 0.044715, %v129_v28 }
 0x221   :  { %v131_v30 = vadd.f32 %v130_v29, %v123_v23 }
 0x223   :  { %v132_v31 = vmul.f32 0.7978846, %v131_v30 }
 0x225   :  { %166 = vtanh.f32 %v132_v31 }
 0x22f   :  { %v167_v32 = vpop.eup %166 }
 0x230   :  { %v134_v33 = vadd.f32 1.0, %v167_v32 }
 0x232   :  { %v135_v34 = vmul.f32 0.5, %v134_v33 }
 0x234   :  { %v136_v35 = vmul.f32 %v135_v34, %v123_v23 }
 0x236   :  { %v137_v36 = vpack.c.bf16 %v136_v35, %v136_v35 }
 0x238   :  { %138 = vst [vmem:[%s229_s5] sm:$0xf] %v137_v36 }

// kernel: _lambda_.29
= control target key start
LH: loop header
LB: loop body
LE: loop exit
PB: predicated region body
PF: predicated region fallthrough
CT: control target
= control target key end

     0   :  { %vm22_vm0 = vcmask 261120   ;;  %v200_v0 = vmov 0.0   ;;  %vm201_vm1 = vmmov 0   ;;  %s278_s1 = inlined_call_operand.vmem [shape: bf16[128,32], index: 1, kind: input, shape index: {}]   ;;  %s279_s4 = inlined_call_operand.vmem [shape: f32[8,32], index: 4, kind: output, shape index: {}]   ;;  %s280_s0 = inlined_call_operand.vmem [shape: bf16[8,128], index: 0, kind: input, shape index: {}]   ;;  %s281_s2 = inlined_call_operand.vmem [shape: f32[1,32], index: 2, kind: input, shape index: {}]   ;;  %s282_s3 = inlined_call_operand.vmem [shape: f32[8,32], index: 3, kind: input, shape index: {}]  }
   0x1   :  { %170 = vmatprep.subr.bf16.mxu0 %v200_v0  ;;  %v192_v1 = vld [vmem:[%s278_s1] sm:$0xff]   ;;  %186 = vmatprep.mubr.msk.bf16.mxu0 %vm201_vm1, %v200_v0  ;;  %23 = vst.msk [vmem:[%s279_s4] sm:$0xff] %vm22_vm0, %v200_v0  ;;  %v193_v2 = vld [vmem:[%s278_s1 + $0x8] sm:$0xff]   ;;  %v194_v3 = vld [vmem:[%s278_s1 + $0x10] sm:$0xff]  }
   0x2   :  { %171 = vmatpush3.bf16.msra.mxu0 %v192_v1  ;;  %v195_v4 = vld [vmem:[%s278_s1 + $0x18] sm:$0xff]   ;;  %v196_v5 = vld [vmem:[%s278_s1 + $0x20] sm:$0xff]   ;;  %v197_v6 = vld [vmem:[%s278_s1 + $0x28] sm:$0xff]  }
   0x3   :  { %172 = vmatprep.subr.bf16.mxu0 %v200_v0  ;;  %v198_v7 = vld [vmem:[%s278_s1 + $0x30] sm:$0xff]   ;;  %v199_v8 = vld [vmem:[%s278_s1 + $0x38] sm:$0xff]   ;;  %v25_v9 = vld [vmem:[%s280_s0] sm:$0xf] }
   0x4   :  { %v160_v16 = vld [vmem:[%s281_s2] ss:$0 sm:$0xff] }
   0x5   :  { %v145_v18 = vld [vmem:[%s282_s3] sm:$0xff] }
   0x6   :  { %173 = vmatpush3.bf16.msra.mxu0 %v193_v2 }
   0x7   :  { %174 = vmatprep.subr.bf16.mxu0 %v200_v0 }
   0x8   :  { %v24_v10 = vld [vmem:[%s279_s4] sm:$0xff] }
   0xa   :  { %175 = vmatpush3.bf16.msra.mxu0 %v194_v3 }
   0xb   :  { %176 = vmatprep.subr.bf16.mxu0 %v200_v0 }
   0xe   :  { %177 = vmatpush3.bf16.msra.mxu0 %v195_v4 }
   0xf   :  { %178 = vmatprep.subr.bf16.mxu0 %v200_v0 }
  0x12   :  { %179 = vmatpush3.bf16.msra.mxu0 %v196_v5 }
  0x13   :  { %180 = vmatprep.subr.bf16.mxu0 %v200_v0 }
  0x16   :  { %181 = vmatpush3.bf16.msra.mxu0 %v197_v6 }
  0x17   :  { %182 = vmatprep.subr.bf16.mxu0 %v200_v0 }
  0x1a   :  { %183 = vmatpush3.bf16.msra.mxu0 %v198_v7 }
  0x1b   :  { %184 = vmatprep.subr.bf16.mxu0 %v200_v0 }
  0x1e   :  { %185 = vmatpush3.bf16.msra.mxu0 %v199_v8 }
  0x21   :  { %187 = vmatmul.mubr.bf16.vlgmr.msra.gmra.mrb[0].mxu0 %v25_v9 }
  0xf4   :  { %v124_v11 = vpop.f32.mrb[0].mxu0 }
  0xf5   :  { %v130_v12 = vadd.f32 %v124_v11, %v24_v10  ;;  %v188_v13 = vpop.f32.mrb[1].mxu0 }
  0xf6   :  { %v127_v14 = vpop.f32.mrb[2].mxu0 }
  0xf7   :  { %132 = vst.msk [vmem:[%s279_s4] sm:$0xff] %vm22_vm0, %v130_v12  ;;  %v189_v15 = vpop.f32.mrb[3].mxu0 }
  0xfe   :  { %v136_v17 = vld [vmem:[%s279_s4] sm:$0xff] }
  0xff   :  { %v144_v19 = vadd.f32 %v160_v16, %v136_v17 }
 0x101   :  { %v146_v20 = vadd.f32 %v145_v18, %v144_v19 }
 0x103   :  { %147 = vst.msk [vmem:[%s279_s4] sm:$0xff] %vm22_vm0, %v146_v20 }

// kernel: _lambda_.35
= control target key start
LH: loop header
LB: loop body
LE: loop exit
PB: predicated region body
PF: predicated region fallthrough
CT: control target
= control target key end

     0   :  { %vm26_vm0 = vcmask 259072   ;;  %v157_v8 = vmov 0.0   ;;  %vm158_vm1 = vmmov 0   ;;  %vm58_vm2 = vcmask 256000   ;;  %s213_s0 = inlined_call_operand.vmem [shape: f32[6,32], index: 0, kind: input, shape index: {}]   ;;  %s214_s3 = inlined_call_operand.vmem [shape: bf16[32,32], index: 3, kind: input, shape index: {}]   ;;  %s215_s1 = inlined_call_operand.vmem [shape: f32[1,32], index: 1, kind: input, shape index: {}]   ;;  %s216_s2 = inlined_call_operand.vmem [shape: f32[1,32], index: 2, kind: input, shape index: {}]   ;;  %s217_s4 = inlined_call_operand.vmem [shape: f32[1,32], index: 4, kind: input, shape index: {}]   ;;  %s218_s5 = inlined_call_operand.vmem [shape: f32[6,32], index: 5, kind: output, shape index: {}]  }
   0x1   :  { %v25_v0 = vld [vmem:[%s213_s0] sm:$0x3f]  ;;  %143 = vmatprep.subr.bf16.mxu0 %v157_v8  ;;  %v154_v9 = vld [vmem:[%s214_s3 + $0x8] sm:$0xff]   ;;  %147 = vmatprep.mubr.msk.bf16.mxu0 %vm158_vm1, %v157_v8  ;;  %vm84_vm3 = vcmask 261120  }
   0x2   :  { %v27_v1 = vsel %vm26_vm0, %v25_v0, 0.0  ;;  %v153_v7 = vld [vmem:[%s214_s3] sm:$0xff]  }
   0x3   :  { %28 = vadd.xlane.f32.xlu0 %v27_v1  ;;  %144 = vmatpush3.bf16.msra.mxu0 %v153_v7  ;;  %v134_v14 = vld [vmem:[%s215_s1] ss:$0 sm:$0xff] }
   0x4   :  { %145 = vmatprep.subr.bf16.mxu0 %v157_v8  ;;  %v135_v16 = vld [vmem:[%s216_s2] ss:$0 sm:$0xff] }
   0x5   :  { %v136_v21 = vld [vmem:[%s217_s4] ss:$0 sm:$0xff] }
   0x7   :  { %146 = vmatpush3.bf16.msra.mxu0 %v154_v9 }
  0x90   :  { %v29_v2 = vpop.xlane.xlu0 %28 }
  0x91   :  { %v31_v3 = vmul.f32 0.03125, %v29_v2 }
  0x93   :  { %v32_v4 = vsub.f32 %v25_v0, %v31_v3 }
  0x95   :  { %v33_v5 = vmul.f32 %v32_v4, %v32_v4 }
  0x97   :  { %v34_v6 = vsel %vm26_vm0, %v33_v5, 0.0 }
  0x98   :  { %35 = vadd.xlane.f32.xlu0 %v34_v6 }
 0x125   :  { %v36_v10 = vpop.xlane.xlu0 %35 }
 0x126   :  { %v37_v11 = vmul.f32 0.03125, %v36_v10 }
 0x128   :  { %v38_v12 = vadd.f32 1e-05, %v37_v11 }
 0x12a   :  { %155 = vrsqrt.f32 %v38_v12 }
 0x134   :  { %v156_v13 = vpop.eup %155 }
 0x135   :  { %v40_v15 = vmul.f32 %v156_v13, %v32_v4 }
 0x137   :  { %v48_v17 = vmul.f32 %v134_v14, %v40_v15 }
 0x139   :  { %v56_v18 = vadd.f32 %v135_v16, %v48_v17 }
 0x13b   :  { %v57_v19 = vpack.c.bf16 %v56_v18, %v56_v18 }
 0x13d   :  { %59 = vst.msk [vmem:[#allocation2] sm:$0x7] %vm58_vm2, %v57_v19 }
 0x144   :  { %v60_v20 = vld [vmem:[#allocation2] sm:$0x7] }
 0x145   :  { %148 = vmatmul.mubr.msk.bf16.vlgmr.msra.gmra.mrb[0].mxu0 %vm84_vm3, %v60_v20 }
 0x218   :  { %v122_v22 = vpop.f32.mrb[0].mxu0 }
 0x219   :  { %v123_v23 = vadd.f32 %v136_v21, %v122_v22  ;;  %v149_v24 = vpop.f32.mrb[1].mxu0 }
 0x21a   :  { %v125_v25 = vpop.f32.mrb[2].mxu0 }
 0x21b   :  { %129 = vst.msk [vmem:[%s218_s5] sm:$0x3f] %vm26_vm0, %v123_v23  ;;  %v150_v26 = vpop.f32.mrb[3].mxu0 }

// kernel: _lambda_.36
= control target key start
LH: loop header
LB: loop body
LE: loop exit
PB: predicated region body
PF: predicated region fallthrough
CT: control target
= control target key end

     0   :  { %vm26_vm0 = vcmask 261120   ;;  %vm196_vm1 = vcmask 781312   ;;  %s314_s0 = inlined_call_operand.vmem [shape: f32[32,32], index: 0, kind: input, shape index: {}]   ;;  %s315_s3 = inlined_call_operand.vmem [shape: bf16[32,96], index: 3, kind: input, shape index: {}]   ;;  %s316_s1 = inlined_call_operand.vmem [shape: f32[1,32], index: 1, kind: input, shape index: {}]   ;;  %s317_s2 = inlined_call_operand.vmem [shape: f32[1,32], index: 2, kind: input, shape index: {}]   ;;  %s318_s4 = inlined_call_operand.vmem [shape: bf16[32,96], index: 4, kind: output, shape index: {}]  }
   0x1   :  { %v22_v0 = vld [vmem:[%s314_s0] sm:$0xff]  ;;  %v24_v1 = vld [vmem:[%s314_s0 + $0x10] sm:$0xff]  ;;  %v23_v2 = vld [vmem:[%s314_s0 + $0x8] sm:$0xff] }
   0x2   :  { %v27_v3 = vsel %vm26_vm0, %v22_v0, 0.0  ;;  %v33_v4 = vsel %vm26_vm0, %v24_v1, 0.0  ;;  %v25_v5 = vld [vmem:[%s314_s0 + $0x18] sm:$0xff]  ;;  %v30_v6 = vsel %vm26_vm0, %v23_v2, 0.0  ;;  %v231_v28 = vld [vmem:[%s315_s3] sm:$0xff]   ;;  %v232_v29 = vld [vmem:[%s315_s3 + $0x8] sm:$0xff]  }
   0x3   :  { %28 = vadd.xlane.f32.xlu0 %v27_v3  ;;  %34 = vadd.xlane.f32.xlu1 %v33_v4  ;;  %v36_v7 = vsel %vm26_vm0, %v25_v5, 0.0  ;;  %v205_v44 = vld [vmem:[%s316_s1] ss:$0 sm:$0xff] }
   0x4   :  { %223 = vmatprep.subr.bf16.mxu0 %v231_v28  ;;  %v206_v49 = vld [vmem:[%s317_s2] ss:$0 sm:$0xff] }
   0x5   :  { %224 = vmatpush3.bf16.msra.mxu0 %v231_v28 }
   0x6   :  { %225 = vmatprep.subr.bf16.mxu0 %v232_v29 }
   0x7   :  { %31 = vadd.xlane.f32.xlu0 %v30_v6  ;;  %37 = vadd.xlane.f32.xlu1 %v36_v7 }
   0x9   :  { %226 = vmatpush3.bf16.msra.mxu0 %v232_v29 }
  0x90   :  { %v29_v8 = vpop.xlane.xlu0 %28  ;;  %v35_v9 = vpop.xlane.xlu1 %34 }
  0x91   :  { %v40_v10 = vmul.f32 0.03125, %v29_v8  ;;  %v42_v11 = vmul.f32 0.03125, %v35_v9 }
  0x93   :  { %v44_v12 = vsub.f32 %v22_v0, %v40_v10  ;;  %v46_v13 = vsub.f32 %v24_v1, %v42_v11 }
  0x94   :  { %v32_v14 = vpop.xlane.xlu0 %31  ;;  %v38_v15 = vpop.xlane.xlu1 %37 }
  0x95   :  { %v41_v16 = vmul.f32 0.03125, %v32_v14  ;;  %v43_v17 = vmul.f32 0.03125, %v38_v15  ;;  %v48_v18 = vmul.f32 %v44_v12, %v44_v12  ;;  %v50_v19 = vmul.f32 %v46_v13, %v46_v13 }
  0x97   :  { %v45_v20 = vsub.f32 %v23_v2, %v41_v16  ;;  %v47_v21 = vsub.f32 %v25_v5, %v43_v17  ;;  %v52_v22 = vsel %vm26_vm0, %v48_v18, 0.0  ;;  %v58_v23 = vsel %vm26_vm0, %v50_v19, 0.0 }
  0x98   :  { %53 = vadd.xlane.f32.xlu0 %v52_v22 }
  0x99   :  { %v49_v24 = vmul.f32 %v45_v20, %v45_v20  ;;  %v51_v25 = vmul.f32 %v47_v21, %v47_v21 }
  0x9b   :  { %v55_v26 = vsel %vm26_vm0, %v49_v24, 0.0  ;;  %v61_v27 = vsel %vm26_vm0, %v51_v25, 0.0 }
  0x9c   :  { %59 = vadd.xlane.f32.xlu0 %v58_v23  ;;  %56 = vadd.xlane.f32.xlu1 %v55_v26 }
  0xa0   :  { %62 = vadd.xlane.f32.xlu1 %v61_v27 }
 0x125   :  { %v54_v30 = vpop.xlane.xlu0 %53 }
 0x126   :  { %v64_v31 = vmul.f32 0.03125, %v54_v30 }
 0x128   :  { %v68_v32 = vadd.f32 1e-05, %v64_v31 }
 0x129   :  { %v57_v33 = vpop.xlane.xlu1 %56  ;;  %v60_v34 = vpop.xlane.xlu0 %59 }
 0x12a   :  { %233 = vrsqrt.f32 %v68_v32  ;;  %v65_v35 = vmul.f32 0.03125, %v57_v33  ;;  %v66_v36 = vmul.f32 0.03125, %v60_v34 }
 0x12c   :  { %v69_v37 = vadd.f32 1e-05, %v65_v35  ;;  %v70_v38 = vadd.f32 1e-05, %v66_v36 }
 0x12d   :  { %v63_v39 = vpop.xlane.xlu1 %62 }
 0x12e   :  { %235 = vrsqrt.f32 %v69_v37  ;;  %v67_v40 = vmul.f32 0.03125, %v63_v39 }
 0x12f   :  { %237 = vrsqrt.f32 %v70_v38 }
 0x130   :  { %v71_v41 = vadd.f32 1e-05, %v67_v40 }
 0x132   :  { %239 = vrsqrt.f32 %v71_v41 }
 0x134   :  { %v234_v42 = vpop.eup %233 }
 0x135   :  { %v76_v43 = vmul.f32 %v234_v42, %v44_v12 }
 0x137   :  { %v87_v47 = vmul.f32 %v205_v44, %v76_v43 }
 0x138   :  { %v236_v45 = vpop.eup %235 }
 0x139   :  { %v238_v46 = vpop.eup %237  ;;  %v77_v48 = vmul.f32 %v236_v45, %v45_v20  ;;  %v98_v53 = vadd.f32 %v206_v49, %v87_v47 }
 0x13a   :  { %v78_v50 = vmul.f32 %v238_v46, %v46_v13 }
 0x13b   :  { %v88_v51 = vmul.f32 %v205_v44, %v77_v48 }
 0x13c   :  { %v240_v52 = vpop.eup %239  ;;  %v89_v55 = vmul.f32 %v205_v44, %v78_v50 }
 0x13d   :  { %v99_v54 = vadd.f32 %v206_v49, %v88_v51  ;;  %v79_v56 = vmul.f32 %v240_v52, %v47_v21 }
 0x13e   :  { %v100_v59 = vadd.f32 %v206_v49, %v89_v55 }
 0x13f   :  { %v102_v57 = vpack.c.bf16 %v99_v54, %v98_v53  ;;  %v90_v58 = vmul.f32 %v205_v44, %v79_v56 }
 0x141   :  { %104 = vst.msk [vmem:[#allocation2] sm:$0xff] %vm26_vm0, %v102_v57  ;;  %v101_v60 = vadd.f32 %v206_v49, %v90_v58 }
 0x143   :  { %v103_v61 = vpack.c.bf16 %v101_v60, %v100_v59 }
 0x145   :  { %105 = vst.msk [vmem:[#allocation2 + $0x8] sm:$0xff] %vm26_vm0, %v103_v61 }
 0x148   :  { %v106_v62 = vld [vmem:[#allocation2] sm:$0xff] }
 0x149   :  { %227 = vmatprep.mubr.msk.bf16.mxu0 %vm26_vm0, %v106_v62 }
 0x14c   :  { %v107_v63 = vld [vmem:[#allocation2 + $0x8] sm:$0xff] }
 0x14d   :  { %228 = vmatmul.mubr.msk.bf16.vlgmr.msra.gmra.mrb[0].mxu0 %vm26_vm0, %v107_v63 }
 0x220   :  { %v229_v0 = vpop.f32.mrb[0].mxu0 }
 0x221   :  { %v217_v1 = vpack.c.bf16 %v229_v0, %v229_v0  ;;  %v165_v2 = vpop.f32.mrb[1].mxu0 }
 0x222   :  { %v215_v3 = vpack.c.bf16 %v165_v2, %v165_v2  ;;  %v230_v4 = vpop.f32.mrb[2].mxu0 }
 0x223   :  { %199 = vst.msk [vmem:[%s318_s4 + $0x8] sm:$0xf] %vm196_vm1, %v217_v1  ;;  %v218_v5 = vpack.c.bf16 %v230_v4, %v230_v4  ;;  %v168_v6 = vpop.f32.mrb[3].mxu0 }
 0x224   :  { %197 = vst.msk [vmem:[%s318_s4] sm:$0xf] %vm196_vm1, %v215_v3  ;;  %v216_v7 = vpack.c.bf16 %v168_v6, %v168_v6 }
 0x225   :  { %200 = vst.msk [vmem:[%s318_s4 + $0xc] sm:$0xf] %vm196_vm1, %v218_v5 }
 0x226   :  { %198 = vst.msk [vmem:[%s318_s4 + $0x4] sm:$0xf] %vm196_vm1, %v216_v7 }

// kernel: _lambda_.39
= control target key start
LH: loop header
LB: loop body
LE: loop exit
PB: predicated region body
PF: predicated region fallthrough
CT: control target
= control target key end

     0   :  { %vm29_vm0 = vcmask 261120   ;;  %s381_s0 = inlined_call_operand.vmem [shape: f32[32,32], index: 0, kind: input, shape index: {}]   ;;  %s382_s3 = inlined_call_operand.vmem [shape: bf16[32,128], index: 3, kind: input, shape index: {}]   ;;  %s383_s1 = inlined_call_operand.vmem [shape: f32[1,32], index: 1, kind: input, shape index: {}]   ;;  %s384_s2 = inlined_call_operand.vmem [shape: f32[1,32], index: 2, kind: input, shape index: {}]   ;;  %s385_s4 = inlined_call_operand.vmem [shape: f32[1,128], index: 4, kind: input, shape index: {}]   ;;  %s386_s5 = inlined_call_operand.vmem [shape: bf16[32,128], index: 5, kind: output, shape index: {}]  }
   0x1   :  { %v25_v0 = vld [vmem:[%s381_s0] sm:$0xff]  ;;  %v27_v1 = vld [vmem:[%s381_s0 + $0x10] sm:$0xff]  ;;  %v26_v2 = vld [vmem:[%s381_s0 + $0x8] sm:$0xff] }
   0x2   :  { %v30_v3 = vsel %vm29_vm0, %v25_v0, 0.0  ;;  %v36_v4 = vsel %vm29_vm0, %v27_v1, 0.0  ;;  %v28_v5 = vld [vmem:[%s381_s0 + $0x18] sm:$0xff]  ;;  %v33_v6 = vsel %vm29_vm0, %v26_v2, 0.0  ;;  %v288_v28 = vld [vmem:[%s382_s3] sm:$0xff]   ;;  %v289_v29 = vld [vmem:[%s382_s3 + $0x8] sm:$0xff]  }
   0x3   :  { %31 = vadd.xlane.f32.xlu0 %v30_v3  ;;  %37 = vadd.xlane.f32.xlu1 %v36_v4  ;;  %v39_v7 = vsel %vm29_vm0, %v28_v5, 0.0  ;;  %v250_v44 = vld [vmem:[%s383_s1] ss:$0 sm:$0xff] }
   0x4   :  { %280 = vmatprep.subr.bf16.mxu0 %v288_v28  ;;  %v251_v49 = vld [vmem:[%s384_s2] ss:$0 sm:$0xff] }
   0x5   :  { %281 = vmatpush3.bf16.msra.mxu0 %v288_v28 }
   0x6   :  { %282 = vmatprep.subr.bf16.mxu0 %v289_v29 }
   0x7   :  { %34 = vadd.xlane.f32.xlu0 %v33_v6  ;;  %40 = vadd.xlane.f32.xlu1 %v39_v7 }
   0x9   :  { %283 = vmatpush3.bf16.msra.mxu0 %v289_v29 }
  0x90   :  { %v32_v8 = vpop.xlane.xlu0 %31  ;;  %v38_v9 = vpop.xlane.xlu1 %37 }
  0x91   :  { %v43_v10 = vmul.f32 0.03125, %v32_v8  ;;  %v45_v11 = vmul.f32 0.03125, %v38_v9 }
  0x93   :  { %v47_v12 = vsub.f32 %v25_v0, %v43_v10  ;;  %v49_v13 = vsub.f32 %v27_v1, %v45_v11  ;;  %v252_v0 = vld [vmem:[%s385_s4] ss:$0 sm:$0xff] }
  0x94   :  { %v35_v14 = vpop.xlane.xlu0 %34  ;;  %v41_v15 = vpop.xlane.xlu1 %40 }
  0x95   :  { %v44_v16 = vmul.f32 0.03125, %v35_v14  ;;  %v46_v17 = vmul.f32 0.03125, %v41_v15  ;;  %v51_v18 = vmul.f32 %v47_v12, %v47_v12  ;;  %v53_v19 = vmul.f32 %v49_v13, %v49_v13 }
  0x97   :  { %v48_v20 = vsub.f32 %v26_v2, %v44_v16  ;;  %v50_v21 = vsub.f32 %v28_v5, %v46_v17  ;;  %v55_v22 = vsel %vm29_vm0, %v51_v18, 0.0  ;;  %v61_v23 = vsel %vm29_vm0, %v53_v19, 0.0 }
  0x98   :  { %56 = vadd.xlane.f32.xlu0 %v55_v22 }
  0x99   :  { %v52_v24 = vmul.f32 %v48_v20, %v48_v20  ;;  %v54_v25 = vmul.f32 %v50_v21, %v50_v21 }
  0x9b   :  { %v58_v26 = vsel %vm29_vm0, %v52_v24, 0.0  ;;  %v64_v27 = vsel %vm29_vm0, %v54_v25, 0.0 }
  0x9c   :  { %62 = vadd.xlane.f32.xlu0 %v61_v23  ;;  %59 = vadd.xlane.f32.xlu1 %v58_v26 }
  0xa0   :  { %65 = vadd.xlane.f32.xlu1 %v64_v27 }
 0x125   :  { %v57_v30 = vpop.xlane.xlu0 %56 }
 0x126   :  { %v67_v31 = vmul.f32 0.03125, %v57_v30 }
 0x128   :  { %v71_v32 = vadd.f32 1e-05, %v67_v31 }
 0x129   :  { %v60_v33 = vpop.xlane.xlu1 %59  ;;  %v63_v34 = vpop.xlane.xlu0 %62 }
 0x12a   :  { %290 = vrsqrt.f32 %v71_v32  ;;  %v68_v35 = vmul.f32 0.03125, %v60_v33  ;;  %v69_v36 = vmul.f32 0.03125, %v63_v34 }
 0x12c   :  { %v72_v37 = vadd.f32 1e-05, %v68_v35  ;;  %v73_v38 = vadd.f32 1e-05, %v69_v36 }
 0x12d   :  { %v66_v39 = vpop.xlane.xlu1 %65 }
 0x12e   :  { %292 = vrsqrt.f32 %v72_v37  ;;  %v70_v40 = vmul.f32 0.03125, %v66_v39 }
 0x12f   :  { %294 = vrsqrt.f32 %v73_v38 }
 0x130   :  { %v74_v41 = vadd.f32 1e-05, %v70_v40 }
 0x132   :  { %296 = vrsqrt.f32 %v74_v41 }
 0x134   :  { %v291_v42 = vpop.eup %290 }
 0x135   :  { %v79_v43 = vmul.f32 %v291_v42, %v47_v12 }
 0x137   :  { %v90_v47 = vmul.f32 %v250_v44, %v79_v43 }
 0x138   :  { %v293_v45 = vpop.eup %292 }
 0x139   :  { %v295_v46 = vpop.eup %294  ;;  %v80_v48 = vmul.f32 %v293_v45, %v48_v20  ;;  %v101_v53 = vadd.f32 %v251_v49, %v90_v47 }
 0x13a   :  { %v81_v50 = vmul.f32 %v295_v46, %v49_v13 }
 0x13b   :  { %v91_v51 = vmul.f32 %v250_v44, %v80_v48 }
 0x13c   :  { %v297_v52 = vpop.eup %296  ;;  %v92_v55 = vmul.f32 %v250_v44, %v81_v50 }
 0x13d   :  { %v102_v54 = vadd.f32 %v251_v49, %v91_v51  ;;  %v82_v56 = vmul.f32 %v297_v52, %v50_v21 }
 0x13e   :  { %v103_v59 = vadd.f32 %v251_v49, %v92_v55 }
 0x13f   :  { %v105_v57 = vpack.c.bf16 %v102_v54, %v101_v53  ;;  %v93_v58 = vmul.f32 %v250_v44, %v82_v56 }
 0x141   :  { %107 = vst.msk [vmem:[#allocation2] sm:$0xff] %vm29_vm0, %v105_v57  ;;  %v104_v60 = vadd.f32 %v251_v49, %v93_v58 }
 0x143   :  { %v106_v61 = vpack.c.bf16 %v104_v60, %v103_v59 }
 0x145   :  { %108 = vst.msk [vmem:[#allocation2 + $0x8] sm:$0xff] %vm29_vm0, %v106_v61 }
 0x148   :  { %v109_v62 = vld [vmem:[#allocation2] sm:$0xff] }
 0x149   :  { %284 = vmatprep.mubr.msk.bf16.mxu0 %vm29_vm0, %v109_v62 }
 0x14c   :  { %v110_v63 = vld [vmem:[#allocation2 + $0x8] sm:$0xff] }
 0x14d   :  { %285 = vmatmul.mubr.msk.bf16.vlgmr.msra.gmra.mrb[0].mxu0 %vm29_vm0, %v110_v63 }
 0x220   :  { %v286_v1 = vpop.f32.mrb[0].mxu0 }
 0x221   :  { %v184_v2 = vadd.f32 %v286_v1, %v252_v0  ;;  %v175_v3 = vpop.f32.mrb[1].mxu0 }
 0x222   :  { %v176_v4 = vadd.f32 %v252_v0, %v175_v3  ;;  %v287_v5 = vpop.f32.mrb[2].mxu0 }
 0x223   :  { %v192_v6 = vmul.f32 %v184_v2, %v184_v2  ;;  %v187_v7 = vadd.f32 %v287_v5, %v252_v0  ;;  %v178_v8 = vpop.f32.mrb[3].mxu0 }
 0x224   :  { %v190_v9 = vmul.f32 %v176_v4, %v176_v4  ;;  %v179_v10 = vadd.f32 %v252_v0, %v178_v8 }
 0x225   :  { %v196_v11 = vmul.f32 %v192_v6, %v184_v2  ;;  %v193_v12 = vmul.f32 %v187_v7, %v187_v7 }
 0x226   :  { %v194_v13 = vmul.f32 %v190_v9, %v176_v4  ;;  %v191_v14 = vmul.f32 %v179_v10, %v179_v10 }
 0x227   :  { %v200_v15 = vmul.f32 0.044715, %v196_v11  ;;  %v197_v16 = vmul.f32 %v193_v12, %v187_v7 }
 0x228   :  { %v198_v17 = vmul.f32 0.044715, %v194_v13  ;;  %v195_v18 = vmul.f32 %v191_v14, %v179_v10 }
 0x229   :  { %v204_v19 = vadd.f32 %v200_v15, %v184_v2  ;;  %v201_v20 = vmul.f32 0.044715, %v197_v16 }
 0x22a   :  { %v202_v21 = vadd.f32 %v198_v17, %v176_v4  ;;  %v199_v22 = vmul.f32 0.044715, %v195_v18 }
 0x22b   :  { %v208_v23 = vmul.f32 0.7978846, %v204_v19  ;;  %v205_v24 = vadd.f32 %v201_v20, %v187_v7 }
 0x22c   :  { %v206_v25 = vmul.f32 0.7978846, %v202_v21  ;;  %v203_v26 = vadd.f32 %v199_v22, %v179_v10 }
 0x22d   :  { %298 = vtanh.f32 %v208_v23  ;;  %v209_v27 = vmul.f32 0.7978846, %v205_v24 }
 0x22e   :  { %300 = vtanh.f32 %v206_v25  ;;  %v207_v28 = vmul.f32 0.7978846, %v203_v26 }
 0x22f   :  { %302 = vtanh.f32 %v209_v27 }
 0x230   :  { %304 = vtanh.f32 %v207_v28 }
 0x237   :  { %v299_v29 = vpop.eup %298 }
 0x238   :  { %v301_v30 = vpop.eup %300  ;;  %v216_v31 = vadd.f32 1.0, %v299_v29 }
 0x239   :  { %v303_v32 = vpop.eup %302  ;;  %v214_v33 = vadd.f32 1.0, %v301_v30 }
 0x23a   :  { %v305_v34 = vpop.eup %304  ;;  %v220_v35 = vmul.f32 0.5, %v216_v31  ;;  %v217_v36 = vadd.f32 1.0, %v303_v32 }
 0x23b   :  { %v218_v37 = vmul.f32 0.5, %v214_v33  ;;  %v215_v38 = vadd.f32 1.0, %v305_v34 }
 0x23c   :  { %v221_v39 = vmul.f32 0.5, %v217_v36  ;;  %v224_v41 = vmul.f32 %v220_v35, %v184_v2 }
 0x23d   :  { %v219_v40 = vmul.f32 0.5, %v215_v38  ;;  %v222_v43 = vmul.f32 %v218_v37, %v176_v4 }
 0x23e   :  { %v225_v42 = vmul.f32 %v221_v39, %v187_v7 }
 0x23f   :  { %v223_v44 = vmul.f32 %v219_v40, %v179_v10 }
 0x240   :  { %v273_v45 = vpack.c.bf16 %v225_v42, %v224_v41 }
 0x241   :  { %v268_v46 = vpack.c.bf16 %v223_v44, %v222_v43 }
 0x242   :  { %275 = vst [vmem:[%s386_s5 + $0x8] sm:$0xff] %v273_v45  }
 0x243   :  { %269 = vst [vmem:[%s386_s5] sm:$0xff] %v268_v46  }

// kernel: _lambda_.40
= control target key start
LH: loop header
LB: loop body
LE: loop exit
PB: predicated region body
PF: predicated region fallthrough
CT: control target
= control target key end

     0   :  { %vm22_vm0 = vcmask 261120   ;;  %v255_v1 = vmov 0.0   ;;  %s398_s1 = inlined_call_operand.vmem [shape: bf16[128,32], index: 1, kind: input, shape index: {}]   ;;  %s399_s4 = inlined_call_operand.vmem [shape: f32[32,32], index: 4, kind: output, shape index: {}]   ;;  %s400_s0 = inlined_call_operand.vmem [shape: bf16[32,128], index: 0, kind: input, shape index: {}]   ;;  %s401_s2 = inlined_call_operand.vmem [shape: f32[1,32], index: 2, kind: input, shape index: {}]   ;;  %s402_s3 = inlined_call_operand.vmem [shape: f32[32,32], index: 3, kind: input, shape index: {}]  }
   0x1   :  { %v245_v0 = vld [vmem:[%s398_s1] sm:$0xff]   ;;  %25 = vst.msk [vmem:[%s399_s4 + $0x10] sm:$0xff] %vm22_vm0, %v255_v1  ;;  %23 = vst.msk [vmem:[%s399_s4] sm:$0xff] %vm22_vm0, %v255_v1  ;;  %v246_v2 = vld [vmem:[%s398_s1 + $0x8] sm:$0xff]  }
   0x2   :  { %24 = vst.msk [vmem:[%s399_s4 + $0x8] sm:$0xff] %vm22_vm0, %v255_v1  ;;  %26 = vst.msk [vmem:[%s399_s4 + $0x18] sm:$0xff] %vm22_vm0, %v255_v1  ;;  %224 = vmatprep.subr.bf16.mxu0 %v245_v0  ;;  %v247_v3 = vld [vmem:[%s398_s1 + $0x10] sm:$0xff]   ;;  %v248_v4 = vld [vmem:[%s398_s1 + $0x18] sm:$0xff]  }
   0x3   :  { %225 = vmatpush3.bf16.msra.mxu0 %v245_v0  ;;  %v253_v5 = vld [vmem:[%s400_s0] sm:$0xff]   ;;  %v250_v7 = vld [vmem:[%s398_s1 + $0x28] sm:$0xff]   ;;  %v251_v8 = vld [vmem:[%s398_s1 + $0x30] sm:$0xff]  }
   0x4   :  { %226 = vmatprep.subr.bf16.mxu0 %v246_v2  ;;  %240 = vmatprep.mubr.bf16.mxu0 %v253_v5  ;;  %v249_v6 = vld [vmem:[%s398_s1 + $0x20] sm:$0xff]   ;;  %v252_v9 = vld [vmem:[%s398_s1 + $0x38] sm:$0xff]   ;;  %v254_v10 = vld [vmem:[%s400_s0 + $0x8] sm:$0xff]  }
   0x5   :  { %v213_v23 = vld [vmem:[%s401_s2] ss:$0 sm:$0xff]  ;;  %v189_v25 = vld [vmem:[%s402_s3 + $0x10] sm:$0xff]  ;;  %v190_v31 = vld [vmem:[%s402_s3 + $0x18] sm:$0xff] }
   0x6   :  { %v187_v28 = vld [vmem:[%s402_s3] sm:$0xff]  ;;  %v188_v35 = vld [vmem:[%s402_s3 + $0x8] sm:$0xff] }
   0x7   :  { %227 = vmatpush3.bf16.msra.mxu0 %v246_v2 }
   0x8   :  { %228 = vmatprep.subr.bf16.mxu0 %v247_v3  ;;  %v29_v11 = vld [vmem:[%s399_s4 + $0x10] sm:$0xff]  ;;  %v27_v12 = vld [vmem:[%s399_s4] sm:$0xff] }
   0x9   :  { %v30_v14 = vld [vmem:[%s399_s4 + $0x18] sm:$0xff]  ;;  %v28_v17 = vld [vmem:[%s399_s4 + $0x8] sm:$0xff] }
   0xb   :  { %229 = vmatpush3.bf16.msra.mxu0 %v247_v3 }
   0xc   :  { %230 = vmatprep.subr.bf16.mxu0 %v248_v4 }
   0xf   :  { %231 = vmatpush3.bf16.msra.mxu0 %v248_v4 }
  0x10   :  { %232 = vmatprep.subr.bf16.mxu0 %v249_v6 }
  0x13   :  { %233 = vmatpush3.bf16.msra.mxu0 %v249_v6 }
  0x14   :  { %234 = vmatprep.subr.bf16.mxu0 %v250_v7 }
  0x17   :  { %235 = vmatpush3.bf16.msra.mxu0 %v250_v7 }
  0x18   :  { %236 = vmatprep.subr.bf16.mxu0 %v251_v8 }
  0x1b   :  { %237 = vmatpush3.bf16.msra.mxu0 %v251_v8 }
  0x1c   :  { %238 = vmatprep.subr.bf16.mxu0 %v252_v9 }
  0x1f   :  { %239 = vmatpush3.bf16.msra.mxu0 %v252_v9 }
  0x22   :  { %241 = vmatmul.mubr.bf16.vlgmr.msra.gmra.mrb[0].mxu0 %v254_v10 }
  0xf5   :  { %v242_v13 = vpop.f32.mrb[0].mxu0 }
  0xf6   :  { %v162_v15 = vadd.f32 %v242_v13, %v29_v11  ;;  %v145_v16 = vpop.f32.mrb[1].mxu0 }
  0xf7   :  { %v160_v18 = vadd.f32 %v145_v16, %v27_v12  ;;  %v243_v19 = vpop.f32.mrb[2].mxu0 }
  0xf8   :  { %167 = vst.msk [vmem:[%s399_s4 + $0x10] sm:$0xff] %vm22_vm0, %v162_v15  ;;  %v163_v20 = vadd.f32 %v243_v19, %v30_v14  ;;  %v148_v21 = vpop.f32.mrb[3].mxu0 }
  0xf9   :  { %165 = vst.msk [vmem:[%s399_s4] sm:$0xff] %vm22_vm0, %v160_v18  ;;  %v161_v22 = vadd.f32 %v148_v21, %v28_v17 }
  0xfa   :  { %168 = vst.msk [vmem:[%s399_s4 + $0x18] sm:$0xff] %vm22_vm0, %v163_v20 }
  0xfb   :  { %166 = vst.msk [vmem:[%s399_s4 + $0x8] sm:$0xff] %vm22_vm0, %v161_v22 }
  0xff   :  { %v174_v24 = vld [vmem:[%s399_s4 + $0x10] sm:$0xff] }
 0x100   :  { %v185_v26 = vadd.f32 %v213_v23, %v174_v24  ;;  %v172_v27 = vld [vmem:[%s399_s4] sm:$0xff] }
 0x101   :  { %v183_v29 = vadd.f32 %v213_v23, %v172_v27  ;;  %v175_v30 = vld [vmem:[%s399_s4 + $0x18] sm:$0xff] }
 0x102   :  { %v193_v32 = vadd.f32 %v189_v25, %v185_v26  ;;  %v186_v33 = vadd.f32 %v213_v23, %v175_v30  ;;  %v173_v34 = vld [vmem:[%s399_s4 + $0x8] sm:$0xff] }
 0x103   :  { %v191_v36 = vadd.f32 %v187_v28, %v183_v29  ;;  %v184_v37 = vadd.f32 %v213_v23, %v173_v34 }
 0x104   :  { %197 = vst.msk [vmem:[%s399_s4 + $0x10] sm:$0xff] %vm22_vm0, %v193_v32  ;;  %v194_v38 = vadd.f32 %v190_v31, %v186_v33 }
 0x105   :  { %195 = vst.msk [vmem:[%s399_s4] sm:$0xff] %vm22_vm0, %v191_v36  ;;  %v192_v39 = vadd.f32 %v188_v35, %v184_v37 }
 0x106   :  { %198 = vst.msk [vmem:[%s399_s4 + $0x18] sm:$0xff] %vm22_vm0, %v194_v38 }
 0x107   :  { %196 = vst.msk [vmem:[%s399_s4 + $0x8] sm:$0xff] %vm22_vm0, %v192_v39 }

// kernel: _lambda_.38
= control target key start
LH: loop header
LB: loop body
LE: loop exit
PB: predicated region body
PF: predicated region fallthrough
CT: control target
= control target key end

     0   :  { %vm22_vm0 = vcmask 261120   ;;  %v183_v1 = vmov 0.0   ;;  %s310_s1 = inlined_call_operand.vmem [shape: bf16[32,32], index: 1, kind: input, shape index: {}]   ;;  %s311_s0 = inlined_call_operand.vmem [shape: bf16[32,32], index: 0, kind: input, shape index: {}]   ;;  %s312_s4 = inlined_call_operand.vmem [shape: f32[32,32], index: 4, kind: output, shape index: {}]   ;;  %s313_s2 = inlined_call_operand.vmem [shape: f32[1,32], index: 2, kind: input, shape index: {}]   ;;  %s314_s3 = inlined_call_operand.vmem [shape: f32[32,32], index: 3, kind: input, shape index: {}]  }
   0x1   :  { %v179_v0 = vld [vmem:[%s310_s1] sm:$0xff]   ;;  %25 = vst.msk [vmem:[%s312_s4 + $0x10] sm:$0xff] %vm22_vm0, %v183_v1  ;;  %23 = vst.msk [vmem:[%s312_s4] sm:$0xff] %vm22_vm0, %v183_v1  ;;  %v180_v2 = vld [vmem:[%s310_s1 + $0x8] sm:$0xff]  }
   0x2   :  { %24 = vst.msk [vmem:[%s312_s4 + $0x8] sm:$0xff] %vm22_vm0, %v183_v1  ;;  %26 = vst.msk [vmem:[%s312_s4 + $0x18] sm:$0xff] %vm22_vm0, %v183_v1  ;;  %170 = vmatprep.subr.bf16.mxu0 %v179_v0  ;;  %v181_v3 = vld [vmem:[%s311_s0] sm:$0xff]   ;;  %v182_v4 = vld [vmem:[%s311_s0 + $0x8] sm:$0xff]  }
   0x3   :  { %171 = vmatpush3.bf16.msra.mxu0 %v179_v0  ;;  %174 = vmatprep.mubr.msk.bf16.mxu0 %vm22_vm0, %v181_v3  ;;  %v165_v17 = vld [vmem:[%s313_s2] ss:$0 sm:$0xff]  ;;  %v145_v19 = vld [vmem:[%s314_s3 + $0x10] sm:$0xff]  ;;  %v146_v25 = vld [vmem:[%s314_s3 + $0x18] sm:$0xff] }
   0x4   :  { %172 = vmatprep.subr.bf16.mxu0 %v180_v2  ;;  %v143_v22 = vld [vmem:[%s314_s3] sm:$0xff]  ;;  %v144_v29 = vld [vmem:[%s314_s3 + $0x8] sm:$0xff] }
   0x7   :  { %173 = vmatpush3.bf16.msra.mxu0 %v180_v2 }
   0x8   :  { %v29_v5 = vld [vmem:[%s312_s4 + $0x10] sm:$0xff]  ;;  %v27_v6 = vld [vmem:[%s312_s4] sm:$0xff] }
   0x9   :  { %v30_v8 = vld [vmem:[%s312_s4 + $0x18] sm:$0xff]  ;;  %v28_v11 = vld [vmem:[%s312_s4 + $0x8] sm:$0xff] }
   0xa   :  { %175 = vmatmul.mubr.msk.bf16.vlgmr.msra.gmra.mrb[0].mxu0 %vm22_vm0, %v182_v4 }
  0xdd   :  { %v176_v7 = vpop.f32.mrb[0].mxu0 }
  0xde   :  { %v119_v9 = vadd.f32 %v176_v7, %v29_v5  ;;  %v102_v10 = vpop.f32.mrb[1].mxu0 }
  0xdf   :  { %v117_v12 = vadd.f32 %v102_v10, %v27_v6  ;;  %v177_v13 = vpop.f32.mrb[2].mxu0 }
  0xe0   :  { %123 = vst.msk [vmem:[%s312_s4 + $0x10] sm:$0xff] %vm22_vm0, %v119_v9  ;;  %v120_v14 = vadd.f32 %v177_v13, %v30_v8  ;;  %v105_v15 = vpop.f32.mrb[3].mxu0 }
  0xe1   :  { %121 = vst.msk [vmem:[%s312_s4] sm:$0xff] %vm22_vm0, %v117_v12  ;;  %v118_v16 = vadd.f32 %v105_v15, %v28_v11 }
  0xe2   :  { %124 = vst.msk [vmem:[%s312_s4 + $0x18] sm:$0xff] %vm22_vm0, %v120_v14 }
  0xe3   :  { %122 = vst.msk [vmem:[%s312_s4 + $0x8] sm:$0xff] %vm22_vm0, %v118_v16 }
  0xe7   :  { %v130_v18 = vld [vmem:[%s312_s4 + $0x10] sm:$0xff] }
  0xe8   :  { %v141_v20 = vadd.f32 %v165_v17, %v130_v18  ;;  %v128_v21 = vld [vmem:[%s312_s4] sm:$0xff] }
  0xe9   :  { %v139_v23 = vadd.f32 %v165_v17, %v128_v21  ;;  %v131_v24 = vld [vmem:[%s312_s4 + $0x18] sm:$0xff] }
  0xea   :  { %v149_v26 = vadd.f32 %v145_v19, %v141_v20  ;;  %v142_v27 = vadd.f32 %v165_v17, %v131_v24  ;;  %v129_v28 = vld [vmem:[%s312_s4 + $0x8] sm:$0xff] }
  0xeb   :  { %v147_v30 = vadd.f32 %v143_v22, %v139_v23  ;;  %v140_v31 = vadd.f32 %v165_v17, %v129_v28 }
  0xec   :  { %153 = vst.msk [vmem:[%s312_s4 + $0x10] sm:$0xff] %vm22_vm0, %v149_v26  ;;  %v150_v32 = vadd.f32 %v146_v25, %v142_v27 }
  0xed   :  { %151 = vst.msk [vmem:[%s312_s4] sm:$0xff] %vm22_vm0, %v147_v30  ;;  %v148_v33 = vadd.f32 %v144_v29, %v140_v31 }
  0xee   :  { %154 = vst.msk [vmem:[%s312_s4 + $0x18] sm:$0xff] %vm22_vm0, %v150_v32 }
  0xef   :  { %152 = vst.msk [vmem:[%s312_s4 + $0x8] sm:$0xff] %vm22_vm0, %v148_v33 }

// kernel: _lambda_.46
= control target key start
LH: loop header
LB: loop body
LE: loop exit
PB: predicated region body
PF: predicated region fallthrough
CT: control target
= control target key end

     0   :  { %vm29_vm0 = vcmask 261120   ;;  %vm190_vm1 = vcmask 523264   ;;  %s309_s0 = inlined_call_operand.vmem [shape: f32[32,32], index: 0, kind: input, shape index: {}]   ;;  %s310_s3 = inlined_call_operand.vmem [shape: bf16[32,64], index: 3, kind: input, shape index: {}]   ;;  %s311_s1 = inlined_call_operand.vmem [shape: f32[1,32], index: 1, kind: input, shape index: {}]   ;;  %s312_s2 = inlined_call_operand.vmem [shape: f32[1,32], index: 2, kind: input, shape index: {}]   ;;  %s313_s4 = inlined_call_operand.vmem [shape: f32[1,64], index: 4, kind: input, shape index: {}]   ;;  %s314_s5 = inlined_call_operand.vmem [shape: f32[32,64], index: 5, kind: output, shape index: {}]  }
   0x1   :  { %v25_v0 = vld [vmem:[%s309_s0] sm:$0xff]  ;;  %v27_v1 = vld [vmem:[%s309_s0 + $0x10] sm:$0xff]  ;;  %v26_v2 = vld [vmem:[%s309_s0 + $0x8] sm:$0xff] }
   0x2   :  { %v30_v3 = vsel %vm29_vm0, %v25_v0, 0.0  ;;  %v36_v4 = vsel %vm29_vm0, %v27_v1, 0.0  ;;  %v28_v5 = vld [vmem:[%s309_s0 + $0x18] sm:$0xff]  ;;  %v33_v6 = vsel %vm29_vm0, %v26_v2, 0.0  ;;  %v218_v28 = vld [vmem:[%s310_s3] sm:$0xff]   ;;  %v219_v29 = vld [vmem:[%s310_s3 + $0x8] sm:$0xff]  }
   0x3   :  { %31 = vadd.xlane.f32.xlu0 %v30_v3  ;;  %37 = vadd.xlane.f32.xlu1 %v36_v4  ;;  %v39_v7 = vsel %vm29_vm0, %v28_v5, 0.0  ;;  %v199_v44 = vld [vmem:[%s311_s1] ss:$0 sm:$0xff] }
   0x4   :  { %210 = vmatprep.subr.bf16.mxu0 %v218_v28  ;;  %v200_v49 = vld [vmem:[%s312_s2] ss:$0 sm:$0xff] }
   0x5   :  { %211 = vmatpush3.bf16.msra.mxu0 %v218_v28 }
   0x6   :  { %212 = vmatprep.subr.bf16.mxu0 %v219_v29 }
   0x7   :  { %34 = vadd.xlane.f32.xlu0 %v33_v6  ;;  %40 = vadd.xlane.f32.xlu1 %v39_v7 }
   0x9   :  { %213 = vmatpush3.bf16.msra.mxu0 %v219_v29 }
  0x90   :  { %v32_v8 = vpop.xlane.xlu0 %31  ;;  %v38_v9 = vpop.xlane.xlu1 %37 }
  0x91   :  { %v43_v10 = vmul.f32 0.03125, %v32_v8  ;;  %v45_v11 = vmul.f32 0.03125, %v38_v9 }
  0x93   :  { %v47_v12 = vsub.f32 %v25_v0, %v43_v10  ;;  %v49_v13 = vsub.f32 %v27_v1, %v45_v11  ;;  %v201_v0 = vld [vmem:[%s313_s4] ss:$0 sm:$0xff] }
  0x94   :  { %v35_v14 = vpop.xlane.xlu0 %34  ;;  %v41_v15 = vpop.xlane.xlu1 %40 }
  0x95   :  { %v44_v16 = vmul.f32 0.03125, %v35_v14  ;;  %v46_v17 = vmul.f32 0.03125, %v41_v15  ;;  %v51_v18 = vmul.f32 %v47_v12, %v47_v12  ;;  %v53_v19 = vmul.f32 %v49_v13, %v49_v13 }
  0x97   :  { %v48_v20 = vsub.f32 %v26_v2, %v44_v16  ;;  %v50_v21 = vsub.f32 %v28_v5, %v46_v17  ;;  %v55_v22 = vsel %vm29_vm0, %v51_v18, 0.0  ;;  %v61_v23 = vsel %vm29_vm0, %v53_v19, 0.0 }
  0x98   :  { %56 = vadd.xlane.f32.xlu0 %v55_v22 }
  0x99   :  { %v52_v24 = vmul.f32 %v48_v20, %v48_v20  ;;  %v54_v25 = vmul.f32 %v50_v21, %v50_v21 }
  0x9b   :  { %v58_v26 = vsel %vm29_vm0, %v52_v24, 0.0  ;;  %v64_v27 = vsel %vm29_vm0, %v54_v25, 0.0 }
  0x9c   :  { %62 = vadd.xlane.f32.xlu0 %v61_v23  ;;  %59 = vadd.xlane.f32.xlu1 %v58_v26 }
  0xa0   :  { %65 = vadd.xlane.f32.xlu1 %v64_v27 }
 0x125   :  { %v57_v30 = vpop.xlane.xlu0 %56 }
 0x126   :  { %v67_v31 = vmul.f32 0.03125, %v57_v30 }
 0x128   :  { %v71_v32 = vadd.f32 1e-05, %v67_v31 }
 0x129   :  { %v60_v33 = vpop.xlane.xlu1 %59  ;;  %v63_v34 = vpop.xlane.xlu0 %62 }
 0x12a   :  { %220 = vrsqrt.f32 %v71_v32  ;;  %v68_v35 = vmul.f32 0.03125, %v60_v33  ;;  %v69_v36 = vmul.f32 0.03125, %v63_v34 }
 0x12c   :  { %v72_v37 = vadd.f32 1e-05, %v68_v35  ;;  %v73_v38 = vadd.f32 1e-05, %v69_v36 }
 0x12d   :  { %v66_v39 = vpop.xlane.xlu1 %65 }
 0x12e   :  { %222 = vrsqrt.f32 %v72_v37  ;;  %v70_v40 = vmul.f32 0.03125, %v66_v39 }
 0x12f   :  { %224 = vrsqrt.f32 %v73_v38 }
 0x130   :  { %v74_v41 = vadd.f32 1e-05, %v70_v40 }
 0x132   :  { %226 = vrsqrt.f32 %v74_v41 }
 0x134   :  { %v221_v42 = vpop.eup %220 }
 0x135   :  { %v79_v43 = vmul.f32 %v221_v42, %v47_v12 }
 0x137   :  { %v90_v47 = vmul.f32 %v199_v44, %v79_v43 }
 0x138   :  { %v223_v45 = vpop.eup %222 }
 0x139   :  { %v225_v46 = vpop.eup %224  ;;  %v80_v48 = vmul.f32 %v223_v45, %v48_v20  ;;  %v101_v53 = vadd.f32 %v200_v49, %v90_v47 }
 0x13a   :  { %v81_v50 = vmul.f32 %v225_v46, %v49_v13 }
 0x13b   :  { %v91_v51 = vmul.f32 %v199_v44, %v80_v48 }
 0x13c   :  { %v227_v52 = vpop.eup %226  ;;  %v92_v55 = vmul.f32 %v199_v44, %v81_v50 }
 0x13d   :  { %v102_v54 = vadd.f32 %v200_v49, %v91_v51  ;;  %v82_v56 = vmul.f32 %v227_v52, %v50_v21 }
 0x13e   :  { %v103_v59 = vadd.f32 %v200_v49, %v92_v55 }
 0x13f   :  { %v105_v57 = vpack.c.bf16 %v102_v54, %v101_v53  ;;  %v93_v58 = vmul.f32 %v199_v44, %v82_v56 }
 0x141   :  { %107 = vst.msk [vmem:[#allocation2] sm:$0xff] %vm29_vm0, %v105_v57  ;;  %v104_v60 = vadd.f32 %v200_v49, %v93_v58 }
 0x143   :  { %v106_v61 = vpack.c.bf16 %v104_v60, %v103_v59 }
 0x145   :  { %108 = vst.msk [vmem:[#allocation2 + $0x8] sm:$0xff] %vm29_vm0, %v106_v61 }
 0x148   :  { %v109_v62 = vld [vmem:[#allocation2] sm:$0xff] }
 0x149   :  { %214 = vmatprep.mubr.msk.bf16.mxu0 %vm29_vm0, %v109_v62 }
 0x14c   :  { %v110_v63 = vld [vmem:[#allocation2 + $0x8] sm:$0xff] }
 0x14d   :  { %215 = vmatmul.mubr.msk.bf16.vlgmr.msra.gmra.mrb[0].mxu0 %vm29_vm0, %v110_v63 }
 0x220   :  { %v216_v1 = vpop.f32.mrb[0].mxu0 }
 0x221   :  { %v184_v2 = vadd.f32 %v216_v1, %v201_v0  ;;  %v175_v3 = vpop.f32.mrb[1].mxu0 }
 0x222   :  { %v176_v4 = vadd.f32 %v201_v0, %v175_v3  ;;  %v217_v5 = vpop.f32.mrb[2].mxu0 }
 0x223   :  { %193 = vst.msk [vmem:[%s314_s5 + $0x10] sm:$0xff] %vm190_vm1, %v184_v2  ;;  %v187_v6 = vadd.f32 %v217_v5, %v201_v0  ;;  %v178_v7 = vpop.f32.mrb[3].mxu0 }
 0x224   :  { %191 = vst.msk [vmem:[%s314_s5] sm:$0xff] %vm190_vm1, %v176_v4  ;;  %v179_v8 = vadd.f32 %v201_v0, %v178_v7 }
 0x225   :  { %194 = vst.msk [vmem:[%s314_s5 + $0x18] sm:$0xff] %vm190_vm1, %v187_v6 }
 0x226   :  { %192 = vst.msk [vmem:[%s314_s5 + $0x8] sm:$0xff] %vm190_vm1, %v179_v8 }

// kernel: _lambda_.37
= control target key start
LH: loop header
LB: loop body
LE: loop exit
PB: predicated region body
PF: predicated region fallthrough
CT: control target
= control target key end

     0   :  { %vm114_vm0 = vcmask 64512   ;;  %v4289_v0 = vmov 0.0   ;;  %vm4290_vm1 = vmmov 0   ;;  %vm1655_vm2 = vcmask 27648   ;;  %s5436_s1 = inlined_call_operand.vmem [shape: bf16[8,4,4,8], index: 1, kind: input, shape index: {}]   ;;  %s5437_s0 = inlined_call_operand.vmem [shape: bf16[8,4,4,8], index: 0, kind: input, shape index: {}]   ;;  %s5438_s3 = inlined_call_operand.vmem [shape: f32[4,4,4], index: 3, kind: input, shape index: {}]   ;;  %s5439_s2 = inlined_call_operand.vmem [shape: bf16[8,4,4,8], index: 2, kind: input, shape index: {}]   ;;  %s5440_s4 = inlined_call_operand.vmem [shape: bf16[8,4,4,8], index: 4, kind: output, shape index: {}]  }
   0x1   :  { %3775 = vmatprep.subr.bf16.mxu0 %v4289_v0  ;;  %3781 = vmatprep.subr.bf16.mxu1 %v4289_v0  ;;  %v50_v1 = vld [vmem:[%s5436_s1] sm:$0x3]  ;;  %v51_v2 = vld [vmem:[%s5436_s1 + $0x2] sm:$0x3]  ;;  %v52_v5 = vld [vmem:[%s5436_s1 + $0x4] sm:$0x3] }
   0x2   :  { %v119_v3 = vsel %vm114_vm0, %v50_v1, 0  ;;  %v165_v4 = vsel %vm114_vm0, %v51_v2, 0  ;;  %3777 = vmatprep.mubr.msk.bf16.mxu0 %vm4290_vm1, %v4289_v0  ;;  %3783 = vmatprep.mubr.msk.bf16.mxu1 %vm4290_vm1, %v4289_v0  ;;  %v53_v6 = vld [vmem:[%s5436_s1 + $0x6] sm:$0x3]  ;;  %v18_v7 = vld [vmem:[%s5437_s0] sm:$0x3] }
   0x3   :  { %3776 = vmatpush3.bf16.xpose.msra.mxu0 %v119_v3  ;;  %3782 = vmatpush3.bf16.xpose.msra.mxu1 %v165_v4  ;;  %v19_v8 = vld [vmem:[%s5437_s0 + $0x2] sm:$0x3]  ;;  %v211_v9 = vsel %vm114_vm0, %v52_v5, 0  ;;  %v257_v10 = vsel %vm114_vm0, %v53_v6, 0  ;;  %v54_v11 = vld [vmem:[%s5436_s1 + $0x8] sm:$0x3] }
   0x4   :  { %3787 = vmatprep.subr.bf16.mxu0 %v4289_v0  ;;  %3793 = vmatprep.subr.bf16.mxu1 %v4289_v0  ;;  %v55_v12 = vld [vmem:[%s5436_s1 + $0xa] sm:$0x3]  ;;  %v20_v13 = vld [vmem:[%s5437_s0 + $0x4] sm:$0x3]  ;;  %v21_v14 = vld [vmem:[%s5437_s0 + $0x6] sm:$0x3] }
   0x5   :  { %v303_v15 = vsel %vm114_vm0, %v54_v11, 0  ;;  %v349_v16 = vsel %vm114_vm0, %v55_v12, 0  ;;  %v56_v17 = vld [vmem:[%s5436_s1 + $0xc] sm:$0x3]  ;;  %v57_v18 = vld [vmem:[%s5436_s1 + $0xe] sm:$0x3] }
   0x6   :  { %v22_v19 = vld [vmem:[%s5437_s0 + $0x8] sm:$0x3]  ;;  %v23_v20 = vld [vmem:[%s5437_s0 + $0xa] sm:$0x3]  ;;  %v395_v21 = vsel %vm114_vm0, %v56_v17, 0  ;;  %v441_v22 = vsel %vm114_vm0, %v57_v18, 0 }
   0x7   :  { %v58_v23 = vld [vmem:[%s5436_s1 + $0x10] sm:$0x3]  ;;  %v59_v24 = vld [vmem:[%s5436_s1 + $0x12] sm:$0x3]  ;;  %v24_v25 = vld [vmem:[%s5437_s0 + $0xc] sm:$0x3] }
   0x8   :  { %v25_v26 = vld [vmem:[%s5437_s0 + $0xe] sm:$0x3]  ;;  %v487_v27 = vsel %vm114_vm0, %v58_v23, 0  ;;  %v533_v28 = vsel %vm114_vm0, %v59_v24, 0  ;;  %v60_v29 = vld [vmem:[%s5436_s1 + $0x14] sm:$0x3] }
   0x9   :  { %v61_v30 = vld [vmem:[%s5436_s1 + $0x16] sm:$0x3]  ;;  %v26_v31 = vld [vmem:[%s5437_s0 + $0x10] sm:$0x3]  ;;  %v27_v32 = vld [vmem:[%s5437_s0 + $0x12] sm:$0x3] }
   0xa   :  { %3778 = vmatmul.mubr.msk.bf16.vlgmr.msra.gmra.mrb[0].mxu0 %vm114_vm0, %v18_v7  ;;  %3784 = vmatmul.mubr.msk.bf16.vlgmr.msra.gmra.mrb[0].mxu1 %vm114_vm0, %v19_v8  ;;  %v579_v33 = vsel %vm114_vm0, %v60_v29, 0  ;;  %v625_v34 = vsel %vm114_vm0, %v61_v30, 0  ;;  %v62_v35 = vld [vmem:[%s5436_s1 + $0x18] sm:$0x3]  ;;  %v63_v36 = vld [vmem:[%s5436_s1 + $0x1a] sm:$0x3] }
   0xb   :  { %3788 = vmatpush3.bf16.xpose.msra.mxu0 %v211_v9  ;;  %3794 = vmatpush3.bf16.xpose.msra.mxu1 %v257_v10  ;;  %v28_v37 = vld [vmem:[%s5437_s0 + $0x14] sm:$0x3]  ;;  %v29_v38 = vld [vmem:[%s5437_s0 + $0x16] sm:$0x3]  ;;  %v671_v39 = vsel %vm114_vm0, %v62_v35, 0  ;;  %v717_v40 = vsel %vm114_vm0, %v63_v36, 0 }
   0xc   :  { %3789 = vmatprep.mubr.msk.bf16.mxu0 %vm4290_vm1, %v4289_v0  ;;  %3795 = vmatprep.mubr.msk.bf16.mxu1 %vm4290_vm1, %v4289_v0  ;;  %v64_v41 = vld [vmem:[%s5436_s1 + $0x1c] sm:$0x3]  ;;  %v65_v42 = vld [vmem:[%s5436_s1 + $0x1e] sm:$0x3]  ;;  %v30_v43 = vld [vmem:[%s5437_s0 + $0x18] sm:$0x3] }
   0xd   :  { %3799 = vmatprep.subr.bf16.mxu0 %v4289_v0  ;;  %3805 = vmatprep.subr.bf16.mxu1 %v4289_v0  ;;  %v31_v44 = vld [vmem:[%s5437_s0 + $0x1a] sm:$0x3]  ;;  %v763_v45 = vsel %vm114_vm0, %v64_v41, 0  ;;  %v809_v46 = vsel %vm114_vm0, %v65_v42, 0  ;;  %v66_v47 = vld [vmem:[%s5436_s1 + $0x20] sm:$0x3] }
   0xe   :  { %v67_v48 = vld [vmem:[%s5436_s1 + $0x22] sm:$0x3]  ;;  %v32_v49 = vld [vmem:[%s5437_s0 + $0x1c] sm:$0x3]  ;;  %v33_v50 = vld [vmem:[%s5437_s0 + $0x1e] sm:$0x3] }
   0xf   :  { %v855_v51 = vsel %vm114_vm0, %v66_v47, 0  ;;  %v901_v52 = vsel %vm114_vm0, %v67_v48, 0  ;;  %v68_v53 = vld [vmem:[%s5436_s1 + $0x24] sm:$0x3]  ;;  %v69_v54 = vld [vmem:[%s5436_s1 + $0x26] sm:$0x3] }
  0x10   :  { %v34_v55 = vld [vmem:[%s5437_s0 + $0x20] sm:$0x3]  ;;  %v35_v56 = vld [vmem:[%s5437_s0 + $0x22] sm:$0x3]  ;;  %v947_v57 = vsel %vm114_vm0, %v68_v53, 0  ;;  %v993_v58 = vsel %vm114_vm0, %v69_v54, 0 }
  0x11   :  { %v70_v59 = vld [vmem:[%s5436_s1 + $0x28] sm:$0x3]  ;;  %v71_v60 = vld [vmem:[%s5436_s1 + $0x2a] sm:$0x3]  ;;  %v36_v61 = vld [vmem:[%s5437_s0 + $0x24] sm:$0x3] }
  0x12   :  { %3790 = vmatmul.mubr.msk.bf16.vlgmr.msra.gmra.mrb[4].mxu0 %vm114_vm0, %v20_v13  ;;  %3796 = vmatmul.mubr.msk.bf16.vlgmr.msra.gmra.mrb[4].mxu1 %vm114_vm0, %v21_v14  ;;  %v37_v62 = vld [vmem:[%s5437_s0 + $0x26] sm:$0x3]  ;;  %v1039_v63 = vsel %vm114_vm0, %v70_v59, 0  ;;  %v1085_v1 = vsel %vm114_vm0, %v71_v60, 0  ;;  %v72_v2 = vld [vmem:[%s5436_s1 + $0x2c] sm:$0x3] }
  0x13   :  { %3800 = vmatpush3.bf16.xpose.msra.mxu0 %v303_v15  ;;  %3806 = vmatpush3.bf16.xpose.msra.mxu1 %v349_v16  ;;  %v73_v3 = vld [vmem:[%s5436_s1 + $0x2e] sm:$0x3]  ;;  %v38_v4 = vld [vmem:[%s5437_s0 + $0x28] sm:$0x3]  ;;  %v39_v5 = vld [vmem:[%s5437_s0 + $0x2a] sm:$0x3] }
  0x14   :  { %3801 = vmatprep.mubr.msk.bf16.mxu0 %vm4290_vm1, %v4289_v0  ;;  %3807 = vmatprep.mubr.msk.bf16.mxu1 %vm4290_vm1, %v4289_v0  ;;  %v1131_v6 = vsel %vm114_vm0, %v72_v2, 0  ;;  %v1177_v7 = vsel %vm114_vm0, %v73_v3, 0  ;;  %v74_v8 = vld [vmem:[%s5436_s1 + $0x30] sm:$0x3]  ;;  %v75_v9 = vld [vmem:[%s5436_s1 + $0x32] sm:$0x3] }
  0x15   :  { %3811 = vmatprep.subr.bf16.mxu0 %v4289_v0  ;;  %3817 = vmatprep.subr.bf16.mxu1 %v4289_v0  ;;  %v40_v10 = vld [vmem:[%s5437_s0 + $0x2c] sm:$0x3]  ;;  %v41_v11 = vld [vmem:[%s5437_s0 + $0x2e] sm:$0x3]  ;;  %v1223_v12 = vsel %vm114_vm0, %v74_v8, 0  ;;  %v1269_v13 = vsel %vm114_vm0, %v75_v9, 0 }
  0x16   :  { %v76_v14 = vld [vmem:[%s5436_s1 + $0x34] sm:$0x3]  ;;  %v77_v15 = vld [vmem:[%s5436_s1 + $0x36] sm:$0x3]  ;;  %v42_v16 = vld [vmem:[%s5437_s0 + $0x30] sm:$0x3] }
  0x17   :  { %v43_v17 = vld [vmem:[%s5437_s0 + $0x32] sm:$0x3]  ;;  %v1315_v18 = vsel %vm114_vm0, %v76_v14, 0  ;;  %v45_v23 = vld [vmem:[%s5437_s0 + $0x36] sm:$0x3]  ;;  %vm2044_vm3 = vcmask 1041408  }
  0x18   :  { %v47_v29 = vld [vmem:[%s5437_s0 + $0x3a] sm:$0x3]  ;;  %v4677_v36 = vld [vmem:[%s5438_s3] sm:$0xf]  ;;  %v4702_v53 = vld [vmem:[%s5438_s3 + $0xc] sm:$0xf] }
  0x19   :  { %vm2040_vm4 = vcmask 31744   ;;  %vm3546_vm5 = vcmask 58368  }
  0x1a   :  { %3802 = vmatmul.mubr.msk.bf16.vlgmr.msra.gmra.mrb[8].mxu0 %vm114_vm0, %v22_v19  ;;  %3808 = vmatmul.mubr.msk.bf16.vlgmr.msra.gmra.mrb[8].mxu1 %vm114_vm0, %v23_v20  ;;  %v1361_v19 = vsel %vm114_vm0, %v77_v15, 0  ;;  %v78_v20 = vld [vmem:[%s5436_s1 + $0x38] sm:$0x3] }
  0x1b   :  { %3812 = vmatpush3.bf16.xpose.msra.mxu0 %v395_v21  ;;  %3818 = vmatpush3.bf16.xpose.msra.mxu1 %v441_v22  ;;  %v79_v21 = vld [vmem:[%s5436_s1 + $0x3a] sm:$0x3]  ;;  %v44_v22 = vld [vmem:[%s5437_s0 + $0x34] sm:$0x3]  ;;  %v1407_v24 = vsel %vm114_vm0, %v78_v20, 0 }
  0x1c   :  { %3813 = vmatprep.mubr.msk.bf16.mxu0 %vm4290_vm1, %v4289_v0  ;;  %3819 = vmatprep.mubr.msk.bf16.mxu1 %vm4290_vm1, %v4289_v0 }
  0x1d   :  { %3823 = vmatprep.subr.bf16.mxu0 %v4289_v0  ;;  %3829 = vmatprep.subr.bf16.mxu1 %v4289_v0 }
  0x22   :  { %3814 = vmatmul.mubr.msk.bf16.vlgmr.msra.gmra.mrb[12].mxu0 %vm114_vm0, %v24_v25  ;;  %3820 = vmatmul.mubr.msk.bf16.vlgmr.msra.gmra.mrb[12].mxu1 %vm114_vm0, %v25_v26  ;;  %v1453_v25 = vsel %vm114_vm0, %v79_v21, 0  ;;  %v80_v26 = vld [vmem:[%s5436_s1 + $0x3c] sm:$0x3] }
  0x23   :  { %3824 = vmatpush3.bf16.xpose.msra.mxu0 %v487_v27  ;;  %3830 = vmatpush3.bf16.xpose.msra.mxu1 %v533_v28  ;;  %v81_v27 = vld [vmem:[%s5436_s1 + $0x3e] sm:$0x3]  ;;  %v46_v28 = vld [vmem:[%s5437_s0 + $0x38] sm:$0x3]  ;;  %v1499_v30 = vsel %vm114_vm0, %v80_v26, 0 }
  0x24   :  { %3825 = vmatprep.mubr.msk.bf16.mxu0 %vm4290_vm1, %v4289_v0  ;;  %3831 = vmatprep.mubr.msk.bf16.mxu1 %vm4290_vm1, %v4289_v0 }
  0x25   :  { %3835 = vmatprep.subr.bf16.mxu0 %v4289_v0  ;;  %3841 = vmatprep.subr.bf16.mxu1 %v4289_v0 }
  0x2a   :  { %3826 = vmatmul.mubr.msk.bf16.vlgmr.msra.gmra.mrb[16].mxu0 %vm114_vm0, %v26_v31  ;;  %3832 = vmatmul.mubr.msk.bf16.vlgmr.msra.gmra.mrb[16].mxu1 %vm114_vm0, %v27_v32  ;;  %v1545_v31 = vsel %vm114_vm0, %v81_v27, 0  ;;  %v48_v32 = vld [vmem:[%s5437_s0 + $0x3c] sm:$0x3] }
  0x2b   :  { %3836 = vmatpush3.bf16.xpose.msra.mxu0 %v579_v33  ;;  %3842 = vmatpush3.bf16.xpose.msra.mxu1 %v625_v34  ;;  %v49_v33 = vld [vmem:[%s5437_s0 + $0x3e] sm:$0x3] }
  0x2c   :  { %3837 = vmatprep.mubr.msk.bf16.mxu0 %vm4290_vm1, %v4289_v0  ;;  %3843 = vmatprep.mubr.msk.bf16.mxu1 %vm4290_vm1, %v4289_v0 }
  0x2d   :  { %3847 = vmatprep.subr.bf16.mxu0 %v4289_v0  ;;  %3853 = vmatprep.subr.bf16.mxu1 %v4289_v0 }
  0x32   :  { %3838 = vmatmul.mubr.msk.bf16.vlgmr.msra.gmra.mrb[20].mxu0 %vm114_vm0, %v28_v37  ;;  %3844 = vmatmul.mubr.msk.bf16.vlgmr.msra.gmra.mrb[20].mxu1 %vm114_vm0, %v29_v38  ;;  %v4682_v37 = vld [vmem:[%s5438_s3 + $0x4] sm:$0xf] }
  0x33   :  { %3848 = vmatpush3.bf16.xpose.msra.mxu0 %v671_v39  ;;  %3854 = vmatpush3.bf16.xpose.msra.mxu1 %v717_v40 }
  0x34   :  { %3849 = vmatprep.mubr.msk.bf16.mxu0 %vm4290_vm1, %v4289_v0  ;;  %3855 = vmatprep.mubr.msk.bf16.mxu1 %vm4290_vm1, %v4289_v0 }
  0x35   :  { %3859 = vmatprep.subr.bf16.mxu0 %v4289_v0  ;;  %3865 = vmatprep.subr.bf16.mxu1 %v4289_v0 }
  0x3a   :  { %3850 = vmatmul.mubr.msk.bf16.vlgmr.msra.gmra.mrb[24].mxu0 %vm114_vm0, %v30_v43  ;;  %3856 = vmatmul.mubr.msk.bf16.vlgmr.msra.gmra.mrb[24].mxu1 %vm114_vm0, %v31_v44 }
  0x3b   :  { %3860 = vmatpush3.bf16.xpose.msra.mxu0 %v763_v45  ;;  %3866 = vmatpush3.bf16.xpose.msra.mxu1 %v809_v46 }
  0x3c   :  { %3861 = vmatprep.mubr.msk.bf16.mxu0 %vm4290_vm1, %v4289_v0  ;;  %3867 = vmatprep.mubr.msk.bf16.mxu1 %vm4290_vm1, %v4289_v0 }
  0x3d   :  { %3871 = vmatprep.subr.bf16.mxu0 %v4289_v0  ;;  %3877 = vmatprep.subr.bf16.mxu1 %v4289_v0 }
  0x42   :  { %3862 = vmatmul.mubr.msk.bf16.vlgmr.msra.gmra.mrb[28].mxu0 %vm114_vm0, %v32_v49  ;;  %3868 = vmatmul.mubr.msk.bf16.vlgmr.msra.gmra.mrb[28].mxu1 %vm114_vm0, %v33_v50 }
  0x43   :  { %3872 = vmatpush3.bf16.xpose.msra.mxu0 %v855_v51  ;;  %3878 = vmatpush3.bf16.xpose.msra.mxu1 %v901_v52  ;;  %v4697_v52 = vld [vmem:[%s5438_s3 + $0x8] sm:$0xf] }
  0x44   :  { %3873 = vmatprep.mubr.msk.bf16.mxu0 %vm4290_vm1, %v4289_v0  ;;  %3879 = vmatprep.mubr.msk.bf16.mxu1 %vm4290_vm1, %v4289_v0 }
  0x45   :  { %3883 = vmatprep.subr.bf16.mxu0 %v4289_v0  ;;  %3889 = vmatprep.subr.bf16.mxu1 %v4289_v0 }
  0x4a   :  { %3874 = vmatmul.mubr.msk.bf16.vlgmr.msra.gmra.mrb[32].mxu0 %vm114_vm0, %v34_v55  ;;  %3880 = vmatmul.mubr.msk.bf16.vlgmr.msra.gmra.mrb[32].mxu1 %vm114_vm0, %v35_v56 }
  0x4b   :  { %3884 = vmatpush3.bf16.xpose.msra.mxu0 %v947_v57  ;;  %3890 = vmatpush3.bf16.xpose.msra.mxu1 %v993_v58 }
  0x4c   :  { %3885 = vmatprep.mubr.msk.bf16.mxu0 %vm4290_vm1, %v4289_v0  ;;  %3891 = vmatprep.mubr.msk.bf16.mxu1 %vm4290_vm1, %v4289_v0 }
  0x4d   :  { %3895 = vmatprep.subr.bf16.mxu0 %v4289_v0  ;;  %3901 = vmatprep.subr.bf16.mxu1 %v4289_v0 }
  0x52   :  { %3886 = vmatmul.mubr.msk.bf16.vlgmr.msra.gmra.mrb[36].mxu0 %vm114_vm0, %v36_v61  ;;  %3892 = vmatmul.mubr.msk.bf16.vlgmr.msra.gmra.mrb[36].mxu1 %vm114_vm0, %v37_v62 }
  0x53   :  { %3896 = vmatpush3.bf16.xpose.msra.mxu0 %v1039_v63  ;;  %3902 = vmatpush3.bf16.xpose.msra.mxu1 %v1085_v1 }
  0x54   :  { %3897 = vmatprep.mubr.msk.bf16.mxu0 %vm4290_vm1, %v4289_v0  ;;  %3903 = vmatprep.mubr.msk.bf16.mxu1 %vm4290_vm1, %v4289_v0 }
  0x55   :  { %3907 = vmatprep.subr.bf16.mxu0 %v4289_v0  ;;  %3913 = vmatprep.subr.bf16.mxu1 %v4289_v0 }
  0x5a   :  { %3898 = vmatmul.mubr.msk.bf16.vlgmr.msra.gmra.mrb[40].mxu0 %vm114_vm0, %v38_v4  ;;  %3904 = vmatmul.mubr.msk.bf16.vlgmr.msra.gmra.mrb[40].mxu1 %vm114_vm0, %v39_v5 }
  0x5b   :  { %3908 = vmatpush3.bf16.xpose.msra.mxu0 %v1131_v6  ;;  %3914 = vmatpush3.bf16.xpose.msra.mxu1 %v1177_v7 }
  0x5c   :  { %3909 = vmatprep.mubr.msk.bf16.mxu0 %vm4290_vm1, %v4289_v0  ;;  %3915 = vmatprep.mubr.msk.bf16.mxu1 %vm4290_vm1, %v4289_v0 }
  0x5d   :  { %3919 = vmatprep.subr.bf16.mxu0 %v4289_v0  ;;  %3925 = vmatprep.subr.bf16.mxu1 %v4289_v0 }
  0x62   :  { %3910 = vmatmul.mubr.msk.bf16.vlgmr.msra.gmra.mrb[44].mxu0 %vm114_vm0, %v40_v10  ;;  %3916 = vmatmul.mubr.msk.bf16.vlgmr.msra.gmra.mrb[44].mxu1 %vm114_vm0, %v41_v11 }
  0x63   :  { %3920 = vmatpush3.bf16.xpose.msra.mxu0 %v1223_v12  ;;  %3926 = vmatpush3.bf16.xpose.msra.mxu1 %v1269_v13 }
  0x64   :  { %3921 = vmatprep.mubr.msk.bf16.mxu0 %vm4290_vm1, %v4289_v0  ;;  %3931 = vmatprep.subr.bf16.mxu0 %v4289_v0 }
  0x65   :  { %3927 = vmatprep.mubr.msk.bf16.mxu1 %vm4290_vm1, %v4289_v0  ;;  %3937 = vmatprep.subr.bf16.mxu1 %v4289_v0 }
  0x6a   :  { %3922 = vmatmul.mubr.msk.bf16.vlgmr.msra.gmra.mrb[48].mxu0 %vm114_vm0, %v42_v16  ;;  %3928 = vmatmul.mubr.msk.bf16.vlgmr.msra.gmra.mrb[48].mxu1 %vm114_vm0, %v43_v17 }
  0x6b   :  { %3932 = vmatpush3.bf16.xpose.msra.mxu0 %v1315_v18  ;;  %3938 = vmatpush3.bf16.xpose.msra.mxu1 %v1361_v19 }
  0x6c   :  { %3933 = vmatprep.mubr.msk.bf16.mxu0 %vm4290_vm1, %v4289_v0  ;;  %3943 = vmatprep.subr.bf16.mxu0 %v4289_v0 }
  0x6d   :  { %3939 = vmatprep.mubr.msk.bf16.mxu1 %vm4290_vm1, %v4289_v0  ;;  %3949 = vmatprep.subr.bf16.mxu1 %v4289_v0 }
  0x72   :  { %3934 = vmatmul.mubr.msk.bf16.vlgmr.msra.gmra.mrb[52].mxu0 %vm114_vm0, %v44_v22  ;;  %3940 = vmatmul.mubr.msk.bf16.vlgmr.msra.gmra.mrb[52].mxu1 %vm114_vm0, %v45_v23 }
  0x73   :  { %3944 = vmatpush3.bf16.xpose.msra.mxu0 %v1407_v24  ;;  %3950 = vmatpush3.bf16.xpose.msra.mxu1 %v1453_v25 }
  0x74   :  { %3945 = vmatprep.mubr.msk.bf16.mxu0 %vm4290_vm1, %v4289_v0  ;;  %3955 = vmatprep.subr.bf16.mxu0 %v4289_v0 }
  0x75   :  { %3951 = vmatprep.mubr.msk.bf16.mxu1 %vm4290_vm1, %v4289_v0  ;;  %3961 = vmatprep.subr.bf16.mxu1 %v4289_v0 }
  0x7a   :  { %3946 = vmatmul.mubr.msk.bf16.vlgmr.msra.gmra.mrb[56].mxu0 %vm114_vm0, %v46_v28  ;;  %3952 = vmatmul.mubr.msk.bf16.vlgmr.msra.gmra.mrb[56].mxu1 %vm114_vm0, %v47_v29 }
  0x7b   :  { %3956 = vmatpush3.bf16.xpose.msra.mxu0 %v1499_v30  ;;  %3962 = vmatpush3.bf16.xpose.msra.mxu1 %v1545_v31 }
  0x7c   :  { %3957 = vmatprep.mubr.msk.bf16.mxu0 %vm4290_vm1, %v4289_v0  ;;  %3963 = vmatprep.mubr.msk.bf16.mxu1 %vm4290_vm1, %v4289_v0 }
  0x7d   :  { %3967 = vmatprep.subr.bf16.mxu0 %v4289_v0  ;;  %3973 = vmatprep.subr.bf16.mxu1 %v4289_v0 }
  0x82   :  { %3958 = vmatmul.mubr.msk.bf16.vlgmr.msra.gmra.mrb[60].mxu0 %vm114_vm0, %v48_v32  ;;  %3964 = vmatmul.mubr.msk.bf16.vlgmr.msra.gmra.mrb[60].mxu1 %vm114_vm0, %v49_v33 }
  0x83   :  { %3969 = vmatprep.mubr.msk.bf16.mxu0 %vm4290_vm1, %v4289_v0  ;;  %3975 = vmatprep.mubr.msk.bf16.mxu1 %vm4290_vm1, %v4289_v0 }
  0xdd   :  { %v155_v34 = vpop.f32.mrb[0].mxu0  ;;  %v201_v35 = vpop.f32.mrb[0].mxu1 }
  0xde   :  { %v1587_v38 = vmul.f32 0.35355338, %v155_v34  ;;  %v3779_v39 = vpop.f32.mrb[1].mxu0  ;;  %v1588_v40 = vmul.f32 0.35355338, %v201_v35  ;;  %v3785_v41 = vpop.f32.mrb[1].mxu1 }
  0xdf   :  { %v158_v42 = vpop.f32.mrb[2].mxu0  ;;  %v204_v43 = vpop.f32.mrb[2].mxu1 }
  0xe0   :  { %v3780_v44 = vpop.f32.mrb[3].mxu0  ;;  %v3786_v45 = vpop.f32.mrb[3].mxu1  ;;  %v4685_v46 = vadd.f32 %v4677_v36, %v1587_v38  ;;  %v4688_v47 = vadd.f32 %v4682_v37, %v1588_v40 }
  0xe2   :  { %v1656_v48 = vsel %vm1655_vm2, %v4685_v46, -inf  ;;  %v1659_v49 = vsel %vm1655_vm2, %v4688_v47, -inf }
  0xe3   :  { %1657 = vmax.xlane.f32.xlu0 %v1656_v48 }
  0xe5   :  { %v247_v50 = vpop.f32.mrb[4].mxu0  ;;  %v293_v51 = vpop.f32.mrb[4].mxu1 }
  0xe6   :  { %v1589_v54 = vmul.f32 0.35355338, %v247_v50  ;;  %v3791_v55 = vpop.f32.mrb[5].mxu0  ;;  %v1590_v56 = vmul.f32 0.35355338, %v293_v51  ;;  %v3797_v57 = vpop.f32.mrb[5].mxu1 }
  0xe7   :  { %1660 = vmax.xlane.f32.xlu0 %v1659_v49  ;;  %v250_v58 = vpop.f32.mrb[6].mxu0  ;;  %v296_v59 = vpop.f32.mrb[6].mxu1 }
  0xe8   :  { %v3792_v60 = vpop.f32.mrb[7].mxu0  ;;  %v3798_v61 = vpop.f32.mrb[7].mxu1  ;;  %v4705_v62 = vadd.f32 %v4697_v52, %v1589_v54  ;;  %v4708_v63 = vadd.f32 %v4702_v53, %v1590_v56 }
  0xea   :  { %v1662_v1 = vsel %vm1655_vm2, %v4705_v62, -inf  ;;  %v1665_v2 = vsel %vm1655_vm2, %v4708_v63, -inf }
  0xeb   :  { %1663 = vmax.xlane.f32.xlu1 %v1662_v1 }
  0xed   :  { %v339_v3 = vpop.f32.mrb[8].mxu0  ;;  %v385_v4 = vpop.f32.mrb[8].mxu1 }
  0xee   :  { %v1591_v5 = vmul.f32 0.35355338, %v339_v3  ;;  %v1592_v6 = vmul.f32 0.35355338, %v385_v4  ;;  %v3803_v7 = vpop.f32.mrb[9].mxu0  ;;  %v3809_v8 = vpop.f32.mrb[9].mxu1 }
  0xef   :  { %1666 = vmax.xlane.f32.xlu1 %v1665_v2  ;;  %v342_v9 = vpop.f32.mrb[10].mxu0  ;;  %v388_v10 = vpop.f32.mrb[10].mxu1 }
  0xf0   :  { %v3804_v11 = vpop.f32.mrb[11].mxu0  ;;  %v3810_v12 = vpop.f32.mrb[11].mxu1  ;;  %v4715_v13 = vadd.f32 %v4682_v37, %v1592_v6  ;;  %v4718_v14 = vadd.f32 %v4677_v36, %v1591_v5 }
  0xf2   :  { %v1671_v15 = vsel %vm1655_vm2, %v4715_v13, -inf  ;;  %v1668_v16 = vsel %vm1655_vm2, %v4718_v14, -inf }
  0xf3   :  { %1672 = vmax.xlane.f32.xlu1 %v1671_v15  ;;  %1669 = vmax.xlane.f32.xlu0 %v1668_v16 }
  0xf5   :  { %v431_v17 = vpop.f32.mrb[12].mxu0  ;;  %v477_v18 = vpop.f32.mrb[12].mxu1 }
  0xf6   :  { %v1593_v19 = vmul.f32 0.35355338, %v431_v17  ;;  %v1594_v20 = vmul.f32 0.35355338, %v477_v18  ;;  %v3815_v21 = vpop.f32.mrb[13].mxu0  ;;  %v3821_v22 = vpop.f32.mrb[13].mxu1 }
  0xf7   :  { %v434_v23 = vpop.f32.mrb[14].mxu0  ;;  %v480_v24 = vpop.f32.mrb[14].mxu1 }
  0xf8   :  { %v3816_v25 = vpop.f32.mrb[15].mxu0  ;;  %v3822_v26 = vpop.f32.mrb[15].mxu1  ;;  %v4725_v27 = vadd.f32 %v4702_v53, %v1594_v20  ;;  %v4728_v28 = vadd.f32 %v4697_v52, %v1593_v19 }
  0xfa   :  { %v1677_v29 = vsel %vm1655_vm2, %v4725_v27, -inf  ;;  %v1674_v30 = vsel %vm1655_vm2, %v4728_v28, -inf }
  0xfb   :  { %1678 = vmax.xlane.f32.xlu1 %v1677_v29  ;;  %1675 = vmax.xlane.f32.xlu0 %v1674_v30 }
  0xfd   :  { %v523_v31 = vpop.f32.mrb[16].mxu0  ;;  %v569_v32 = vpop.f32.mrb[16].mxu1 }
  0xfe   :  { %v1595_v33 = vmul.f32 0.35355338, %v523_v31  ;;  %v1596_v34 = vmul.f32 0.35355338, %v569_v32  ;;  %v3827_v35 = vpop.f32.mrb[17].mxu0  ;;  %v3833_v38 = vpop.f32.mrb[17].mxu1 }
  0xff   :  { %v572_v39 = vpop.f32.mrb[18].mxu1  ;;  %v526_v40 = vpop.f32.mrb[18].mxu0 }
 0x100   :  { %v4735_v41 = vadd.f32 %v4682_v37, %v1596_v34  ;;  %v4738_v42 = vadd.f32 %v4677_v36, %v1595_v33  ;;  %v3828_v43 = vpop.f32.mrb[19].mxu0  ;;  %v3834_v44 = vpop.f32.mrb[19].mxu1 }
 0x102   :  { %v1683_v45 = vsel %vm1655_vm2, %v4735_v41, -inf  ;;  %v1680_v48 = vsel %vm1655_vm2, %v4738_v42, -inf }
 0x103   :  { %1684 = vmax.xlane.f32.xlu1 %v1683_v45  ;;  %1681 = vmax.xlane.f32.xlu0 %v1680_v48 }
 0x105   :  { %v615_v49 = vpop.f32.mrb[20].mxu0  ;;  %v661_v50 = vpop.f32.mrb[20].mxu1 }
 0x106   :  { %v1597_v51 = vmul.f32 0.35355338, %v615_v49  ;;  %v1598_v54 = vmul.f32 0.35355338, %v661_v50  ;;  %v3839_v55 = vpop.f32.mrb[21].mxu0  ;;  %v3845_v56 = vpop.f32.mrb[21].mxu1 }
 0x107   :  { %v664_v57 = vpop.f32.mrb[22].mxu1  ;;  %v618_v58 = vpop.f32.mrb[22].mxu0 }
 0x108   :  { %v4745_v59 = vadd.f32 %v4702_v53, %v1598_v54  ;;  %v4748_v60 = vadd.f32 %v4697_v52, %v1597_v51  ;;  %v3840_v61 = vpop.f32.mrb[23].mxu0  ;;  %v3846_v1 = vpop.f32.mrb[23].mxu1 }
 0x10a   :  { %v1689_v2 = vsel %vm1655_vm2, %v4745_v59, -inf  ;;  %v1686_v3 = vsel %vm1655_vm2, %v4748_v60, -inf }
 0x10b   :  { %1690 = vmax.xlane.f32.xlu1 %v1689_v2  ;;  %1687 = vmax.xlane.f32.xlu0 %v1686_v3 }
 0x10d   :  { %v707_v4 = vpop.f32.mrb[24].mxu0  ;;  %v753_v5 = vpop.f32.mrb[24].mxu1 }
 0x10e   :  { %v1599_v6 = vmul.f32 0.35355338, %v707_v4  ;;  %v1600_v7 = vmul.f32 0.35355338, %v753_v5  ;;  %v3851_v8 = vpop.f32.mrb[25].mxu0  ;;  %v3857_v9 = vpop.f32.mrb[25].mxu1 }
 0x10f   :  { %v756_v10 = vpop.f32.mrb[26].mxu1  ;;  %v710_v11 = vpop.f32.mrb[26].mxu0 }
 0x110   :  { %v4755_v12 = vadd.f32 %v4682_v37, %v1600_v7  ;;  %v4758_v15 = vadd.f32 %v4677_v36, %v1599_v6  ;;  %v3852_v16 = vpop.f32.mrb[27].mxu0  ;;  %v3858_v17 = vpop.f32.mrb[27].mxu1 }
 0x112   :  { %v1695_v18 = vsel %vm1655_vm2, %v4755_v12, -inf  ;;  %v1692_v19 = vsel %vm1655_vm2, %v4758_v15, -inf }
 0x113   :  { %1696 = vmax.xlane.f32.xlu1 %v1695_v18  ;;  %1693 = vmax.xlane.f32.xlu0 %v1692_v19 }
 0x115   :  { %v799_v20 = vpop.f32.mrb[28].mxu0  ;;  %v845_v21 = vpop.f32.mrb[28].mxu1 }
 0x116   :  { %v1601_v22 = vmul.f32 0.35355338, %v799_v20  ;;  %v1602_v23 = vmul.f32 0.35355338, %v845_v21  ;;  %v3863_v24 = vpop.f32.mrb[29].mxu0  ;;  %v3869_v25 = vpop.f32.mrb[29].mxu1 }
 0x117   :  { %v848_v26 = vpop.f32.mrb[30].mxu1  ;;  %v802_v29 = vpop.f32.mrb[30].mxu0 }
 0x118   :  { %v4765_v30 = vadd.f32 %v4702_v53, %v1602_v23  ;;  %v4768_v31 = vadd.f32 %v4697_v52, %v1601_v22  ;;  %v3864_v32 = vpop.f32.mrb[31].mxu0  ;;  %v3870_v33 = vpop.f32.mrb[31].mxu1 }
 0x11a   :  { %v1701_v34 = vsel %vm1655_vm2, %v4765_v30, -inf  ;;  %v1698_v35 = vsel %vm1655_vm2, %v4768_v31, -inf }
 0x11b   :  { %1702 = vmax.xlane.f32.xlu1 %v1701_v34  ;;  %1699 = vmax.xlane.f32.xlu0 %v1698_v35 }
 0x11d   :  { %v891_v38 = vpop.f32.mrb[32].mxu0  ;;  %v937_v39 = vpop.f32.mrb[32].mxu1 }
 0x11e   :  { %v1603_v40 = vmul.f32 0.35355338, %v891_v38  ;;  %v1604_v43 = vmul.f32 0.35355338, %v937_v39  ;;  %v3875_v44 = vpop.f32.mrb[33].mxu0  ;;  %v3881_v45 = vpop.f32.mrb[33].mxu1 }
 0x11f   :  { %v940_v48 = vpop.f32.mrb[34].mxu1  ;;  %v894_v49 = vpop.f32.mrb[34].mxu0 }
 0x120   :  { %v4775_v50 = vadd.f32 %v4682_v37, %v1604_v43  ;;  %v4778_v51 = vadd.f32 %v4677_v36, %v1603_v40  ;;  %v3876_v54 = vpop.f32.mrb[35].mxu0  ;;  %v3882_v55 = vpop.f32.mrb[35].mxu1 }
 0x122   :  { %v1707_v56 = vsel %vm1655_vm2, %v4775_v50, -inf  ;;  %v1704_v57 = vsel %vm1655_vm2, %v4778_v51, -inf }
 0x123   :  { %1708 = vmax.xlane.f32.xlu1 %v1707_v56  ;;  %1705 = vmax.xlane.f32.xlu0 %v1704_v57 }
 0x125   :  { %v983_v58 = vpop.f32.mrb[36].mxu0  ;;  %v1029_v61 = vpop.f32.mrb[36].mxu1 }
 0x126   :  { %v1605_v1 = vmul.f32 0.35355338, %v983_v58  ;;  %v1606_v2 = vmul.f32 0.35355338, %v1029_v61  ;;  %v3887_v3 = vpop.f32.mrb[37].mxu0  ;;  %v3893_v4 = vpop.f32.mrb[37].mxu1 }
 0x127   :  { %v1032_v5 = vpop.f32.mrb[38].mxu1  ;;  %v986_v6 = vpop.f32.mrb[38].mxu0 }
 0x128   :  { %v4785_v7 = vadd.f32 %v4702_v53, %v1606_v2  ;;  %v4788_v8 = vadd.f32 %v4697_v52, %v1605_v1  ;;  %v3888_v9 = vpop.f32.mrb[39].mxu0  ;;  %v3894_v10 = vpop.f32.mrb[39].mxu1 }
 0x12a   :  { %v1713_v11 = vsel %vm1655_vm2, %v4785_v7, -inf  ;;  %v1710_v16 = vsel %vm1655_vm2, %v4788_v8, -inf }
 0x12b   :  { %1714 = vmax.xlane.f32.xlu1 %v1713_v11  ;;  %1711 = vmax.xlane.f32.xlu0 %v1710_v16 }
 0x12d   :  { %v1075_v17 = vpop.f32.mrb[40].mxu0  ;;  %v1121_v18 = vpop.f32.mrb[40].mxu1 }
 0x12e   :  { %v1607_v19 = vmul.f32 0.35355338, %v1075_v17  ;;  %v1608_v20 = vmul.f32 0.35355338, %v1121_v18  ;;  %v3899_v21 = vpop.f32.mrb[41].mxu0  ;;  %v3905_v22 = vpop.f32.mrb[41].mxu1 }
 0x12f   :  { %v1124_v23 = vpop.f32.mrb[42].mxu1  ;;  %v1078_v24 = vpop.f32.mrb[42].mxu0 }
 0x130   :  { %v4795_v25 = vadd.f32 %v4682_v37, %v1608_v20  ;;  %v4798_v26 = vadd.f32 %v4677_v36, %v1607_v19  ;;  %v3900_v29 = vpop.f32.mrb[43].mxu0  ;;  %v3906_v32 = vpop.f32.mrb[43].mxu1 }
 0x132   :  { %v1719_v33 = vsel %vm1655_vm2, %v4795_v25, -inf  ;;  %v1716_v34 = vsel %vm1655_vm2, %v4798_v26, -inf }
 0x133   :  { %1720 = vmax.xlane.f32.xlu1 %v1719_v33  ;;  %1717 = vmax.xlane.f32.xlu0 %v1716_v34 }
 0x135   :  { %v1167_v35 = vpop.f32.mrb[44].mxu0  ;;  %v1213_v38 = vpop.f32.mrb[44].mxu1 }
 0x136   :  { %v1609_v39 = vmul.f32 0.35355338, %v1167_v35  ;;  %v1610_v40 = vmul.f32 0.35355338, %v1213_v38  ;;  %v3911_v43 = vpop.f32.mrb[45].mxu0  ;;  %v3917_v44 = vpop.f32.mrb[45].mxu1 }
 0x137   :  { %v1170_v45 = vpop.f32.mrb[46].mxu0  ;;  %v1216_v48 = vpop.f32.mrb[46].mxu1 }
 0x138   :  { %v4805_v49 = vadd.f32 %v4702_v53, %v1610_v40  ;;  %v4808_v54 = vadd.f32 %v4697_v52, %v1609_v39  ;;  %v3918_v55 = vpop.f32.mrb[47].mxu1  ;;  %v3912_v56 = vpop.f32.mrb[47].mxu0 }
 0x13a   :  { %v1725_v57 = vsel %vm1655_vm2, %v4805_v49, -inf  ;;  %v1722_v58 = vsel %vm1655_vm2, %v4808_v54, -inf }
 0x13b   :  { %1726 = vmax.xlane.f32.xlu1 %v1725_v57  ;;  %1723 = vmax.xlane.f32.xlu0 %v1722_v58 }
 0x13d   :  { %v1259_v61 = vpop.f32.mrb[48].mxu0  ;;  %v1305_v1 = vpop.f32.mrb[48].mxu1 }
 0x13e   :  { %v3923_v2 = vpop.f32.mrb[49].mxu0  ;;  %v3929_v3 = vpop.f32.mrb[49].mxu1 }
 0x13f   :  { %v1262_v4 = vpop.f32.mrb[50].mxu0  ;;  %v1308_v5 = vpop.f32.mrb[50].mxu1 }
 0x140   :  { %v3924_v6 = vpop.f32.mrb[51].mxu0  ;;  %v3930_v9 = vpop.f32.mrb[51].mxu1 }
 0x141   :  { %v1611_v9 = vmul.f32 0.35355338, %v1259_v61 }
 0x145   :  { %v1351_v10 = vpop.f32.mrb[52].mxu0  ;;  %v1397_v11 = vpop.f32.mrb[52].mxu1 }
 0x146   :  { %v3935_v16 = vpop.f32.mrb[53].mxu0  ;;  %v3941_v17 = vpop.f32.mrb[53].mxu1 }
 0x147   :  { %v1354_v18 = vpop.f32.mrb[54].mxu0  ;;  %v1400_v19 = vpop.f32.mrb[54].mxu1 }
 0x148   :  { %v3936_v20 = vpop.f32.mrb[55].mxu0  ;;  %v3942_v21 = vpop.f32.mrb[55].mxu1  ;;  %v1612_v19 = vmul.f32 0.35355338, %v1305_v1  ;;  %v1613_v1 = vmul.f32 0.35355338, %v1351_v10 }
 0x149   :  { %v4827_v20 = vadd.f32 %v4677_v36, %v1611_v9 }
 0x14d   :  { %v4814_v22 = vpop.f32.mrb[56].mxu0  ;;  %v4816_v23 = vpop.f32.mrb[56].mxu1 }
 0x14e   :  { %v3947_v24 = vpop.f32.mrb[57].mxu0  ;;  %v3953_v29 = vpop.f32.mrb[57].mxu1 }
 0x14f   :  { %v1446_v32 = vpop.f32.mrb[58].mxu0  ;;  %v1492_v33 = vpop.f32.mrb[58].mxu1 }
 0x150   :  { %v3948_v34 = vpop.f32.mrb[59].mxu0  ;;  %v3954_v35 = vpop.f32.mrb[59].mxu1  ;;  %v4838_v32 = vadd.f32 %v4682_v37, %v1612_v19 }
 0x155   :  { %v4818_v38 = vpop.f32.mrb[60].mxu0  ;;  %v4820_v39 = vpop.f32.mrb[60].mxu1 }
 0x156   :  { %v3959_v40 = vpop.f32.mrb[61].mxu0  ;;  %v3965_v43 = vpop.f32.mrb[61].mxu1 }
 0x157   :  { %v1538_v44 = vpop.f32.mrb[62].mxu0  ;;  %v1584_v45 = vpop.f32.mrb[62].mxu1  ;;  %v4847_v43 = vadd.f32 %v4697_v52, %v1613_v1 }
 0x158   :  { %v3960_v48 = vpop.f32.mrb[63].mxu0  ;;  %v3966_v55 = vpop.f32.mrb[63].mxu1 }
 0x170   :  { %v1658_v56 = vpop.xlane.xlu0 %1657 }
 0x171   :  { %v1752_v57 = vsub.f32 %v4685_v46, %v1658_v56 }
 0x173   :  { %v1784_v58 = vmul.f32 1.442695, %v1752_v57  ;;  %v1615_v57 = vmul.f32 0.35355338, %v4814_v22 }
 0x174   :  { %v1661_v2 = vpop.xlane.xlu0 %1660 }
 0x175   :  { %4161 = vpow2.f32 %v1784_v58  ;;  %v1753_v3 = vsub.f32 %v4688_v47, %v1661_v2  ;;  %v4869_v22 = vadd.f32 %v4677_v36, %v1615_v57 }
 0x177   :  { %v1786_v4 = vmul.f32 1.442695, %v1753_v3  ;;  %v1740_v36 = vsel %vm1655_vm2, %v4869_v22, -inf }
 0x178   :  { %v1664_v5 = vpop.xlane.xlu1 %1663 }
 0x179   :  { %4163 = vpow2.f32 %v1786_v4  ;;  %v1754_v6 = vsub.f32 %v4705_v62, %v1664_v5 }
 0x17b   :  { %v1788_v16 = vmul.f32 1.442695, %v1754_v6 }
 0x17c   :  { %v1667_v17 = vpop.xlane.xlu1 %1666 }
 0x17d   :  { %4165 = vpow2.f32 %v1788_v16  ;;  %v1755_v18 = vsub.f32 %v4708_v63, %v1667_v17  ;;  %v1728_v63 = vsel %vm1655_vm2, %v4827_v20, -inf }
 0x17f   :  { %v4829_v46 = vpop.eup %4161  ;;  %v1790_v21 = vmul.f32 1.442695, %v1755_v18 }
 0x180   :  { %v1673_v24 = vpop.xlane.xlu1 %1672  ;;  %v1670_v47 = vpop.xlane.xlu0 %1669  ;;  %v1848_v29 = vsel %vm1655_vm2, %v4829_v46, 0.0 }
 0x181   :  { %4167 = vpow2.f32 %v1790_v21  ;;  %v1757_v62 = vsub.f32 %v4715_v13, %v1673_v24  ;;  %v1756_v61 = vsub.f32 %v4718_v14, %v1670_v47  ;;  %1849 = vadd.xlane.f32.xlu0 %v1848_v29  ;;  %v1614_v13 = vmul.f32 0.35355338, %v1397_v11 }
 0x182   :  { %v1731_v14 = vsel %vm1655_vm2, %v4838_v32, -inf  ;;  %v1734_v11 = vsel %vm1655_vm2, %v4847_v43, -inf  ;;  %v1617_v29 = vmul.f32 0.35355338, %v4818_v38 }
 0x183   :  { %v4840_v33 = vpop.eup %4163  ;;  %v1794_v34 = vmul.f32 1.442695, %v1757_v62  ;;  %v1792_v35 = vmul.f32 1.442695, %v1756_v61  ;;  %v4859_v58 = vadd.f32 %v4702_v53, %v1614_v13 }
 0x184   :  { %v1851_v40 = vsel %vm1655_vm2, %v4840_v33, 0.0  ;;  %v4891_v61 = vadd.f32 %v4697_v52, %v1617_v29  ;;  %v82_v52 = vld [vmem:[%s5439_s2] sm:$0x3] }
 0x185   :  { %1852 = vadd.xlane.f32.xlu1 %v1851_v40  ;;  %1729 = vmax.xlane.f32.xlu0 %v1728_v63  ;;  %4169 = vpow2.f32 %v1792_v35 }
 0x186   :  { %4171 = vpow2.f32 %v1794_v34 }
 0x187   :  { %v4849_v10 = vpop.eup %4165 }
 0x188   :  { %v1679_v44 = vpop.xlane.xlu1 %1678  ;;  %v1676_v45 = vpop.xlane.xlu0 %1675  ;;  %v1854_v48 = vsel %vm1655_vm2, %v4849_v10, 0.0 }
 0x189   :  { %v1759_v55 = vsub.f32 %v4725_v27, %v1679_v44  ;;  %v1758_v56 = vsub.f32 %v4728_v28, %v1676_v45  ;;  %1732 = vmax.xlane.f32.xlu1 %v1731_v14  ;;  %1855 = vadd.xlane.f32.xlu0 %v1854_v48  ;;  %v1616_v27 = vmul.f32 0.35355338, %v4816_v23  ;;  %v1737_v28 = vsel %vm1655_vm2, %v4859_v58, -inf  ;;  %v83_v45 = vld [vmem:[%s5439_s2 + $0x2] sm:$0x3] }
 0x18a   :  { %v2092_v48 = vsel %vm2044_vm3, %v83_v45, 0 }
 0x18b   :  { %v4861_v2 = vpop.eup %4167  ;;  %v1798_v3 = vmul.f32 1.442695, %v1759_v55  ;;  %v1796_v4 = vmul.f32 1.442695, %v1758_v56  ;;  %v4882_v21 = vadd.f32 %v4682_v37, %v1616_v27  ;;  %3974 = vmatpush3.bf16.msra.mxu1 %v2092_v48 }
 0x18c   :  { %v1857_v5 = vsel %vm1655_vm2, %v4861_v2, 0.0  ;;  %3985 = vmatprep.subr.bf16.mxu1 %v4289_v0 }
 0x18d   :  { %1858 = vadd.xlane.f32.xlu1 %v1857_v5  ;;  %1735 = vmax.xlane.f32.xlu0 %v1734_v11  ;;  %4173 = vpow2.f32 %v1796_v4  ;;  %v1743_v62 = vsel %vm1655_vm2, %v4882_v21, -inf }
 0x18e   :  { %4175 = vpow2.f32 %v1798_v3 }
 0x18f   :  { %v4871_v6 = vpop.eup %4169 }
 0x190   :  { %v1685_v9 = vpop.xlane.xlu1 %1684  ;;  %v1682_v16 = vpop.xlane.xlu0 %1681  ;;  %v1860_v23 = vsel %vm1655_vm2, %v4871_v6, 0.0 }
 0x191   :  { %v4873_v17 = vpop.eup %4171  ;;  %v1761_v18 = vsub.f32 %v4735_v41, %v1685_v9  ;;  %v1760_v19 = vsub.f32 %v4738_v42, %v1682_v16  ;;  %1738 = vmax.xlane.f32.xlu1 %v1737_v28  ;;  %1861 = vadd.xlane.f32.xlu0 %v1860_v23  ;;  %v1618_v42 = vmul.f32 0.35355338, %v4820_v39 }
 0x192   :  { %v1863_v41 = vsel %vm1655_vm2, %v4873_v17, 0.0 }
 0x193   :  { %v1802_v24 = vmul.f32 1.442695, %v1761_v18  ;;  %v1800_v47 = vmul.f32 1.442695, %v1760_v19  ;;  %v4902_v40 = vadd.f32 %v4702_v53, %v1618_v42 }
 0x195   :  { %1864 = vadd.xlane.f32.xlu1 %v1863_v41  ;;  %4177 = vpow2.f32 %v1800_v47  ;;  %1741 = vmax.xlane.f32.xlu0 %v1740_v36  ;;  %v1749_v53 = vsel %vm1655_vm2, %v4902_v40, -inf }
 0x196   :  { %4179 = vpow2.f32 %v1802_v24 }
 0x197   :  { %v4893_v37 = vpop.eup %4173 }
 0x198   :  { %v1691_v63 = vpop.xlane.xlu1 %1690  ;;  %v1688_v1 = vpop.xlane.xlu0 %1687  ;;  %v1866_v39 = vsel %vm1655_vm2, %v4893_v37, 0.0 }
 0x199   :  { %v4895_v38 = vpop.eup %4175  ;;  %v1763_v34 = vsub.f32 %v4745_v59, %v1691_v63  ;;  %v1762_v35 = vsub.f32 %v4748_v60, %v1688_v1  ;;  %1744 = vmax.xlane.f32.xlu1 %v1743_v62  ;;  %1867 = vadd.xlane.f32.xlu0 %v1866_v39  ;;  %v1746_v59 = vsel %vm1655_vm2, %v4891_v61, -inf  ;;  %v2046_v60 = vsel %vm2044_vm3, %v82_v52, 0 }
 0x19a   :  { %v1869_v44 = vsel %vm1655_vm2, %v4895_v38, 0.0  ;;  %3968 = vmatpush3.bf16.msra.mxu0 %v2046_v60 }
 0x19b   :  { %v1806_v13 = vmul.f32 1.442695, %v1763_v34  ;;  %v1804_v14 = vmul.f32 1.442695, %v1762_v35  ;;  %3979 = vmatprep.subr.bf16.mxu0 %v4289_v0 }
 0x19d   :  { %4181 = vpow2.f32 %v1806_v13  ;;  %1870 = vadd.xlane.f32.xlu1 %v1869_v44  ;;  %1747 = vmax.xlane.f32.xlu0 %v1746_v59 }
 0x19e   :  { %4183 = vpow2.f32 %v1804_v14 }
 0x19f   :  { %v4919_v55 = vpop.eup %4177 }
 0x1a0   :  { %v1697_v56 = vpop.xlane.xlu1 %1696  ;;  %v1694_v11 = vpop.xlane.xlu0 %1693  ;;  %v1872_v5 = vsel %vm1655_vm2, %v4919_v55, 0.0 }
 0x1a1   :  { %v4921_v57 = vpop.eup %4179  ;;  %v1765_v3 = vsub.f32 %v4755_v12, %v1697_v56  ;;  %v1764_v4 = vsub.f32 %v4758_v15, %v1694_v11  ;;  %1750 = vmax.xlane.f32.xlu1 %v1749_v53  ;;  %1873 = vadd.xlane.f32.xlu0 %v1872_v5 }
 0x1a2   :  { %v1875_v9 = vsel %vm1655_vm2, %v4921_v57, 0.0 }
 0x1a3   :  { %v1810_v27 = vmul.f32 1.442695, %v1765_v3  ;;  %v1808_v28 = vmul.f32 1.442695, %v1764_v4 }
 0x1a5   :  { %4185 = vpow2.f32 %v1810_v27  ;;  %1876 = vadd.xlane.f32.xlu1 %v1875_v9 }
 0x1a6   :  { %4187 = vpow2.f32 %v1808_v28 }
 0x1a7   :  { %v4930_v16 = vpop.eup %4181 }
 0x1a8   :  { %v4932_v12 = vpop.eup %4183  ;;  %v1703_v15 = vpop.xlane.xlu1 %1702  ;;  %v1881_v19 = vsel %vm1655_vm2, %v4930_v16, 0.0 }
 0x1a9   :  { %v1700_v18 = vpop.xlane.xlu0 %1699  ;;  %v1767_v23 = vsub.f32 %v4765_v30, %v1703_v15  ;;  %1882 = vadd.xlane.f32.xlu1 %v1881_v19  ;;  %v1878_v24 = vsel %vm1655_vm2, %v4932_v12, 0.0 }
 0x1aa   :  { %v1766_v36 = vsub.f32 %v4768_v31, %v1700_v18  ;;  %1879 = vadd.xlane.f32.xlu0 %v1878_v24 }
 0x1ab   :  { %v1814_v47 = vmul.f32 1.442695, %v1767_v23 }
 0x1ac   :  { %v1812_v29 = vmul.f32 1.442695, %v1766_v36 }
 0x1ad   :  { %4189 = vpow2.f32 %v1814_v47 }
 0x1ae   :  { %4191 = vpow2.f32 %v1812_v29 }
 0x1af   :  { %v4940_v41 = vpop.eup %4185 }
 0x1b0   :  { %v4942_v42 = vpop.eup %4187  ;;  %v1709_v62 = vpop.xlane.xlu1 %1708  ;;  %v1887_v30 = vsel %vm1655_vm2, %v4940_v41, 0.0 }
 0x1b1   :  { %v1706_v63 = vpop.xlane.xlu0 %1705  ;;  %v1769_v31 = vsub.f32 %v4775_v50, %v1709_v62  ;;  %1888 = vadd.xlane.f32.xlu1 %v1887_v30  ;;  %v1884_v34 = vsel %vm1655_vm2, %v4942_v42, 0.0 }
 0x1b2   :  { %v1768_v1 = vsub.f32 %v4778_v51, %v1706_v63  ;;  %1885 = vadd.xlane.f32.xlu0 %v1884_v34 }
 0x1b3   :  { %v1818_v35 = vmul.f32 1.442695, %v1769_v31 }
 0x1b4   :  { %v1816_v39 = vmul.f32 1.442695, %v1768_v1 }
 0x1b5   :  { %4193 = vpow2.f32 %v1818_v35 }
 0x1b6   :  { %4195 = vpow2.f32 %v1816_v39 }
 0x1b7   :  { %v4950_v52 = vpop.eup %4189 }
 0x1b8   :  { %v4952_v13 = vpop.eup %4191  ;;  %v1715_v14 = vpop.xlane.xlu1 %1714  ;;  %v1893_v50 = vsel %vm1655_vm2, %v4950_v52, 0.0 }
 0x1b9   :  { %v1712_v59 = vpop.xlane.xlu0 %1711  ;;  %v1771_v51 = vsub.f32 %v4785_v7, %v1715_v14  ;;  %1894 = vadd.xlane.f32.xlu1 %v1893_v50  ;;  %v1890_v44 = vsel %vm1655_vm2, %v4952_v13, 0.0 }
 0x1ba   :  { %v1770_v60 = vsub.f32 %v4788_v8, %v1712_v59  ;;  %1891 = vadd.xlane.f32.xlu0 %v1890_v44 }
 0x1bb   :  { %v1822_v53 = vmul.f32 1.442695, %v1771_v51 }
 0x1bc   :  { %v1820_v45 = vmul.f32 1.442695, %v1770_v60 }
 0x1bd   :  { %4197 = vpow2.f32 %v1822_v53 }
 0x1be   :  { %4199 = vpow2.f32 %v1820_v45  ;;  %v84_v45 = vld [vmem:[%s5439_s2 + $0x4] sm:$0x3] }
 0x1bf   :  { %v4960_v48 = vpop.eup %4193 }
 0x1c0   :  { %v4962_v56 = vpop.eup %4195  ;;  %v1721_v11 = vpop.xlane.xlu1 %1720  ;;  %v1899_v7 = vsel %vm1655_vm2, %v4960_v48, 0.0 }
 0x1c1   :  { %v1718_v3 = vpop.xlane.xlu0 %1717  ;;  %v1773_v8 = vsub.f32 %v4795_v25, %v1721_v11  ;;  %1900 = vadd.xlane.f32.xlu1 %v1899_v7  ;;  %v1896_v5 = vsel %vm1655_vm2, %v4962_v56, 0.0 }
 0x1c2   :  { %v1772_v4 = vsub.f32 %v4798_v26, %v1718_v3  ;;  %1897 = vadd.xlane.f32.xlu0 %v1896_v5 }
 0x1c3   :  { %v1826_v27 = vmul.f32 1.442695, %v1773_v8 }
 0x1c4   :  { %v1824_v28 = vmul.f32 1.442695, %v1772_v4  ;;  %v2138_v4 = vsel %vm2044_vm3, %v84_v45, 0 }
 0x1c5   :  { %4201 = vpow2.f32 %v1826_v27  ;;  %v85_v27 = vld [vmem:[%s5439_s2 + $0x6] sm:$0x3] }
 0x1c6   :  { %4203 = vpow2.f32 %v1824_v28 }
 0x1c7   :  { %v4970_v9 = vpop.eup %4197 }
 0x1c8   :  { %v4972_v15 = vpop.eup %4199  ;;  %v1727_v18 = vpop.xlane.xlu1 %1726  ;;  %v1905_v25 = vsel %vm1655_vm2, %v4970_v9, 0.0 }
 0x1c9   :  { %v1724_v19 = vpop.xlane.xlu0 %1723  ;;  %v1775_v26 = vsub.f32 %v4805_v49, %v1727_v18  ;;  %1906 = vadd.xlane.f32.xlu1 %v1905_v25  ;;  %v1902_v36 = vsel %vm1655_vm2, %v4972_v15, 0.0  ;;  %v2184_v25 = vsel %vm2044_vm3, %v85_v27, 0 }
 0x1ca   :  { %v1774_v23 = vsub.f32 %v4808_v54, %v1724_v19  ;;  %1903 = vadd.xlane.f32.xlu0 %v1902_v36 }
 0x1cb   :  { %v1830_v24 = vmul.f32 1.442695, %v1775_v26 }
 0x1cc   :  { %v1828_v47 = vmul.f32 1.442695, %v1774_v23 }
 0x1cd   :  { %4205 = vpow2.f32 %v1830_v24  ;;  %v86_v24 = vld [vmem:[%s5439_s2 + $0x8] sm:$0x3] }
 0x1ce   :  { %4207 = vpow2.f32 %v1828_v47 }
 0x1cf   :  { %v4980_v29 = vpop.eup %4201 }
 0x1d0   :  { %v4982_v62 = vpop.eup %4203  ;;  %v1911_v63 = vsel %vm1655_vm2, %v4980_v29, 0.0 }
 0x1d1   :  { %1912 = vadd.xlane.f32.xlu1 %v1911_v63  ;;  %v1908_v49 = vsel %vm1655_vm2, %v4982_v62, 0.0 }
 0x1d2   :  { %1909 = vadd.xlane.f32.xlu0 %v1908_v49 }
 0x1d7   :  { %v4988_v54 = vpop.eup %4205 }
 0x1d8   :  { %v4990_v30 = vpop.eup %4207  ;;  %v1917_v31 = vsel %vm1655_vm2, %v4988_v54, 0.0 }
 0x1d9   :  { %1918 = vadd.xlane.f32.xlu1 %v1917_v31  ;;  %v1914_v1 = vsel %vm1655_vm2, %v4990_v30, 0.0 }
 0x1da   :  { %1915 = vadd.xlane.f32.xlu0 %v1914_v1 }
 0x20e   :  { %v1850_v34 = vpop.xlane.xlu0 %1849 }
 0x20f   :  { %4209 = vrcp.f32 %v1850_v34  ;;  %v2230_v34 = vsel %vm2044_vm3, %v86_v24, 0  ;;  %v90_v24 = vld [vmem:[%s5439_s2 + $0x10] sm:$0x3] }
 0x212   :  { %v1853_v35 = vpop.xlane.xlu1 %1852  ;;  %v1730_v39 = vpop.xlane.xlu0 %1729 }
 0x213   :  { %4211 = vrcp.f32 %v1853_v35  ;;  %v1776_v14 = vsub.f32 %v4827_v20, %v1730_v39 }
 0x215   :  { %v1832_v59 = vmul.f32 1.442695, %v1776_v14 }
 0x216   :  { %v1733_v50 = vpop.xlane.xlu1 %1732  ;;  %v1856_v51 = vpop.xlane.xlu0 %1855 }
 0x217   :  { %4213 = vpow2.f32 %v1832_v59  ;;  %v1777_v60 = vsub.f32 %v4838_v32, %v1733_v50 }
 0x218   :  { %4215 = vrcp.f32 %v1856_v51 }
 0x219   :  { %v4210_v44 = vpop.eup %4209  ;;  %v1834_v53 = vmul.f32 1.442695, %v1777_v60 }
 0x21a   :  { %v1976_v11 = vmul.f32 %v4210_v44, %v4829_v46  ;;  %v1859_v3 = vpop.xlane.xlu1 %1858  ;;  %v1736_v7 = vpop.xlane.xlu0 %1735 }
 0x21b   :  { %4217 = vpow2.f32 %v1834_v53  ;;  %v1778_v20 = vsub.f32 %v4847_v43, %v1736_v7 }
 0x21c   :  { %4219 = vrcp.f32 %v1859_v3  ;;  %v2008_v8 = vpack.c.bf16 %v1976_v11, %v1976_v11  ;;  %v88_v3 = vld [vmem:[%s5439_s2 + $0xc] sm:$0x3] }
 0x21d   :  { %v4212_v32 = vpop.eup %4211  ;;  %v1836_v5 = vmul.f32 1.442695, %v1778_v20 }
 0x21e   :  { %v1977_v28 = vmul.f32 %v4212_v32, %v4840_v33  ;;  %v1739_v18 = vpop.xlane.xlu1 %1738  ;;  %3970 = vmatmul.mubr.msk.bf16.vlgmr.msra.gmra.mrb[64].mxu0 %vm2040_vm4, %v2008_v8  ;;  %v1862_v43 = vpop.xlane.xlu0 %1861 }
 0x21f   :  { %4221 = vpow2.f32 %v1836_v5  ;;  %v1779_v46 = vsub.f32 %v4859_v58, %v1739_v18  ;;  %3980 = vmatpush3.bf16.msra.mxu0 %v2138_v4  ;;  %3981 = vmatprep.mubr.msk.bf16.mxu0 %vm4290_vm1, %v4289_v0  ;;  %v2322_v5 = vsel %vm2044_vm3, %v88_v3, 0 }
 0x220   :  { %4223 = vrcp.f32 %v1862_v43  ;;  %v2009_v19 = vpack.c.bf16 %v1977_v28, %v1977_v28  ;;  %3991 = vmatprep.subr.bf16.mxu0 %v4289_v0 }
 0x221   :  { %v5014_v26 = vpop.eup %4213  ;;  %v1838_v33 = vmul.f32 1.442695, %v1779_v46 }
 0x222   :  { %v4216_v23 = vpop.eup %4215  ;;  %3976 = vmatmul.mubr.msk.bf16.vlgmr.msra.gmra.mrb[64].mxu1 %vm2040_vm4, %v2009_v19  ;;  %v1865_v36 = vpop.xlane.xlu1 %1864  ;;  %v1920_v58 = vsel %vm1655_vm2, %v5014_v26, 0.0 }
 0x223   :  { %v1978_v47 = vmul.f32 %v4216_v23, %v4849_v10  ;;  %4225 = vpow2.f32 %v1838_v33  ;;  %v1742_v63 = vpop.xlane.xlu0 %1741  ;;  %1921 = vadd.xlane.f32.xlu0 %v1920_v58  ;;  %3986 = vmatpush3.bf16.msra.mxu1 %v2184_v25 }
 0x224   :  { %4227 = vrcp.f32 %v1865_v36  ;;  %v1780_v49 = vsub.f32 %v4869_v22, %v1742_v63  ;;  %3987 = vmatprep.mubr.msk.bf16.mxu1 %vm4290_vm1, %v4289_v0  ;;  %3997 = vmatprep.subr.bf16.mxu1 %v4289_v0  ;;  %v87_v22 = vld [vmem:[%s5439_s2 + $0xa] sm:$0x3] }
 0x225   :  { %v5027_v31 = vpop.eup %4217  ;;  %v2010_v1 = vpack.c.bf16 %v1978_v47, %v1978_v47  ;;  %v2276_v45 = vsel %vm2044_vm3, %v87_v22, 0 }
 0x226   :  { %v4220_v35 = vpop.eup %4219  ;;  %v1840_v39 = vmul.f32 1.442695, %v1780_v49  ;;  %v1745_v10 = vpop.xlane.xlu1 %1744  ;;  %v1923_v14 = vsel %vm1655_vm2, %v5027_v31, 0.0 }
 0x227   :  { %v1979_v59 = vmul.f32 %v4220_v35, %v4861_v2  ;;  %v1781_v50 = vsub.f32 %v4882_v21, %v1745_v10  ;;  %3982 = vmatmul.mubr.msk.bf16.vlgmr.msra.gmra.mrb[68].mxu0 %vm2040_vm4, %v2010_v1  ;;  %v1868_v51 = vpop.xlane.xlu0 %1867  ;;  %1924 = vadd.xlane.f32.xlu1 %v1923_v14 }
 0x228   :  { %4229 = vpow2.f32 %v1840_v39  ;;  %3992 = vmatpush3.bf16.msra.mxu0 %v2230_v34  ;;  %3993 = vmatprep.mubr.msk.bf16.mxu0 %vm4290_vm1, %v4289_v0  ;;  %v2414_v39 = vsel %vm2044_vm3, %v90_v24, 0 }
 0x229   :  { %v5040_v60 = vpop.eup %4221  ;;  %v1842_v44 = vmul.f32 1.442695, %v1781_v50  ;;  %4231 = vrcp.f32 %v1868_v51  ;;  %v2011_v53 = vpack.c.bf16 %v1979_v59, %v1979_v59  ;;  %4003 = vmatprep.subr.bf16.mxu0 %v4289_v0 }
 0x22a   :  { %v4224_v2 = vpop.eup %4223  ;;  %v1871_v21 = vpop.xlane.xlu1 %1870  ;;  %v1926_v11 = vsel %vm1655_vm2, %v5040_v60, 0.0 }
 0x22b   :  { %v1980_v7 = vmul.f32 %v4224_v2, %v4871_v6  ;;  %4233 = vpow2.f32 %v1842_v44  ;;  %3988 = vmatmul.mubr.msk.bf16.vlgmr.msra.gmra.mrb[68].mxu1 %vm2040_vm4, %v2011_v53  ;;  %v1748_v20 = vpop.xlane.xlu0 %1747  ;;  %1927 = vadd.xlane.f32.xlu0 %v1926_v11  ;;  %v92_v44 = vld [vmem:[%s5439_s2 + $0x14] sm:$0x3] }
 0x22c   :  { %4235 = vrcp.f32 %v1871_v21  ;;  %v1782_v8 = vsub.f32 %v4891_v61, %v1748_v20  ;;  %3998 = vmatpush3.bf16.msra.mxu1 %v2276_v45  ;;  %3999 = vmatprep.mubr.msk.bf16.mxu1 %vm4290_vm1, %v4289_v0  ;;  %v89_v61 = vld [vmem:[%s5439_s2 + $0xe] sm:$0x3] }
 0x22d   :  { %v5054_v4 = vpop.eup %4225  ;;  %v2012_v32 = vpack.c.bf16 %v1980_v7, %v1980_v7  ;;  %4009 = vmatprep.subr.bf16.mxu1 %v4289_v0  ;;  %v2368_v23 = vsel %vm2044_vm3, %v89_v61, 0  ;;  %v2506_v7 = vsel %vm2044_vm3, %v92_v44, 0 }
 0x22e   :  { %v4228_v6 = vpop.eup %4227  ;;  %v1844_v27 = vmul.f32 1.442695, %v1782_v8  ;;  %v1751_v28 = vpop.xlane.xlu1 %1750  ;;  %v1929_v18 = vsel %vm1655_vm2, %v5054_v4, 0.0 }
 0x22f   :  { %v1981_v46 = vmul.f32 %v4228_v6, %v4873_v17  ;;  %v1783_v43 = vsub.f32 %v4902_v40, %v1751_v28  ;;  %3994 = vmatmul.mubr.msk.bf16.vlgmr.msra.gmra.mrb[72].mxu0 %vm2040_vm4, %v2012_v32  ;;  %v1874_v19 = vpop.xlane.xlu0 %1873  ;;  %1930 = vadd.xlane.f32.xlu1 %v1929_v18 }
 0x230   :  { %4237 = vpow2.f32 %v1844_v27  ;;  %4004 = vmatpush3.bf16.msra.mxu0 %v2322_v5  ;;  %4005 = vmatprep.mubr.msk.bf16.mxu0 %vm4290_vm1, %v4289_v0 }
 0x231   :  { %v1846_v25 = vmul.f32 1.442695, %v1783_v43  ;;  %4239 = vrcp.f32 %v1874_v19  ;;  %v2013_v33 = vpack.c.bf16 %v1981_v46, %v1981_v46  ;;  %4015 = vmatprep.subr.bf16.mxu0 %v4289_v0 }
 0x232   :  { %v5070_v36 = vpop.eup %4229  ;;  %v1877_v17 = vpop.xlane.xlu1 %1876 }
 0x233   :  { %v4232_v40 = vpop.eup %4231  ;;  %4241 = vpow2.f32 %v1846_v25  ;;  %4000 = vmatmul.mubr.msk.bf16.vlgmr.msra.gmra.mrb[72].mxu1 %vm2040_vm4, %v2013_v33  ;;  %v1932_v58 = vsel %vm1655_vm2, %v5070_v36, 0.0 }
 0x234   :  { %v1982_v47 = vmul.f32 %v4232_v40, %v4893_v37  ;;  %4243 = vrcp.f32 %v1877_v17  ;;  %1933 = vadd.xlane.f32.xlu0 %v1932_v58  ;;  %4010 = vmatpush3.bf16.msra.mxu1 %v2368_v23  ;;  %v91_v37 = vld [vmem:[%s5439_s2 + $0x12] sm:$0x3]  ;;  %v96_v40 = vld [vmem:[%s5439_s2 + $0x1c] sm:$0x3] }
 0x235   :  { %v5079_v63 = vpop.eup %4233  ;;  %4011 = vmatprep.mubr.msk.bf16.mxu1 %vm4290_vm1, %v4289_v0  ;;  %4021 = vmatprep.subr.bf16.mxu1 %v4289_v0  ;;  %v2460_v59 = vsel %vm2044_vm3, %v91_v37, 0 }
 0x236   :  { %v4236_v49 = vpop.eup %4235  ;;  %v1883_v1 = vpop.xlane.xlu1 %1882  ;;  %v2014_v34 = vpack.c.bf16 %v1982_v47, %v1982_v47  ;;  %v1935_v35 = vsel %vm1655_vm2, %v5079_v63, 0.0 }
 0x237   :  { %v1983_v10 = vmul.f32 %v4236_v49, %v4895_v38  ;;  %4245 = vrcp.f32 %v1883_v1  ;;  %v1880_v14 = vpop.xlane.xlu0 %1879  ;;  %1936 = vadd.xlane.f32.xlu1 %v1935_v35  ;;  %v2690_v49 = vsel %vm2044_vm3, %v96_v40, 0 }
 0x238   :  { %4006 = vmatmul.mubr.msk.bf16.vlgmr.msra.gmra.mrb[76].mxu0 %vm2040_vm4, %v2014_v34  ;;  %4247 = vrcp.f32 %v1880_v14 }
 0x239   :  { %v2015_v22 = vpack.c.bf16 %v1983_v10, %v1983_v10  ;;  %4016 = vmatpush3.bf16.msra.mxu0 %v2414_v39  ;;  %4017 = vmatprep.mubr.msk.bf16.mxu0 %vm4290_vm1, %v4289_v0  ;;  %v98_v10 = vld [vmem:[%s5439_s2 + $0x20] sm:$0x3] }
 0x23a   :  { %v5095_v50 = vpop.eup %4237  ;;  %4027 = vmatprep.subr.bf16.mxu0 %v4289_v0 }
 0x23b   :  { %v4240_v51 = vpop.eup %4239  ;;  %4012 = vmatmul.mubr.msk.bf16.vlgmr.msra.gmra.mrb[76].mxu1 %vm2040_vm4, %v2015_v22  ;;  %v1938_v38 = vsel %vm1655_vm2, %v5095_v50, 0.0 }
 0x23c   :  { %v1984_v53 = vmul.f32 %v4240_v51, %v4919_v55  ;;  %1939 = vadd.xlane.f32.xlu0 %v1938_v38  ;;  %4022 = vmatpush3.bf16.msra.mxu1 %v2460_v59  ;;  %v93_v55 = vld [vmem:[%s5439_s2 + $0x16] sm:$0x3]  ;;  %v2782_v51 = vsel %vm2044_vm3, %v98_v10, 0 }
 0x23d   :  { %v5105_v45 = vpop.eup %4241  ;;  %4023 = vmatprep.mubr.msk.bf16.mxu1 %vm4290_vm1, %v4289_v0  ;;  %4033 = vmatprep.subr.bf16.mxu1 %v4289_v0  ;;  %v2552_v6 = vsel %vm2044_vm3, %v93_v55, 0 }
 0x23e   :  { %v4244_v2 = vpop.eup %4243  ;;  %v1889_v21 = vpop.xlane.xlu1 %1888  ;;  %v2016_v11 = vpack.c.bf16 %v1984_v53, %v1984_v53  ;;  %v1941_v3 = vsel %vm1655_vm2, %v5105_v45, 0.0 }
 0x23f   :  { %v1985_v20 = vmul.f32 %v4244_v2, %v4921_v57  ;;  %4249 = vrcp.f32 %v1889_v21  ;;  %v1886_v8 = vpop.xlane.xlu0 %1885  ;;  %1942 = vadd.xlane.f32.xlu1 %v1941_v3  ;;  %v94_v57 = vld [vmem:[%s5439_s2 + $0x18] sm:$0x3] }
 0x240   :  { %4018 = vmatmul.mubr.msk.bf16.vlgmr.msra.gmra.mrb[80].mxu0 %vm2040_vm4, %v2016_v11  ;;  %4251 = vrcp.f32 %v1886_v8  ;;  %v2598_v43 = vsel %vm2044_vm3, %v94_v57, 0  ;;  %v100_v11 = vld [vmem:[%s5439_s2 + $0x24] sm:$0x3] }
 0x241   :  { %v4246_v32 = vpop.eup %4245  ;;  %v2017_v5 = vpack.c.bf16 %v1985_v20, %v1985_v20  ;;  %4028 = vmatpush3.bf16.msra.mxu0 %v2506_v7  ;;  %4029 = vmatprep.mubr.msk.bf16.mxu0 %vm4290_vm1, %v4289_v0  ;;  %v2874_v20 = vsel %vm2044_vm3, %v100_v11, 0 }
 0x242   :  { %v4248_v27 = vpop.eup %4247  ;;  %4039 = vmatprep.subr.bf16.mxu0 %v4289_v0  ;;  %v1987_v18 = vmul.f32 %v4246_v32, %v4930_v16 }
 0x243   :  { %v1986_v28 = vmul.f32 %v4248_v27, %v4932_v12  ;;  %4024 = vmatmul.mubr.msk.bf16.vlgmr.msra.gmra.mrb[80].mxu1 %vm2040_vm4, %v2017_v5  ;;  %v95_v12 = vld [vmem:[%s5439_s2 + $0x1a] sm:$0x3] }
 0x244   :  { %4034 = vmatpush3.bf16.msra.mxu1 %v2552_v6  ;;  %4035 = vmatprep.mubr.msk.bf16.mxu1 %vm4290_vm1, %v4289_v0  ;;  %v2019_v33 = vpack.c.bf16 %v1987_v18, %v1987_v18  ;;  %v2644_v16 = vsel %vm2044_vm3, %v95_v12, 0 }
 0x245   :  { %v2018_v61 = vpack.c.bf16 %v1986_v28, %v1986_v28  ;;  %4045 = vmatprep.subr.bf16.mxu1 %v4289_v0  ;;  %v102_v28 = vld [vmem:[%s5439_s2 + $0x28] sm:$0x3] }
 0x246   :  { %v1895_v46 = vpop.xlane.xlu1 %1894 }
 0x247   :  { %4253 = vrcp.f32 %v1895_v46  ;;  %v1892_v19 = vpop.xlane.xlu0 %1891  ;;  %v2966_v46 = vsel %vm2044_vm3, %v102_v28, 0 }
 0x248   :  { %4030 = vmatmul.mubr.msk.bf16.vlgmr.msra.gmra.mrb[84].mxu0 %vm2040_vm4, %v2018_v61  ;;  %4255 = vrcp.f32 %v1892_v19 }
 0x249   :  { %v4250_v25 = vpop.eup %4249  ;;  %4040 = vmatpush3.bf16.msra.mxu0 %v2598_v43  ;;  %4041 = vmatprep.mubr.msk.bf16.mxu0 %vm4290_vm1, %v4289_v0 }
 0x24a   :  { %v4252_v23 = vpop.eup %4251  ;;  %4051 = vmatprep.subr.bf16.mxu0 %v4289_v0  ;;  %v1989_v58 = vmul.f32 %v4250_v25, %v4940_v41 }
 0x24b   :  { %v1988_v17 = vmul.f32 %v4252_v23, %v4942_v42  ;;  %4036 = vmatmul.mubr.msk.bf16.vlgmr.msra.gmra.mrb[84].mxu1 %vm2040_vm4, %v2019_v33  ;;  %v97_v42 = vld [vmem:[%s5439_s2 + $0x1e] sm:$0x3] }
 0x24c   :  { %4046 = vmatpush3.bf16.msra.mxu1 %v2644_v16  ;;  %4047 = vmatprep.mubr.msk.bf16.mxu1 %vm4290_vm1, %v4289_v0  ;;  %v2021_v35 = vpack.c.bf16 %v1989_v58, %v1989_v58  ;;  %v2736_v41 = vsel %vm2044_vm3, %v97_v42, 0  ;;  %v104_v16 = vld [vmem:[%s5439_s2 + $0x2c] sm:$0x3]  ;;  %v106_v42 = vld [vmem:[%s5439_s2 + $0x30] sm:$0x3] }
 0x24d   :  { %v2020_v24 = vpack.c.bf16 %v1988_v17, %v1988_v17  ;;  %4057 = vmatprep.subr.bf16.mxu1 %v4289_v0  ;;  %v3058_v40 = vsel %vm2044_vm3, %v104_v16, 0 }
 0x24e   :  { %v1901_v47 = vpop.xlane.xlu1 %1900 }
 0x24f   :  { %4257 = vrcp.f32 %v1901_v47  ;;  %v1898_v1 = vpop.xlane.xlu0 %1897 }
 0x250   :  { %4042 = vmatmul.mubr.msk.bf16.vlgmr.msra.gmra.mrb[88].mxu0 %vm2040_vm4, %v2020_v24  ;;  %4259 = vrcp.f32 %v1898_v1 }
 0x251   :  { %v4254_v34 = vpop.eup %4253  ;;  %4052 = vmatpush3.bf16.msra.mxu0 %v2690_v49  ;;  %4053 = vmatprep.mubr.msk.bf16.mxu0 %vm4290_vm1, %v4289_v0 }
 0x252   :  { %v4256_v39 = vpop.eup %4255  ;;  %4063 = vmatprep.subr.bf16.mxu0 %v4289_v0  ;;  %v1991_v14 = vmul.f32 %v4254_v34, %v4950_v52 }
 0x253   :  { %v1990_v37 = vmul.f32 %v4256_v39, %v4952_v13  ;;  %4048 = vmatmul.mubr.msk.bf16.vlgmr.msra.gmra.mrb[88].mxu1 %vm2040_vm4, %v2021_v35  ;;  %v99_v13 = vld [vmem:[%s5439_s2 + $0x22] sm:$0x3]  ;;  %v3150_v35 = vsel %vm2044_vm3, %v106_v42, 0 }
 0x254   :  { %4058 = vmatpush3.bf16.msra.mxu1 %v2736_v41  ;;  %4059 = vmatprep.mubr.msk.bf16.mxu1 %vm4290_vm1, %v4289_v0  ;;  %v2023_v53 = vpack.c.bf16 %v1991_v14, %v1991_v14  ;;  %v2828_v52 = vsel %vm2044_vm3, %v99_v13, 0 }
 0x255   :  { %v2022_v22 = vpack.c.bf16 %v1990_v37, %v1990_v37  ;;  %4069 = vmatprep.subr.bf16.mxu1 %v4289_v0 }
 0x256   :  { %v1907_v59 = vpop.xlane.xlu1 %1906 }
 0x257   :  { %4261 = vrcp.f32 %v1907_v59  ;;  %v1904_v38 = vpop.xlane.xlu0 %1903 }
 0x258   :  { %4054 = vmatmul.mubr.msk.bf16.vlgmr.msra.gmra.mrb[92].mxu0 %vm2040_vm4, %v2022_v22  ;;  %4263 = vrcp.f32 %v1904_v38  ;;  %v108_v22 = vld [vmem:[%s5439_s2 + $0x34] sm:$0x3] }
 0x259   :  { %v4258_v44 = vpop.eup %4257  ;;  %4064 = vmatpush3.bf16.msra.mxu0 %v2782_v51  ;;  %4065 = vmatprep.mubr.msk.bf16.mxu0 %vm4290_vm1, %v4289_v0  ;;  %v3242_v38 = vsel %vm2044_vm3, %v108_v22, 0 }
 0x25a   :  { %v4260_v2 = vpop.eup %4259  ;;  %4075 = vmatprep.subr.bf16.mxu0 %v4289_v0  ;;  %v1993_v3 = vmul.f32 %v4258_v44, %v4960_v48 }
 0x25b   :  { %v1992_v21 = vmul.f32 %v4260_v2, %v4962_v56  ;;  %4060 = vmatmul.mubr.msk.bf16.vlgmr.msra.gmra.mrb[92].mxu1 %vm2040_vm4, %v2023_v53  ;;  %v101_v56 = vld [vmem:[%s5439_s2 + $0x26] sm:$0x3]  ;;  %v109_v53 = vld [vmem:[%s5439_s2 + $0x36] sm:$0x3] }
 0x25c   :  { %4070 = vmatpush3.bf16.msra.mxu1 %v2828_v52  ;;  %4071 = vmatprep.mubr.msk.bf16.mxu1 %vm4290_vm1, %v4289_v0  ;;  %v2025_v5 = vpack.c.bf16 %v1993_v3, %v1993_v3  ;;  %v2920_v48 = vsel %vm2044_vm3, %v101_v56, 0  ;;  %v110_v3 = vld [vmem:[%s5439_s2 + $0x38] sm:$0x3] }
 0x25d   :  { %v2024_v7 = vpack.c.bf16 %v1992_v21, %v1992_v21  ;;  %4081 = vmatprep.subr.bf16.mxu1 %v4289_v0  ;;  %v3288_v21 = vsel %vm2044_vm3, %v109_v53, 0 }
 0x25e   :  { %v1913_v55 = vpop.xlane.xlu1 %1912 }
 0x25f   :  { %4265 = vrcp.f32 %v1913_v55  ;;  %v1910_v8 = vpop.xlane.xlu0 %1909 }
 0x260   :  { %4066 = vmatmul.mubr.msk.bf16.vlgmr.msra.gmra.mrb[96].mxu0 %vm2040_vm4, %v2024_v7  ;;  %4267 = vrcp.f32 %v1910_v8  ;;  %v111_v8 = vld [vmem:[%s5439_s2 + $0x3a] sm:$0x3] }
 0x261   :  { %v4262_v32 = vpop.eup %4261  ;;  %4076 = vmatpush3.bf16.msra.mxu0 %v2874_v20  ;;  %4077 = vmatprep.mubr.msk.bf16.mxu0 %vm4290_vm1, %v4289_v0  ;;  %v3334_v20 = vsel %vm2044_vm3, %v110_v3, 0 }
 0x262   :  { %v4264_v6 = vpop.eup %4263  ;;  %4087 = vmatprep.subr.bf16.mxu0 %v4289_v0  ;;  %v1995_v57 = vmul.f32 %v4262_v32, %v4970_v9 }
 0x263   :  { %v1994_v27 = vmul.f32 %v4264_v6, %v4972_v15  ;;  %4072 = vmatmul.mubr.msk.bf16.vlgmr.msra.gmra.mrb[96].mxu1 %vm2040_vm4, %v2025_v5  ;;  %v103_v15 = vld [vmem:[%s5439_s2 + $0x2a] sm:$0x3] }
 0x264   :  { %4082 = vmatpush3.bf16.msra.mxu1 %v2920_v48  ;;  %4083 = vmatprep.mubr.msk.bf16.mxu1 %vm4290_vm1, %v4289_v0  ;;  %v2027_v19 = vpack.c.bf16 %v1995_v57, %v1995_v57  ;;  %v3012_v9 = vsel %vm2044_vm3, %v103_v15, 0  ;;  %v3380_v48 = vsel %vm2044_vm3, %v111_v8, 0 }
 0x265   :  { %v2026_v18 = vpack.c.bf16 %v1994_v27, %v1994_v27  ;;  %4093 = vmatprep.subr.bf16.mxu1 %v4289_v0 }
 0x266   :  { %v1919_v61 = vpop.xlane.xlu1 %1918 }
 0x267   :  { %4269 = vrcp.f32 %v1919_v61  ;;  %v1916_v43 = vpop.xlane.xlu0 %1915 }
 0x268   :  { %4078 = vmatmul.mubr.msk.bf16.vlgmr.msra.gmra.mrb[100].mxu0 %vm2040_vm4, %v2026_v18  ;;  %4271 = vrcp.f32 %v1916_v43 }
 0x269   :  { %v4266_v12 = vpop.eup %4265  ;;  %4088 = vmatpush3.bf16.msra.mxu0 %v2966_v46  ;;  %4089 = vmatprep.mubr.msk.bf16.mxu0 %vm4290_vm1, %v4289_v0  ;;  %v113_v46 = vld [vmem:[%s5439_s2 + $0x3e] sm:$0x3] }
 0x26a   :  { %v4268_v25 = vpop.eup %4267  ;;  %4099 = vmatprep.subr.bf16.mxu0 %v4289_v0  ;;  %v1997_v23 = vmul.f32 %v4266_v12, %v4980_v29  ;;  %v3472_v43 = vsel %vm2044_vm3, %v113_v46, 0 }
 0x26b   :  { %v1996_v33 = vmul.f32 %v4268_v25, %v4982_v62  ;;  %4084 = vmatmul.mubr.msk.bf16.vlgmr.msra.gmra.mrb[100].mxu1 %vm2040_vm4, %v2027_v19  ;;  %v105_v62 = vld [vmem:[%s5439_s2 + $0x2e] sm:$0x3] }
 0x26c   :  { %4094 = vmatpush3.bf16.msra.mxu1 %v3012_v9  ;;  %4095 = vmatprep.mubr.msk.bf16.mxu1 %vm4290_vm1, %v4289_v0  ;;  %v2029_v24 = vpack.c.bf16 %v1997_v23, %v1997_v23  ;;  %v3104_v47 = vsel %vm2044_vm3, %v105_v62, 0 }
 0x26d   :  { %v2028_v17 = vpack.c.bf16 %v1996_v33, %v1996_v33  ;;  %4105 = vmatprep.subr.bf16.mxu1 %v4289_v0 }
 0x270   :  { %4090 = vmatmul.mubr.msk.bf16.vlgmr.msra.gmra.mrb[104].mxu0 %vm2040_vm4, %v2028_v17 }
 0x271   :  { %v4270_v58 = vpop.eup %4269  ;;  %4100 = vmatpush3.bf16.msra.mxu0 %v3058_v40  ;;  %4101 = vmatprep.mubr.msk.bf16.mxu0 %vm4290_vm1, %v4289_v0 }
 0x272   :  { %v4272_v29 = vpop.eup %4271  ;;  %4111 = vmatprep.subr.bf16.mxu0 %v4289_v0  ;;  %v1999_v1 = vmul.f32 %v4270_v58, %v4988_v54 }
 0x273   :  { %v1998_v49 = vmul.f32 %v4272_v29, %v4990_v30  ;;  %4096 = vmatmul.mubr.msk.bf16.vlgmr.msra.gmra.mrb[104].mxu1 %vm2040_vm4, %v2029_v24  ;;  %v107_v30 = vld [vmem:[%s5439_s2 + $0x32] sm:$0x3] }
 0x274   :  { %4106 = vmatpush3.bf16.msra.mxu1 %v3104_v47  ;;  %4107 = vmatprep.mubr.msk.bf16.mxu1 %vm4290_vm1, %v4289_v0  ;;  %v2031_v41 = vpack.c.bf16 %v1999_v1, %v1999_v1  ;;  %v3196_v39 = vsel %vm2044_vm3, %v107_v30, 0 }
 0x275   :  { %v2030_v34 = vpack.c.bf16 %v1998_v49, %v1998_v49  ;;  %4117 = vmatprep.subr.bf16.mxu1 %v4289_v0 }
 0x278   :  { %4102 = vmatmul.mubr.msk.bf16.vlgmr.msra.gmra.mrb[108].mxu0 %vm2040_vm4, %v2030_v34 }
 0x279   :  { %4112 = vmatpush3.bf16.msra.mxu0 %v3150_v35  ;;  %4113 = vmatprep.mubr.msk.bf16.mxu0 %vm4290_vm1, %v4289_v0 }
 0x27a   :  { %4123 = vmatprep.subr.bf16.mxu0 %v4289_v0 }
 0x27b   :  { %4108 = vmatmul.mubr.msk.bf16.vlgmr.msra.gmra.mrb[108].mxu1 %vm2040_vm4, %v2031_v41 }
 0x27c   :  { %4118 = vmatpush3.bf16.msra.mxu1 %v3196_v39  ;;  %4119 = vmatprep.mubr.msk.bf16.mxu1 %vm4290_vm1, %v4289_v0 }
 0x27d   :  { %4129 = vmatprep.subr.bf16.mxu1 %v4289_v0 }
 0x2b0   :  { %v1922_v54 = vpop.xlane.xlu0 %1921 }
 0x2b1   :  { %4273 = vrcp.f32 %v1922_v54 }
 0x2b4   :  { %v1925_v37 = vpop.xlane.xlu1 %1924 }
 0x2b5   :  { %4275 = vrcp.f32 %v1925_v37 }
 0x2b8   :  { %v1928_v10 = vpop.xlane.xlu0 %1927 }
 0x2b9   :  { %4277 = vrcp.f32 %v1928_v10 }
 0x2bb   :  { %v4274_v14 = vpop.eup %4273 }
 0x2bc   :  { %v2000_v59 = vmul.f32 %v4274_v14, %v5014_v26  ;;  %v1931_v51 = vpop.xlane.xlu1 %1930 }
 0x2bd   :  { %4279 = vrcp.f32 %v1931_v51 }
 0x2be   :  { %v2032_v13 = vpack.c.bf16 %v2000_v59, %v2000_v59 }
 0x2bf   :  { %v4276_v44 = vpop.eup %4275 }
 0x2c0   :  { %v2001_v52 = vmul.f32 %v4276_v44, %v5027_v31  ;;  %4114 = vmatmul.mubr.msk.bf16.vlgmr.msra.gmra.mrb[112].mxu0 %vm2040_vm4, %v2032_v13 }
 0x2c1   :  { %v1934_v2 = vpop.xlane.xlu0 %1933  ;;  %4124 = vmatpush3.bf16.msra.mxu0 %v3242_v38  ;;  %4125 = vmatprep.mubr.msk.bf16.mxu0 %vm4290_vm1, %v4289_v0 }
 0x2c2   :  { %4281 = vrcp.f32 %v1934_v2  ;;  %v2033_v26 = vpack.c.bf16 %v2001_v52, %v2001_v52  ;;  %4135 = vmatprep.subr.bf16.mxu0 %v4289_v0 }
 0x2c3   :  { %v4278_v11 = vpop.eup %4277 }
 0x2c4   :  { %v2002_v31 = vmul.f32 %v4278_v11, %v5040_v60  ;;  %4120 = vmatmul.mubr.msk.bf16.vlgmr.msra.gmra.mrb[112].mxu1 %vm2040_vm4, %v2033_v26  ;;  %v1937_v7 = vpop.xlane.xlu1 %1936 }
 0x2c5   :  { %4283 = vrcp.f32 %v1937_v7  ;;  %4130 = vmatpush3.bf16.msra.mxu1 %v3288_v21  ;;  %4131 = vmatprep.mubr.msk.bf16.mxu1 %vm4290_vm1, %v4289_v0 }
 0x2c6   :  { %v2034_v55 = vpack.c.bf16 %v2002_v31, %v2002_v31  ;;  %4141 = vmatprep.subr.bf16.mxu1 %v4289_v0 }
 0x2c7   :  { %v4280_v56 = vpop.eup %4279 }
 0x2c8   :  { %v2003_v60 = vmul.f32 %v4280_v56, %v5054_v4  ;;  %4126 = vmatmul.mubr.msk.bf16.vlgmr.msra.gmra.mrb[116].mxu0 %vm2040_vm4, %v2034_v55  ;;  %v112_v4 = vld [vmem:[%s5439_s2 + $0x3c] sm:$0x3] }
 0x2c9   :  { %v1940_v32 = vpop.xlane.xlu0 %1939  ;;  %4136 = vmatpush3.bf16.msra.mxu0 %v3334_v20  ;;  %4137 = vmatprep.mubr.msk.bf16.mxu0 %vm4290_vm1, %v4289_v0  ;;  %v3426_v61 = vsel %vm2044_vm3, %v112_v4, 0 }
 0x2ca   :  { %4285 = vrcp.f32 %v1940_v32  ;;  %v2035_v5 = vpack.c.bf16 %v2003_v60, %v2003_v60  ;;  %4147 = vmatprep.subr.bf16.mxu0 %v4289_v0 }
 0x2cc   :  { %v4282_v6 = vpop.eup %4281  ;;  %4132 = vmatmul.mubr.msk.bf16.vlgmr.msra.gmra.mrb[116].mxu1 %vm2040_vm4, %v2035_v5  ;;  %v1943_v27 = vpop.xlane.xlu1 %1942 }
 0x2cd   :  { %v2004_v28 = vmul.f32 %v4282_v6, %v5070_v36  ;;  %4287 = vrcp.f32 %v1943_v27  ;;  %4142 = vmatpush3.bf16.msra.mxu1 %v3380_v48  ;;  %4143 = vmatprep.mubr.msk.bf16.mxu1 %vm4290_vm1, %v4289_v0 }
 0x2ce   :  { %4153 = vmatprep.subr.bf16.mxu1 %v4289_v0 }
 0x2cf   :  { %v4284_v57 = vpop.eup %4283  ;;  %v2036_v18 = vpack.c.bf16 %v2004_v28, %v2004_v28 }
 0x2d0   :  { %v2005_v15 = vmul.f32 %v4284_v57, %v5079_v63 }
 0x2d1   :  { %4138 = vmatmul.mubr.msk.bf16.vlgmr.msra.gmra.mrb[120].mxu0 %vm2040_vm4, %v2036_v18 }
 0x2d2   :  { %v2037_v36 = vpack.c.bf16 %v2005_v15, %v2005_v15  ;;  %4148 = vmatpush3.bf16.msra.mxu0 %v3426_v61  ;;  %4149 = vmatprep.mubr.msk.bf16.mxu0 %vm4290_vm1, %v4289_v0 }
 0x2d4   :  { %v4286_v12 = vpop.eup %4285  ;;  %4144 = vmatmul.mubr.msk.bf16.vlgmr.msra.gmra.mrb[120].mxu1 %vm2040_vm4, %v2037_v36 }
 0x2d5   :  { %v2006_v19 = vmul.f32 %v4286_v12, %v5095_v50  ;;  %4154 = vmatpush3.bf16.msra.mxu1 %v3472_v43  ;;  %4155 = vmatprep.mubr.msk.bf16.mxu1 %vm4290_vm1, %v4289_v0 }
 0x2d7   :  { %v4288_v9 = vpop.eup %4287  ;;  %v2038_v63 = vpack.c.bf16 %v2006_v19, %v2006_v19 }
 0x2d8   :  { %v2007_v25 = vmul.f32 %v4288_v9, %v5105_v45 }
 0x2d9   :  { %4150 = vmatmul.mubr.msk.bf16.vlgmr.msra.gmra.mrb[124].mxu0 %vm2040_vm4, %v2038_v63 }
 0x2da   :  { %v2039_v33 = vpack.c.bf16 %v2007_v25, %v2007_v25 }
 0x2dc   :  { %4156 = vmatmul.mubr.msk.bf16.vlgmr.msra.gmra.mrb[124].mxu1 %vm2040_vm4, %v2039_v33 }
 0x2f1   :  { %v2082_v16 = vpop.f32.mrb[64].mxu0 }
 0x2f2   :  { %v3514_v23 = vpack.c.bf16 %v2082_v16, %v2082_v16  ;;  %v3971_v17 = vpop.f32.mrb[65].mxu0 }
 0x2f3   :  { %v2085_v40 = vpop.f32.mrb[66].mxu0 }
 0x2f4   :  { %3547 = vst.msk [vmem:[%s5440_s4] sm:$0x3] %vm3546_vm5, %v3514_v23  ;;  %v3972_v0 = vpop.f32.mrb[67].mxu0 }
 0x2f5   :  { %v2128_v50 = vpop.f32.mrb[64].mxu1 }
 0x2f6   :  { %v3515_v62 = vpack.c.bf16 %v2128_v50, %v2128_v50  ;;  %v3977_v58 = vpop.f32.mrb[65].mxu1 }
 0x2f7   :  { %v2131_v45 = vpop.f32.mrb[66].mxu1 }
 0x2f8   :  { %3548 = vst.msk [vmem:[%s5440_s4 + $0x2] sm:$0x3] %vm3546_vm5, %v3515_v62  ;;  %v3978_v24 = vpop.f32.mrb[67].mxu1 }
 0x2fa   :  { %v2174_v47 = vpop.f32.mrb[68].mxu0 }
 0x2fb   :  { %v3516_v29 = vpack.c.bf16 %v2174_v47, %v2174_v47  ;;  %v3983_v49 = vpop.f32.mrb[69].mxu0 }
 0x2fc   :  { %v2177_v42 = vpop.f32.mrb[70].mxu0 }
 0x2fd   :  { %3549 = vst.msk [vmem:[%s5440_s4 + $0x4] sm:$0x3] %vm3546_vm5, %v3516_v29  ;;  %v3984_v1 = vpop.f32.mrb[71].mxu0 }
 0x2fe   :  { %v2220_v34 = vpop.f32.mrb[68].mxu1 }
 0x2ff   :  { %v3517_v35 = vpack.c.bf16 %v2220_v34, %v2220_v34  ;;  %v3989_v30 = vpop.f32.mrb[69].mxu1 }
 0x300   :  { %v2223_v41 = vpop.f32.mrb[70].mxu1 }
 0x301   :  { %3550 = vst.msk [vmem:[%s5440_s4 + $0x6] sm:$0x3] %vm3546_vm5, %v3517_v35  ;;  %v3990_v39 = vpop.f32.mrb[71].mxu1 }
 0x302   :  { %v2266_v54 = vpop.f32.mrb[72].mxu0 }
 0x303   :  { %v3518_v37 = vpack.c.bf16 %v2266_v54, %v2266_v54  ;;  %v3995_v10 = vpop.f32.mrb[73].mxu0 }
 0x304   :  { %v2269_v14 = vpop.f32.mrb[74].mxu0 }
 0x305   :  { %3551 = vst.msk [vmem:[%s5440_s4 + $0x8] sm:$0x3] %vm3546_vm5, %v3518_v37  ;;  %v3996_v22 = vpop.f32.mrb[75].mxu0 }
 0x306   :  { %v2312_v59 = vpop.f32.mrb[72].mxu1 }
 0x307   :  { %v3519_v51 = vpack.c.bf16 %v2312_v59, %v2312_v59  ;;  %v4001_v13 = vpop.f32.mrb[73].mxu1 }
 0x308   :  { %v2315_v38 = vpop.f32.mrb[74].mxu1 }
 0x309   :  { %3552 = vst.msk [vmem:[%s5440_s4 + $0xa] sm:$0x3] %vm3546_vm5, %v3519_v51  ;;  %v4002_v44 = vpop.f32.mrb[75].mxu1 }
 0x30b   :  { %v2358_v53 = vpop.f32.mrb[76].mxu0 }
 0x30c   :  { %v3520_v52 = vpack.c.bf16 %v2358_v53, %v2358_v53  ;;  %v4007_v2 = vpop.f32.mrb[77].mxu0 }
 0x30d   :  { %v2361_v26 = vpop.f32.mrb[78].mxu0 }
 0x30e   :  { %3553 = vst.msk [vmem:[%s5440_s4 + $0xc] sm:$0x3] %vm3546_vm5, %v3520_v52  ;;  %v4008_v21 = vpop.f32.mrb[79].mxu0  ;;  %v2404_v11 = vpop.f32.mrb[76].mxu1 }
 0x30f   :  { %v3521_v3 = vpack.c.bf16 %v2404_v11, %v2404_v11  ;;  %v4013_v31 = vpop.f32.mrb[77].mxu1 }
 0x310   :  { %v2407_v7 = vpop.f32.mrb[78].mxu1 }
 0x311   :  { %3554 = vst.msk [vmem:[%s5440_s4 + $0xe] sm:$0x3] %vm3546_vm5, %v3521_v3  ;;  %v4014_v55 = vpop.f32.mrb[79].mxu1 }
 0x313   :  { %v2450_v20 = vpop.f32.mrb[80].mxu0 }
 0x314   :  { %v3522_v56 = vpack.c.bf16 %v2450_v20, %v2450_v20  ;;  %v4019_v8 = vpop.f32.mrb[81].mxu0 }
 0x315   :  { %v2453_v60 = vpop.f32.mrb[82].mxu0 }
 0x316   :  { %3555 = vst.msk [vmem:[%s5440_s4 + $0x10] sm:$0x3] %vm3546_vm5, %v3522_v56  ;;  %v4020_v32 = vpop.f32.mrb[83].mxu0  ;;  %v2496_v5 = vpop.f32.mrb[80].mxu1 }
 0x317   :  { %v3523_v48 = vpack.c.bf16 %v2496_v5, %v2496_v5  ;;  %v4025_v6 = vpop.f32.mrb[81].mxu1 }
 0x318   :  { %v2499_v27 = vpop.f32.mrb[82].mxu1 }
 0x319   :  { %3556 = vst.msk [vmem:[%s5440_s4 + $0x12] sm:$0x3] %vm3546_vm5, %v3523_v48  ;;  %v4026_v4 = vpop.f32.mrb[83].mxu1 }
 0x31b   :  { %v2542_v28 = vpop.f32.mrb[84].mxu0 }
 0x31c   :  { %v3524_v57 = vpack.c.bf16 %v2542_v28, %v2542_v28  ;;  %v4031_v18 = vpop.f32.mrb[85].mxu0 }
 0x31d   :  { %v2545_v61 = vpop.f32.mrb[86].mxu0 }
 0x31e   :  { %3557 = vst.msk [vmem:[%s5440_s4 + $0x14] sm:$0x3] %vm3546_vm5, %v3524_v57  ;;  %v4032_v46 = vpop.f32.mrb[87].mxu0  ;;  %v2588_v15 = vpop.f32.mrb[84].mxu1 }
 0x31f   :  { %v3525_v36 = vpack.c.bf16 %v2588_v15, %v2588_v15  ;;  %v4037_v43 = vpop.f32.mrb[85].mxu1 }
 0x320   :  { %v2591_v12 = vpop.f32.mrb[86].mxu1 }
 0x321   :  { %3558 = vst.msk [vmem:[%s5440_s4 + $0x16] sm:$0x3] %vm3546_vm5, %v3525_v36  ;;  %v4038_v19 = vpop.f32.mrb[87].mxu1 }
 0x323   :  { %v2634_v9 = vpop.f32.mrb[88].mxu0 }
 0x324   :  { %v3526_v63 = vpack.c.bf16 %v2634_v9, %v2634_v9  ;;  %v4043_v25 = vpop.f32.mrb[89].mxu0 }
 0x325   :  { %v2637_v33 = vpop.f32.mrb[90].mxu0 }
 0x326   :  { %3559 = vst.msk [vmem:[%s5440_s4 + $0x18] sm:$0x3] %vm3546_vm5, %v3526_v63  ;;  %v4044_v16 = vpop.f32.mrb[91].mxu0  ;;  %v2680_v23 = vpop.f32.mrb[88].mxu1 }
 0x327   :  { %v3527_v17 = vpack.c.bf16 %v2680_v23, %v2680_v23  ;;  %v4049_v40 = vpop.f32.mrb[89].mxu1 }
 0x328   :  { %v2683_v0 = vpop.f32.mrb[90].mxu1 }
 0x329   :  { %3560 = vst.msk [vmem:[%s5440_s4 + $0x1a] sm:$0x3] %vm3546_vm5, %v3527_v17  ;;  %v4050_v50 = vpop.f32.mrb[91].mxu1 }
 0x32b   :  { %v2726_v62 = vpop.f32.mrb[92].mxu0 }
 0x32c   :  { %v3528_v58 = vpack.c.bf16 %v2726_v62, %v2726_v62  ;;  %v4055_v45 = vpop.f32.mrb[93].mxu0 }
 0x32d   :  { %v2729_v24 = vpop.f32.mrb[94].mxu0 }
 0x32e   :  { %3561 = vst.msk [vmem:[%s5440_s4 + $0x1c] sm:$0x3] %vm3546_vm5, %v3528_v58  ;;  %v4056_v47 = vpop.f32.mrb[95].mxu0  ;;  %v2772_v29 = vpop.f32.mrb[92].mxu1 }
 0x32f   :  { %v3529_v49 = vpack.c.bf16 %v2772_v29, %v2772_v29  ;;  %v4061_v42 = vpop.f32.mrb[93].mxu1 }
 0x330   :  { %v2775_v1 = vpop.f32.mrb[94].mxu1 }
 0x331   :  { %3562 = vst.msk [vmem:[%s5440_s4 + $0x1e] sm:$0x3] %vm3546_vm5, %v3529_v49  ;;  %v4062_v34 = vpop.f32.mrb[95].mxu1 }
 0x333   :  { %v2818_v35 = vpop.f32.mrb[96].mxu0 }
 0x334   :  { %v3530_v30 = vpack.c.bf16 %v2818_v35, %v2818_v35  ;;  %v4067_v41 = vpop.f32.mrb[97].mxu0 }
 0x335   :  { %v2821_v39 = vpop.f32.mrb[98].mxu0 }
 0x336   :  { %3563 = vst.msk [vmem:[%s5440_s4 + $0x20] sm:$0x3] %vm3546_vm5, %v3530_v30  ;;  %v4068_v54 = vpop.f32.mrb[99].mxu0  ;;  %v2864_v37 = vpop.f32.mrb[96].mxu1 }
 0x337   :  { %v3531_v10 = vpack.c.bf16 %v2864_v37, %v2864_v37  ;;  %v4073_v14 = vpop.f32.mrb[97].mxu1 }
 0x338   :  { %v2867_v22 = vpop.f32.mrb[98].mxu1 }
 0x339   :  { %3564 = vst.msk [vmem:[%s5440_s4 + $0x22] sm:$0x3] %vm3546_vm5, %v3531_v10  ;;  %v4074_v59 = vpop.f32.mrb[99].mxu1 }
 0x33b   :  { %v2910_v51 = vpop.f32.mrb[100].mxu0 }
 0x33c   :  { %v3532_v13 = vpack.c.bf16 %v2910_v51, %v2910_v51  ;;  %v4079_v38 = vpop.f32.mrb[101].mxu0 }
 0x33d   :  { %v2913_v44 = vpop.f32.mrb[102].mxu0 }
 0x33e   :  { %3565 = vst.msk [vmem:[%s5440_s4 + $0x24] sm:$0x3] %vm3546_vm5, %v3532_v13  ;;  %v4080_v53 = vpop.f32.mrb[103].mxu0  ;;  %v2956_v52 = vpop.f32.mrb[100].mxu1 }
 0x33f   :  { %v3533_v2 = vpack.c.bf16 %v2956_v52, %v2956_v52  ;;  %v4085_v26 = vpop.f32.mrb[101].mxu1 }
 0x340   :  { %v2959_v21 = vpop.f32.mrb[102].mxu1 }
 0x341   :  { %3566 = vst.msk [vmem:[%s5440_s4 + $0x26] sm:$0x3] %vm3546_vm5, %v3533_v2  ;;  %v4086_v11 = vpop.f32.mrb[103].mxu1 }
 0x343   :  { %v3002_v3 = vpop.f32.mrb[104].mxu0 }
 0x344   :  { %v3534_v31 = vpack.c.bf16 %v3002_v3, %v3002_v3  ;;  %v4091_v7 = vpop.f32.mrb[105].mxu0 }
 0x345   :  { %v3005_v55 = vpop.f32.mrb[106].mxu0 }
 0x346   :  { %3567 = vst.msk [vmem:[%s5440_s4 + $0x28] sm:$0x3] %vm3546_vm5, %v3534_v31  ;;  %v4092_v20 = vpop.f32.mrb[107].mxu0  ;;  %v3048_v56 = vpop.f32.mrb[104].mxu1 }
 0x347   :  { %v3535_v8 = vpack.c.bf16 %v3048_v56, %v3048_v56  ;;  %v4097_v60 = vpop.f32.mrb[105].mxu1 }
 0x348   :  { %v3051_v32 = vpop.f32.mrb[106].mxu1 }
 0x349   :  { %3568 = vst.msk [vmem:[%s5440_s4 + $0x2a] sm:$0x3] %vm3546_vm5, %v3535_v8  ;;  %v4098_v5 = vpop.f32.mrb[107].mxu1 }
 0x34b   :  { %v3094_v48 = vpop.f32.mrb[108].mxu0 }
 0x34c   :  { %v3536_v6 = vpack.c.bf16 %v3094_v48, %v3094_v48  ;;  %v4103_v27 = vpop.f32.mrb[109].mxu0 }
 0x34d   :  { %v3097_v4 = vpop.f32.mrb[110].mxu0 }
 0x34e   :  { %3569 = vst.msk [vmem:[%s5440_s4 + $0x2c] sm:$0x3] %vm3546_vm5, %v3536_v6  ;;  %v4104_v28 = vpop.f32.mrb[111].mxu0  ;;  %v3140_v57 = vpop.f32.mrb[108].mxu1 }
 0x34f   :  { %v3537_v18 = vpack.c.bf16 %v3140_v57, %v3140_v57  ;;  %v4109_v61 = vpop.f32.mrb[109].mxu1 }
 0x350   :  { %v3143_v46 = vpop.f32.mrb[110].mxu1 }
 0x351   :  { %3570 = vst.msk [vmem:[%s5440_s4 + $0x2e] sm:$0x3] %vm3546_vm5, %v3537_v18  ;;  %v4110_v15 = vpop.f32.mrb[111].mxu1 }
 0x393   :  { %v3186_v36 = vpop.f32.mrb[112].mxu0 }
 0x394   :  { %v3538_v43 = vpack.c.bf16 %v3186_v36, %v3186_v36  ;;  %v4115_v12 = vpop.f32.mrb[113].mxu0 }
 0x395   :  { %v3189_v19 = vpop.f32.mrb[114].mxu0 }
 0x396   :  { %3571 = vst.msk [vmem:[%s5440_s4 + $0x30] sm:$0x3] %vm3546_vm5, %v3538_v43  ;;  %v4116_v9 = vpop.f32.mrb[115].mxu0 }
 0x397   :  { %v3232_v63 = vpop.f32.mrb[112].mxu1 }
 0x398   :  { %v3539_v25 = vpack.c.bf16 %v3232_v63, %v3232_v63  ;;  %v4121_v33 = vpop.f32.mrb[113].mxu1 }
 0x399   :  { %v3235_v16 = vpop.f32.mrb[114].mxu1 }
 0x39a   :  { %3572 = vst.msk [vmem:[%s5440_s4 + $0x32] sm:$0x3] %vm3546_vm5, %v3539_v25  ;;  %v4122_v23 = vpop.f32.mrb[115].mxu1 }
 0x39b   :  { %v3278_v17 = vpop.f32.mrb[116].mxu0 }
 0x39c   :  { %v3540_v40 = vpack.c.bf16 %v3278_v17, %v3278_v17  ;;  %v4127_v0 = vpop.f32.mrb[117].mxu0 }
 0x39d   :  { %v3281_v50 = vpop.f32.mrb[118].mxu0 }
 0x39e   :  { %3573 = vst.msk [vmem:[%s5440_s4 + $0x34] sm:$0x3] %vm3546_vm5, %v3540_v40  ;;  %v4128_v62 = vpop.f32.mrb[119].mxu0 }
 0x39f   :  { %v3324_v58 = vpop.f32.mrb[116].mxu1 }
 0x3a0   :  { %v3541_v45 = vpack.c.bf16 %v3324_v58, %v3324_v58  ;;  %v4133_v24 = vpop.f32.mrb[117].mxu1 }
 0x3a1   :  { %v3327_v47 = vpop.f32.mrb[118].mxu1 }
 0x3a2   :  { %3574 = vst.msk [vmem:[%s5440_s4 + $0x36] sm:$0x3] %vm3546_vm5, %v3541_v45  ;;  %v4134_v29 = vpop.f32.mrb[119].mxu1 }
 0x3a4   :  { %v3370_v49 = vpop.f32.mrb[120].mxu0 }
 0x3a5   :  { %v3542_v42 = vpack.c.bf16 %v3370_v49, %v3370_v49  ;;  %v4139_v1 = vpop.f32.mrb[121].mxu0 }
 0x3a6   :  { %v3373_v34 = vpop.f32.mrb[122].mxu0 }
 0x3a7   :  { %3575 = vst.msk [vmem:[%s5440_s4 + $0x38] sm:$0x3] %vm3546_vm5, %v3542_v42  ;;  %v4140_v35 = vpop.f32.mrb[123].mxu0  ;;  %v3416_v30 = vpop.f32.mrb[120].mxu1 }
 0x3a8   :  { %v3543_v41 = vpack.c.bf16 %v3416_v30, %v3416_v30  ;;  %v4145_v39 = vpop.f32.mrb[121].mxu1 }
 0x3a9   :  { %v3419_v54 = vpop.f32.mrb[122].mxu1 }
 0x3aa   :  { %3576 = vst.msk [vmem:[%s5440_s4 + $0x3a] sm:$0x3] %vm3546_vm5, %v3543_v41  ;;  %v4146_v37 = vpop.f32.mrb[123].mxu1 }
 0x3ac   :  { %v3462_v10 = vpop.f32.mrb[124].mxu0 }
 0x3ad   :  { %v3544_v14 = vpack.c.bf16 %v3462_v10, %v3462_v10  ;;  %v4151_v22 = vpop.f32.mrb[125].mxu0 }
 0x3ae   :  { %v3465_v59 = vpop.f32.mrb[126].mxu0 }
 0x3af   :  { %3577 = vst.msk [vmem:[%s5440_s4 + $0x3c] sm:$0x3] %vm3546_vm5, %v3544_v14  ;;  %v4152_v51 = vpop.f32.mrb[127].mxu0  ;;  %v3508_v13 = vpop.f32.mrb[124].mxu1 }
 0x3b0   :  { %v3545_v38 = vpack.c.bf16 %v3508_v13, %v3508_v13  ;;  %v4157_v44 = vpop.f32.mrb[125].mxu1 }
 0x3b1   :  { %v3511_v53 = vpop.f32.mrb[126].mxu1 }
 0x3b2   :  { %3578 = vst.msk [vmem:[%s5440_s4 + $0x3e] sm:$0x3] %vm3546_vm5, %v3545_v38  ;;  %v4158_v52 = vpop.f32.mrb[127].mxu1 }

// kernel: _lambda_.47
= control target key start
LH: loop header
LB: loop body
LE: loop exit
PB: predicated region body
PF: predicated region fallthrough
CT: control target
= control target key end

     0   :  { %vm79_vm0 = vcmask 523264   ;;  %vm105_vm1 = vcmask 7168   ;;  %s253_s0 = inlined_call_operand.vmem [shape: f32[32,64], index: 0, kind: input, shape index: {}]   ;;  %s254_s1 = inlined_call_operand.vmem [shape: f32[32,64], index: 1, kind: input, shape index: {}]   ;;  %s255_s2 = inlined_call_operand.vmem [shape: f32[32,1], index: 2, kind: input, shape index: {}]   ;;  %s256_s3 = inlined_call_operand.vmem [shape: f32[1,128], index: 3, kind: output, shape index: {}]  }
   0x1   :  { %v19_v0 = vld [vmem:[%s253_s0] sm:$0xff]  ;;  %v21_v2 = vld [vmem:[%s253_s0 + $0x10] sm:$0xff]  ;;  %v20_v5 = vld [vmem:[%s253_s0 + $0x8] sm:$0xff] }
   0x2   :  { %v23_v1 = vld [vmem:[%s254_s1] sm:$0xff]  ;;  %v25_v4 = vld [vmem:[%s254_s1 + $0x10] sm:$0xff]  ;;  %v24_v6 = vld [vmem:[%s254_s1 + $0x8] sm:$0xff] }
   0x3   :  { %v27_v3 = vsub.f32 %v19_v0, %v23_v1  ;;  %v29_v7 = vsub.f32 %v21_v2, %v25_v4  ;;  %v28_v8 = vsub.f32 %v20_v5, %v24_v6  ;;  %v22_v9 = vld [vmem:[%s253_s0 + $0x18] sm:$0xff]  ;;  %v97_v0 = vld [vmem:[%s255_s2] sm:$0xff]  ;;  %v98_v2 = vld [vmem:[%s255_s2 + $0x8] sm:$0xff] }
   0x4   :  { %v26_v10 = vld [vmem:[%s254_s1 + $0x18] sm:$0xff]  ;;  %v122_v1 = vsel %vm105_vm1, %v97_v0, 0.0  ;;  %v99_v4 = vld [vmem:[%s255_s2 + $0x10] sm:$0xff] }
   0x5   :  { %v31_v11 = vmul.f32 -2.0, %v27_v3  ;;  %v30_v12 = vsub.f32 %v22_v9, %v26_v10  ;;  %v33_v13 = vmul.f32 -2.0, %v29_v7  ;;  %v32_v14 = vmul.f32 -2.0, %v28_v8 }
   0x6   :  { %v125_v6 = vsel %vm105_vm1, %v99_v4, 0.0 }
   0x7   :  { %v39_v15 = vand.u32 2147483647, %v31_v11  ;;  %v34_v16 = vmul.f32 -2.0, %v30_v12  ;;  %v41_v17 = vand.u32 2147483647, %v33_v13  ;;  %v35_v36 = vmax.f32 %v31_v11, 0.0 }
   0x8   :  { %v40_v18 = vand.u32 2147483647, %v32_v14  ;;  %v37_v38 = vmax.f32 %v33_v13, 0.0  ;;  %v36_v41 = vmax.f32 %v32_v14, 0.0 }
   0x9   :  { %v43_v19 = vsub.f32 0.0, %v39_v15  ;;  %v42_v20 = vand.u32 2147483647, %v34_v16  ;;  %v45_v21 = vsub.f32 0.0, %v41_v17  ;;  %v38_v44 = vmax.f32 %v34_v16, 0.0 }
   0xa   :  { %v44_v22 = vsub.f32 0.0, %v40_v18 }
   0xb   :  { %v47_v23 = vmul.f32 1.442695, %v43_v19  ;;  %v46_v24 = vsub.f32 0.0, %v42_v20  ;;  %v51_v25 = vmul.f32 1.442695, %v45_v21 }
   0xc   :  { %v49_v26 = vmul.f32 1.442695, %v44_v22 }
   0xd   :  { %163 = vpow2.f32 %v47_v23  ;;  %v53_v27 = vmul.f32 1.442695, %v46_v24 }
   0xe   :  { %165 = vpow2.f32 %v51_v25 }
   0xf   :  { %167 = vpow2.f32 %v49_v26 }
  0x10   :  { %169 = vpow2.f32 %v53_v27 }
  0x17   :  { %v164_v28 = vpop.eup %163 }
  0x18   :  { %v166_v29 = vpop.eup %165  ;;  %v55_v30 = vadd.f32 1.0, %v164_v28 }
  0x19   :  { %v168_v31 = vpop.eup %167  ;;  %v57_v32 = vadd.f32 1.0, %v166_v29 }
  0x1a   :  { %v170_v33 = vpop.eup %169  ;;  %171 = vlog2.f32 %v55_v30  ;;  %v56_v34 = vadd.f32 1.0, %v168_v31  ;;  %v179_v30 = vmov 0.0  }
  0x1b   :  { %173 = vlog2.f32 %v57_v32  ;;  %v58_v35 = vadd.f32 1.0, %v170_v33  ;;  %18 = vst [vmem:[%s256_s3] sm:$0x1] %v179_v30 }
  0x1c   :  { %175 = vlog2.f32 %v56_v34 }
  0x1d   :  { %177 = vlog2.f32 %v58_v35 }
  0x24   :  { %v172_v37 = vpop.eup %171 }
  0x25   :  { %v174_v39 = vpop.eup %173  ;;  %v60_v40 = vmul.f32 0.6931472, %v172_v37 }
  0x26   :  { %v176_v42 = vpop.eup %175  ;;  %v64_v43 = vmul.f32 0.6931472, %v174_v39 }
  0x27   :  { %v178_v45 = vpop.eup %177  ;;  %v67_v46 = vadd.f32 %v60_v40, %v35_v36  ;;  %v62_v47 = vmul.f32 0.6931472, %v176_v42 }
  0x28   :  { %v69_v48 = vadd.f32 %v64_v43, %v37_v38  ;;  %v66_v49 = vmul.f32 0.6931472, %v178_v45  ;;  %v138_v45 = vlaneseq }
  0x29   :  { %v71_v50 = vadd.f32 %v67_v46, %v27_v3  ;;  %v68_v51 = vadd.f32 %v62_v47, %v36_v41  ;;  %v123_v3 = vsel %vm105_vm1, %v98_v2, 0.0 }
  0x2a   :  { %v73_v52 = vadd.f32 %v69_v48, %v29_v7  ;;  %v70_v53 = vadd.f32 %v66_v49, %v38_v44  ;;  %v124_v5 = vadd.f32 %v123_v3, %v122_v1  ;;  %v100_v7 = vld [vmem:[%s255_s2 + $0x18] sm:$0xff]  ;;  %v139_v46 = vand.u32 127, %v138_v45 }
  0x2b   :  { %v154_v54 = vadd.f32 -0.6931472, %v71_v50  ;;  %v72_v55 = vadd.f32 %v68_v51, %v28_v8  ;;  %v127_v9 = vsel %vm105_vm1, %v100_v7, 0.0  ;;  %v140_v50 = vld [vmem:[%s256_s3] sm:$0x1] }
  0x2c   :  { %v156_v56 = vadd.f32 -0.6931472, %v73_v52  ;;  %v74_v57 = vadd.f32 %v70_v53, %v30_v12  ;;  %v126_v8 = vadd.f32 %v125_v6, %v124_v5  ;;  %vm141_vm2 = vcmp.eq.s32.totalorder %v139_v46, 0 }
  0x2d   :  { %v80_v58 = vsel %vm79_vm0, %v154_v54, 0.0  ;;  %v155_v59 = vadd.f32 -0.6931472, %v72_v55  ;;  %vm144_vm3 = vcmp.eq.s32.totalorder %v139_v46, 1 }
  0x2e   :  { %81 = vadd.xlane.f32.xlu0 %v80_v58  ;;  %v86_v60 = vsel %vm79_vm0, %v156_v56, 0.0  ;;  %v157_v61 = vadd.f32 -0.6931472, %v74_v57  ;;  %v128_v10 = vadd.f32 %v127_v9, %v126_v8 }
  0x2f   :  { %87 = vadd.xlane.f32.xlu1 %v86_v60  ;;  %v83_v62 = vsel %vm79_vm0, %v155_v59, 0.0 }
  0x30   :  { %v89_v63 = vsel %vm79_vm0, %v157_v61, 0.0 }
  0x32   :  { %84 = vadd.xlane.f32.xlu0 %v83_v62 }
  0x33   :  { %90 = vadd.xlane.f32.xlu1 %v89_v63 }
  0x37   :  { %129 = vadd.xlane.f32.xlu1 %v128_v10 }
  0xbb   :  { %v82_v11 = vpop.xlane.xlu0 %81 }
  0xbc   :  { %v93_v12 = vmul.f32 0.015625, %v82_v11  ;;  %v88_v13 = vpop.xlane.xlu1 %87 }
  0xbd   :  { %v95_v14 = vmul.f32 0.015625, %v88_v13 }
  0xbe   :  { %v101_v16 = vmul.f32 %v97_v0, %v93_v12 }
  0xbf   :  { %v85_v15 = vpop.xlane.xlu0 %84  ;;  %v103_v20 = vmul.f32 %v99_v4, %v95_v14 }
  0xc0   :  { %v94_v17 = vmul.f32 0.015625, %v85_v15  ;;  %v91_v18 = vpop.xlane.xlu1 %90  ;;  %v106_v23 = vsel %vm105_vm1, %v101_v16, 0.0 }
  0xc1   :  { %v96_v19 = vmul.f32 0.015625, %v91_v18  ;;  %v109_v26 = vsel %vm105_vm1, %v103_v20, 0.0 }
  0xc2   :  { %v102_v21 = vmul.f32 %v98_v2, %v94_v17 }
  0xc3   :  { %v104_v22 = vmul.f32 %v100_v7, %v96_v19 }
  0xc4   :  { %v107_v24 = vsel %vm105_vm1, %v102_v21, 0.0  ;;  %v130_v31 = vpop.xlane.xlu1 %129 }
  0xc5   :  { %v108_v25 = vadd.f32 %v107_v24, %v106_v23  ;;  %v111_v27 = vsel %vm105_vm1, %v104_v22, 0.0  ;;  %v131_v32 = vrot.slane %v130_v31, 4 }
  0xc7   :  { %v110_v28 = vadd.f32 %v109_v26, %v108_v25  ;;  %v132_v33 = vadd.f32 %v131_v32, %v130_v31 }
  0xc9   :  { %v112_v29 = vadd.f32 %v111_v27, %v110_v28  ;;  %v133_v34 = vrot.slane %v132_v33, 2 }
  0xcb   :  { %113 = vadd.xlane.f32.xlu0 %v112_v29  ;;  %v134_v38 = vadd.f32 %v133_v34, %v132_v33 }
  0xcd   :  { %v135_v41 = vrot.slane %v134_v38, 1 }
  0xcf   :  { %v136_v44 = vadd.f32 %v135_v41, %v134_v38 }
 0x158   :  { %v114_v35 = vpop.xlane.xlu0 %113 }
 0x159   :  { %v115_v36 = vrot.slane %v114_v35, 4 }
 0x15b   :  { %v116_v37 = vadd.f32 %v115_v36, %v114_v35 }
 0x15d   :  { %v117_v39 = vrot.slane %v116_v37, 2 }
 0x15f   :  { %v118_v40 = vadd.f32 %v117_v39, %v116_v37 }
 0x161   :  { %v119_v42 = vrot.slane %v118_v40, 1 }
 0x163   :  { %v120_v43 = vadd.f32 %v119_v42, %v118_v40 }
 0x165   :  { %158 = vpush %v120_v43 }
 0x166   :  { %160 = vpush %v136_v44 }
 0x196   :  { %s159_s8 = spop %158 }
 0x197   :  { %v142_v47 = vstv %s159_s8  ;;  %s161_s9 = spop %160 }
 0x198   :  { %v143_v48 = vsel %vm141_vm2, %v142_v47, 0.0  ;;  %v145_v49 = vstv %s161_s9 }
 0x199   :  { %v146_v51 = vsel %vm144_vm3, %v145_v49, 0.0 }
 0x19a   :  { %v147_v52 = vadd.f32 %v146_v51, %v143_v48 }
 0x19c   :  { %v148_v53 = vadd.f32 %v147_v52, %v140_v50 }
 0x19e   :  { %149 = vst [vmem:[%s256_s3] sm:$0x1] %v148_v53 }

</bundles_post_ra>
